<compile_context>
chip_gen: v6e
topology: v6e:2x2x1
jax: 0.10.0
libtpu: 0.0.40
codegen_flags: <defaults>
</compile_context>

<pallas_src>
import math

import jax
import jax.numpy as jnp
from jax.experimental import pallas as pl
from jax.experimental.pallas import tpu as pltpu

D_IN, D_H1, D_H2, D_OUT = 1280, 512, 128, 1


def _mlp_kernel(x_ref, w1_ref, b1_ref, w2_ref, b2_ref, w3_ref, b3_ref, o_ref):
    # Cast x to bf16 in-kernel (no standalone XLA cast pass over HBM); if the
    # caller already supplies bf16 this is a no-op.
    x = x_ref[...].astype(jnp.bfloat16)

    # Layer 1: Linear (BN folded into W/b) -> ReLU.  bf16 operands, f32 accum.
    h1 = jnp.dot(x, w1_ref[...], preferred_element_type=jnp.float32) + b1_ref[...]
    h1 = jnp.maximum(h1, 0.0)

    # Layer 2: Linear (BN folded) -> ReLU.  Re-cast activations to bf16 for MXU.
    h2 = jnp.dot(h1.astype(jnp.bfloat16), w2_ref[...],
                 preferred_element_type=jnp.float32) + b2_ref[...]
    h2 = jnp.maximum(h2, 0.0)

    # Layer 3: 128 -> 1.  A 1-column matmul would waste the MXU (and pay an
    # MRF drain per step), so compute it as a VPU multiply + XLU lane reduction
    # against the lane-dense (1, 128) weight row.
    # TODO(synk): output stays (tile_n, 1); a fully lane-dense output slab
    # would need a sublane->lane relayout — output bytes are ~4 B/row, so it
    # is a cleanup item only if profiling shows writeback cost.
    o_ref[...] = jnp.sum(h2 * w3_ref[...], axis=-1, keepdims=True) + b3_ref[...]


def _round_up(a, b):
    return -(-a // b) * b


def _choose_tile_n(n, *, n_steps_target=4, tile_n_min=128, tile_n_max=1024):
    """N-aware row tile: bounds padding waste for small batches and keeps the
    grid >= n_steps_target when N permits (>= 2 steps per v7x TensorCore)."""
    per_step = -(-n // n_steps_target)
    t = _round_up(per_step, tile_n_min)
    return int(max(tile_n_min, min(tile_n_max, t)))


def _vmem_limit_bytes(tile_n, x_itemsize):
    """Scoped-VMEM budget: double-buffered x blocks dominate, plus the
    in-kernel bf16 cast, h1/h2 temporaries, (double-buffered) bf16 weight
    blocks, lane-padded out blocks and headroom."""
    est = (2 * tile_n * D_IN * x_itemsize          # x input blocks (double-buffered)
           + tile_n * D_IN * 2                     # in-kernel bf16 cast of x
           + tile_n * D_H1 * 6                     # h1 f32 + h1 bf16
           + tile_n * 128 * 4 * 3                  # h2 f32 + lane-padded out blocks
           + 2 * 2 * (D_IN * D_H1 + D_H1 * D_H2)   # bf16 W1/W2, double-buffered
           + 8 * 1024 * 1024)                      # biases, w3 row, slack
    return int(min(est, 56 * 1024 * 1024))         # stays under v7x 64 MiB physical


def epitope_classifier_forward(x, folded_params, *, tile_n=None):
    """x: [N, 1280] float32 or bfloat16.  Returns [N, 1] float32 logits."""
    w1, b1, w2, b2, w3_row, b3 = folded_params
    n, d_in = x.shape
    assert d_in == D_IN

    if tile_n is None:
        tile_n = _choose_tile_n(n)

    # cdiv grid: no wrapper-side jnp.pad — the last block is partial; Pallas
    # masks the out-of-bounds output writes, and the garbage OOB input rows
    # only affect those discarded rows (row-wise independent math).
    grid = (pl.cdiv(n, tile_n),)

    def rep(shape):
        # Replicated parameter block (same block index every grid step, so the
        # pipeline never re-fetches it).
        # Note: pl.Buffered(1) single-buffering here would save ~1.4 MiB of
        # VMEM for W1; skipped because the budget already fits comfortably.
        return pl.BlockSpec(shape, lambda i: (0, 0))

    out = pl.pallas_call(
        _mlp_kernel,
        out_shape=jax.ShapeDtypeStruct((n, D_OUT), jnp.float32),
        grid_spec=pltpu.PrefetchScalarGridSpec(
            num_scalar_prefetch=0,
            grid=grid,
            in_specs=[
                pl.BlockSpec((tile_n, D_IN), lambda i: (i, 0)),  # x row-tile
                rep((D_IN, D_H1)), rep((1, D_H1)),               # W1', b1' (BN folded)
                rep((D_H1, D_H2)), rep((1, D_H2)),               # W2', b2' (BN folded)
                rep((1, D_H2)), rep((1, D_OUT)),                 # w3 row, b3
            ],
            out_specs=pl.BlockSpec((tile_n, D_OUT), lambda i: (i, 0)),
        ),
        compiler_params=pltpu.CompilerParams(
            dimension_semantics=("parallel",),      # megacore shards rows on v7x
            vmem_limit_bytes=_vmem_limit_bytes(tile_n, x.dtype.itemsize),
        ),
    )(x, w1, b1, w2, b2, w3_row, b3)

    return out


def init_params(key):
    """Deterministic PyTorch-style init.  Linear weights stored as [in, out]."""
    def linear(key, fan_in, fan_out):
        kw, kb = jax.random.split(key)
        bound = 1.0 / math.sqrt(fan_in)
        w = jax.random.uniform(kw, (fan_in, fan_out), jnp.float32, -bound, bound)
        b = jax.random.uniform(kb, (1, fan_out), jnp.float32, -bound, bound)
        return w, b

    k1, k2, k3 = jax.random.split(key, 3)
    w1, b1 = linear(k1, D_IN, D_H1)
    w2, b2 = linear(k2, D_H1, D_H2)
    w3, b3 = linear(k3, D_H2, D_OUT)

    eps = 1e-5
    def bn(dim):
        # BatchNorm1d at init: gamma=1, beta=0, running_mean=0, running_var=1.
        return dict(gamma=jnp.ones((1, dim), jnp.float32),
                    beta=jnp.zeros((1, dim), jnp.float32),
                    mean=jnp.zeros((1, dim), jnp.float32),
                    var=jnp.ones((1, dim), jnp.float32),
                    eps=eps)

    return dict(w1=w1, b1=b1, bn1=bn(D_H1),
                w2=w2, b2=b2, bn2=bn(D_H2),
                w3=w3, b3=b3)


def fold_params(p):
    """Fold eval-mode BatchNorm into the preceding Linear and cast the MXU
    weight operands to bf16 (accumulation stays f32 inside the kernel)."""
    def fold(w, b, bn):
        scale = bn["gamma"] / jnp.sqrt(bn["var"] + bn["eps"])      # (1, D_out)
        shift = bn["beta"] - bn["mean"] * scale
        return (w * scale).astype(jnp.bfloat16), b * scale + shift  # W', b'
    w1f, b1f = fold(p["w1"], p["b1"], p["bn1"])
    w2f, b2f = fold(p["w2"], p["b2"], p["bn2"])
    w3_row = p["w3"].T        # (1, 128) lane-dense row, kept f32 for VPU reduce
    return (w1f, b1f, w2f, b2f, w3_row, p["b3"])


def reference_forward_f32(x, p):
    """Full-precision reference matching the PyTorch module in eval mode."""
    def bn_apply(h, bn):
        scale = bn["gamma"] / jnp.sqrt(bn["var"] + bn["eps"])
        return (h - bn["mean"]) * scale + bn["beta"]
    h1 = jnp.maximum(bn_apply(x @ p["w1"] + p["b1"], p["bn1"]), 0.0)
    h2 = jnp.maximum(bn_apply(h1 @ p["w2"] + p["b2"], p["bn2"]), 0.0)
    return h2 @ p["w3"] + p["b3"]


def reference_forward_bf16(x, folded):
    """Reference using the exact same precision recipe as the kernel."""
    w1, b1, w2, b2, w3_row, b3 = folded
    h1 = jnp.maximum(jnp.dot(x.astype(jnp.bfloat16), w1,
                             preferred_element_type=jnp.float32) + b1, 0.0)
    h2 = jnp.maximum(jnp.dot(h1.astype(jnp.bfloat16), w2,
                             preferred_element_type=jnp.float32) + b2, 0.0)
    return jnp.sum(h2 * w3_row, axis=-1, keepdims=True) + b3


if __name__ == "__main__":
    key = jax.random.PRNGKey(0)
    kx, kp = jax.random.split(key)

    # Small batch; deliberately NOT a multiple of the row tile so the
    # partial-last-block (cdiv grid, masked OOB writes) path is exercised.
    N = 200
    x = jax.random.normal(kx, (N, D_IN), jnp.float32)

    params = init_params(kp)
    folded = fold_params(params)

    out = jax.block_until_ready(epitope_classifier_forward(x, folded))
    assert out.shape == (N, D_OUT)

    # Exact check against a reference with the same bf16/f32 recipe.
    ref_bf16 = reference_forward_bf16(x, folded)
    assert jnp.allclose(out, ref_bf16, atol=2e-3, rtol=2e-3), \
        "mismatch vs bf16-matched reference"

    # Semantic check against the full-f32 PyTorch-equivalent math.
    ref_f32 = reference_forward_f32(x, params)
    assert jnp.allclose(out, ref_f32, atol=1e-2, rtol=1e-2), \
        "mismatch vs f32 module reference"

    print("KERNEL_OK")
</pallas_src>

<mosaic_0001>
module attributes {stable_mosaic.version = 11 : i64} {
  func.func @_mlp_kernel(%arg0: i32, %arg1: memref<128x1280xf32, #tpu.memory_space<vmem>>, %arg2: memref<1280x512xbf16, #tpu.memory_space<vmem>>, %arg3: memref<1x512xf32, #tpu.memory_space<vmem>>, %arg4: memref<512x128xbf16, #tpu.memory_space<vmem>>, %arg5: memref<1x128xf32, #tpu.memory_space<vmem>>, %arg6: memref<1x128xf32, #tpu.memory_space<vmem>>, %arg7: memref<1x1xf32, #tpu.memory_space<vmem>>, %arg8: memref<128x1xf32, #tpu.memory_space<vmem>>) attributes {dimension_semantics = [#tpu.dimension_semantics<parallel>], iteration_bounds = array<i64: 2>, scalar_prefetch = 0 : i64, scratch_operands = 0 : i64, tpu.core_type = #tpu.core_type<tc>, window_params = [{transform_indices = @transform_0, window_bounds = array<i64: 128, 1280>}, {pipeline_mode = #tpu.pipeline_mode<synchronous>, transform_indices = @transform_1, window_bounds = array<i64: 1280, 512>}, {pipeline_mode = #tpu.pipeline_mode<synchronous>, transform_indices = @transform_2, window_bounds = array<i64: 1, 512>}, {pipeline_mode = #tpu.pipeline_mode<synchronous>, transform_indices = @transform_3, window_bounds = array<i64: 512, 128>}, {pipeline_mode = #tpu.pipeline_mode<synchronous>, transform_indices = @transform_4, window_bounds = array<i64: 1, 128>}, {pipeline_mode = #tpu.pipeline_mode<synchronous>, transform_indices = @transform_5, window_bounds = array<i64: 1, 128>}, {pipeline_mode = #tpu.pipeline_mode<synchronous>, transform_indices = @transform_6, window_bounds = array<i64: 1, 1>}, {transform_indices = @transform_7, window_bounds = array<i64: 128, 1>}]} {
    %c0 = arith.constant 0 : index
    %c0_0 = arith.constant 0 : index
    %0 = vector.load %arg1[%c0, %c0_0] : memref<128x1280xf32, #tpu.memory_space<vmem>>, vector<128x1280xf32>
    %1 = arith.truncf %0 : vector<128x1280xf32> to vector<128x1280xbf16>
    %c0_1 = arith.constant 0 : index
    %c0_2 = arith.constant 0 : index
    %2 = vector.load %arg2[%c0_1, %c0_2] : memref<1280x512xbf16, #tpu.memory_space<vmem>>, vector<1280x512xbf16>
    %cst = arith.constant dense<0.000000e+00> : vector<128x512xf32>
    %3 = tpu.matmul %1, %2, %cst {dimension_numbers = #tpu.dot_dimension_numbers<[1], [0], [0], [1], [0, 0, 1, 1], [], []>} : vector<128x1280xbf16>, vector<1280x512xbf16>, vector<128x512xf32> -> vector<128x512xf32>
    %c0_3 = arith.constant 0 : index
    %c0_4 = arith.constant 0 : index
    %4 = vector.load %arg3[%c0_3, %c0_4] : memref<1x512xf32, #tpu.memory_space<vmem>>, vector<1x512xf32>
    %5 = vector.broadcast %4 : vector<1x512xf32> to vector<128x512xf32>
    %6 = arith.addf %3, %5 : vector<128x512xf32>
    %cst_5 = arith.constant 0.000000e+00 : f32
    %7 = vector.broadcast %cst_5 : f32 to vector<128x512xf32>
    %8 = arith.maximumf %6, %7 : vector<128x512xf32>
    %9 = arith.truncf %8 : vector<128x512xf32> to vector<128x512xbf16>
    %c0_6 = arith.constant 0 : index
    %c0_7 = arith.constant 0 : index
    %10 = vector.load %arg4[%c0_6, %c0_7] : memref<512x128xbf16, #tpu.memory_space<vmem>>, vector<512x128xbf16>
    %cst_8 = arith.constant dense<0.000000e+00> : vector<128x128xf32>
    %11 = tpu.matmul %9, %10, %cst_8 {dimension_numbers = #tpu.dot_dimension_numbers<[1], [0], [0], [1], [0, 0, 1, 1], [], []>} : vector<128x512xbf16>, vector<512x128xbf16>, vector<128x128xf32> -> vector<128x128xf32>
    %c0_9 = arith.constant 0 : index
    %c0_10 = arith.constant 0 : index
    %12 = vector.load %arg5[%c0_9, %c0_10] : memref<1x128xf32, #tpu.memory_space<vmem>>, vector<1x128xf32>
    %13 = vector.broadcast %12 : vector<1x128xf32> to vector<128x128xf32>
    %14 = arith.addf %11, %13 : vector<128x128xf32>
    %cst_11 = arith.constant 0.000000e+00 : f32
    %15 = vector.broadcast %cst_11 : f32 to vector<128x128xf32>
    %16 = arith.maximumf %14, %15 : vector<128x128xf32>
    %c0_12 = arith.constant 0 : index
    %c0_13 = arith.constant 0 : index
    %17 = vector.load %arg6[%c0_12, %c0_13] : memref<1x128xf32, #tpu.memory_space<vmem>>, vector<1x128xf32>
    %18 = vector.broadcast %17 : vector<1x128xf32> to vector<128x128xf32>
    %19 = arith.mulf %16, %18 : vector<128x128xf32>
    %cst_14 = arith.constant dense<0.000000e+00> : vector<128xf32>
    %20 = vector.multi_reduction <add>, %19, %cst_14 [1] : vector<128x128xf32> to vector<128xf32>
    %21 = vector.shape_cast %20 : vector<128xf32> to vector<128x1xf32>
    %c0_15 = arith.constant 0 : index
    %c0_16 = arith.constant 0 : index
    %22 = vector.load %arg7[%c0_15, %c0_16] : memref<1x1xf32, #tpu.memory_space<vmem>>, vector<1x1xf32>
    %23 = vector.broadcast %22 : vector<1x1xf32> to vector<128x1xf32>
    %24 = arith.addf %21, %23 : vector<128x1xf32>
    %c0_17 = arith.constant 0 : index
    %c0_18 = arith.constant 0 : index
    %25 = vector.load %arg8[%c0_17, %c0_18] : memref<128x1xf32, #tpu.memory_space<vmem>>, vector<128x1xf32>
    tpu.vector_store %arg8[%c0_17, %c0_18], %24 {strides = array<i32>} : memref<128x1xf32, #tpu.memory_space<vmem>>, vector<128x1xf32>,
    return
  }
  func.func @transform_0(%arg0: i32) -> (i32, i32) {
    %c0_i32 = arith.constant 0 : i32
    %c0_i32_0 = arith.constant 0 : i32
    return %arg0, %c0_i32 : i32, i32
  }
  func.func @transform_1(%arg0: i32) -> (i32, i32) {
    %c0_i32 = arith.constant 0 : i32
    %c0_i32_0 = arith.constant 0 : i32
    %c0_i32_1 = arith.constant 0 : i32
    return %c0_i32, %c0_i32_0 : i32, i32
  }
  func.func @transform_2(%arg0: i32) -> (i32, i32) {
    %c0_i32 = arith.constant 0 : i32
    %c0_i32_0 = arith.constant 0 : i32
    %c0_i32_1 = arith.constant 0 : i32
    return %c0_i32, %c0_i32_0 : i32, i32
  }
  func.func @transform_3(%arg0: i32) -> (i32, i32) {
    %c0_i32 = arith.constant 0 : i32
    %c0_i32_0 = arith.constant 0 : i32
    %c0_i32_1 = arith.constant 0 : i32
    return %c0_i32, %c0_i32_0 : i32, i32
  }
  func.func @transform_4(%arg0: i32) -> (i32, i32) {
    %c0_i32 = arith.constant 0 : i32
    %c0_i32_0 = arith.constant 0 : i32
    %c0_i32_1 = arith.constant 0 : i32
    return %c0_i32, %c0_i32_0 : i32, i32
  }
  func.func @transform_5(%arg0: i32) -> (i32, i32) {
    %c0_i32 = arith.constant 0 : i32
    %c0_i32_0 = arith.constant 0 : i32
    %c0_i32_1 = arith.constant 0 : i32
    return %c0_i32, %c0_i32_0 : i32, i32
  }
  func.func @transform_6(%arg0: i32) -> (i32, i32) {
    %c0_i32 = arith.constant 0 : i32
    %c0_i32_0 = arith.constant 0 : i32
    %c0_i32_1 = arith.constant 0 : i32
    return %c0_i32, %c0_i32_0 : i32, i32
  }
  func.func @transform_7(%arg0: i32) -> (i32, i32) {
    %c0_i32 = arith.constant 0 : i32
    %c0_i32_0 = arith.constant 0 : i32
    return %arg0, %c0_i32 : i32, i32
  }
}

</mosaic_0001>

<bundles_post_ra>
// kernel: tpu_custom_call.1
= control target key start
LH: loop header
LB: loop body
LE: loop exit
PB: predicated region body
PF: predicated region fallthrough
CT: control target
= control target key end

     0   :  { %s7618_s0 = inlined_call_operand.hbm [shape: f32[200,1280], index: 0, kind: input, shape index: {}]   ;;  %s7619_s1 = inlined_call_operand.hbm [shape: bf16[1280,512], index: 1, kind: input, shape index: {}]   ;;  %s7620_s2 = inlined_call_operand.hbm [shape: f32[1,512], index: 2, kind: input, shape index: {}]   ;;  %s7621_s3 = inlined_call_operand.hbm [shape: bf16[512,128], index: 3, kind: input, shape index: {}]   ;;  %s7622_s4 = inlined_call_operand.hbm [shape: f32[1,128], index: 4, kind: input, shape index: {}]   ;;  %s7623_s5 = inlined_call_operand.hbm [shape: f32[1,128], index: 5, kind: input, shape index: {}]   ;;  %s7624_s6 = inlined_call_operand.<no memory space> [shape: f32[1,1], index: 6, kind: input, shape index: {}]   ;;  %s7625_s7 = inlined_call_operand.vmem [shape: f32[200,1], index: 7, kind: output, shape index: {}]  }
   0x1   :  { %v12_v0 = vstv %s7624_s6 }
   0x2   :  { %13 = vst [vmem:[#allocation2] sm:$0x1] %v12_v0 }
   0x3   :  { %14 = vsyncpa [#allocation4], 0 }
   0x4   :  { %16 = vsyncpa [#allocation4 + $0x1], 0 }
   0x5   :  { %17 = vsyncpa [#allocation6], 0 }
   0x6   :  { %18 = vsyncpa [#allocation9], 0 }
   0x7   :  { %19 = vsyncpa [#allocation12], 0  ;;  %s6211_s26 = smov 0   ;;  %s6213_s27 = smov 0  }
   0x8   :  { %s6215_s28 = smov 0   ;;  %s6217_s29 = smov 0  }
   0x9 LB: > { %s6230_s6 = sadd.s32 4294967295, %s6122_s29   ;;  %s6233_s30 = sadd.s32 1, %s6122_s29   ;;  %s6122_s29 = sphi %s6217_s29, %s7783_s29   ;;  %s6118_s28 = sphi %s6215_s28, %s7782_s28   ;;  %s6114_s27 = sphi %s6213_s27, %s7781_s27   ;;  %s6110_s26 = sphi %s6211_s26, %s7780_s26  }
   0xa   : > { %s29_s8 = ssub.s32 %s6122_s29, %s6233_s30  ;;  %s32_s9 = sadd.s32 1, %s6118_s28 }
   0xb   : > { %p30_p0 = scmp.eq.s32.totalorder %s29_s8, 0  ;;  %p39_p1 = scmp.ne.s32.totalorder %s6118_s28, %s6114_s27 }
   0xc   : > { %p40_p2 = scmp.eq.s32.totalorder %s6122_s29, 0  ;;  %p45_p3 = scmp.ne.s32.totalorder %s6114_s27, %s6110_s26 }
   0xd   : > { %s6243_s10 = scalar_select %p30_p0, %s6118_s28, %s32_s9  }
   0xe   : > { %p6245_p4 = por %p40_p2, %p39_p1  ;;  %p7626_p5 = scmp.eq.s32.totalorder %s6230_s6, 0 }
   0xf   : > { %p195_p6 = scmp.eq.s32.totalorder %s6230_s6, 1  ;;  %p4694_p7 = scmp.ge.s32.totalorder %s6122_s29, 1 }
  0x10   : > { %s7649_s11 = scalar_select %p6245_p4, 1, 0 }
  0x11   : > { %p6254_p8 = por %p7626_p5, %p45_p3  ;;  %p208_p9 = scmp.lt.s32.totalorder %s6122_s29, 3 }
  0x12   : > { %p6259_p10 = por %p195_p6, %p39_p1  ;;  %s6156_s15 = smov [#allocation5]  }
  0x13   : > { %s7650_s12 = scalar_select %p6254_p8, 1, 0 }
  0x14   : > { %s7651_s13 = scalar_select %p6259_p10, 1, 0 }
  0x15   : > { %p6263_p11 = pnand %p4694_p7, %p208_p9  ;;  %s220_s16 = sshll.u32 %s6156_s15, 4  ;;  %s221_s16 = int_to_ptr.vmem [resolvable:$true] %s220_s16 }
  0x16   : > { %s6157_s18 = smov [#allocation8]   ;;  %s5899_s21 = scalar_lea.vmem %s221_s16, 40960 }
  0x17   : > { %s7652_s14 = scalar_select %p6263_p11, 1, 0 }
  0x18   : > { %p5242_p12 = pneg %p6263_p11  ;;  %s244_s19 = sshll.u32 %s6157_s18, 4  ;;  %s245_s19 = int_to_ptr.vmem [resolvable:$true] %s244_s19 }
  0x19   : > { %p5900_p1 = scmp.ne.s32.totalorder %s221_s16, %s5899_s21  ;;  %p5907_p6 = scmp.lt.s32.totalorder %s221_s16, %s221_s16 }
  0x1a   : > { %p6271_p13 = pnand %p5242_p12, %p7626_p5  ;;  %p5908_p7 = scmp.lt.s32.totalorder %s5899_s21, %s5899_s21 }
  0x1c   : > { %p6277_p0 = pneg %p6271_p13  ;;  %p5909_p9 = por %p5908_p7, %p5907_p6 }
  0x1e   : > { %p5902_p2 = pnand %p5900_p1, %p6277_p0 }
  0x20   : > { %p5903_p3 = pneg %p5902_p2 }
  0x22   : > { %p5910_p12 = pnand %p5909_p9, %p5903_p3 }
  0x24   : > { %5913 = shalt.err (!%p5910_p12)
}
  0x25   : > { %s6158_s22 = smov 256   ;;  %s6159_s23 = smov 16  }
  0x26   : > { %5245 = dma.hbm_to_vmem [thread:$0]  (!%p6271_p13), %s7619_s1, 40960, %s221_s16, [#allocation6], %s6158_s22, %s6158_s22, %s6159_s23  }
  0x27   : > { %s5925_s26 = scalar_lea.vmem %s245_s19, 4096  ;;  %p5933_p2 = scmp.lt.s32.totalorder %s245_s19, %s245_s19 }
  0x28   : > { %p5926_p5 = scmp.ne.s32.totalorder %s245_s19, %s5925_s26  ;;  %p5934_p8 = scmp.lt.s32.totalorder %s5925_s26, %s5925_s26 }
  0x2a   : > { %p5928_p10 = pnand %p5926_p5, %p6277_p0  ;;  %p5935_p11 = por %p5934_p8, %p5933_p2 }
  0x2c   : > { %p5929_p1 = pneg %p5928_p10 }
  0x2e   : > { %p5936_p6 = pnand %p5935_p11, %p5929_p1 }
  0x30   : > { %5939 = shalt.err (!%p5936_p6)
}
  0x31   : > { %s6160_s8 = smov 64   ;;  %s6161_s9 = smov 4  }
  0x32   : > { %5251 = dma.hbm_to_vmem [thread:$0]  (!%p6271_p13), %s7621_s3, 4096, %s245_s19, [#allocation9], %s6160_s8, %s6160_s8, %s6161_s9  }
  0x33   : > { %s6162_s16 = smov [#allocation7]   ;;  %s6163_s22 = smov [#allocation10]  }
  0x34   : > { %s234_s21 = sshll.u32 %s6162_s16, 4  ;;  %s258_s23 = sshll.u32 %s6163_s22, 4  ;;  %s235_s21 = int_to_ptr.vmem [resolvable:$true] %s234_s21  ;;  %s259_s23 = int_to_ptr.vmem [resolvable:$true] %s258_s23 }
  0x35   : > { %s5951_s24 = scalar_lea.vmem %s235_s21, 64  ;;  %p5959_p11 = scmp.lt.s32.totalorder %s235_s21, %s235_s21 }
  0x36   : > { %p5952_p5 = scmp.ne.s32.totalorder %s235_s21, %s5951_s24  ;;  %p5960_p3 = scmp.lt.s32.totalorder %s5951_s24, %s5951_s24 }
  0x38   : > { %p5954_p8 = pnand %p5952_p5, %p6277_p0  ;;  %p5961_p7 = por %p5960_p3, %p5959_p11 }
  0x3a   : > { %p5955_p10 = pneg %p5954_p8 }
  0x3c   : > { %p5962_p9 = pnand %p5961_p7, %p5955_p10 }
  0x3e   : > { %5965 = shalt.err (!%p5962_p9)
}
  0x3f   : > { %5248 = dma.hbm_to_vmem [thread:$0]  (!%p6271_p13), %s7620_s2, 64, %s235_s21, [#allocation6]  }
  0x40   : > { %s5977_s26 = scalar_lea.vmem %s259_s23, 16  ;;  %s5984_s8 = scalar_lea.vmem %s259_s23, 32 }
  0x41   : > { %p5978_p12 = scmp.ne.s32.totalorder %s259_s23, %s5977_s26  ;;  %p5985_p6 = scmp.lt.s32.totalorder %s259_s23, %s259_s23 }
  0x42   : > { %p5986_p5 = scmp.lt.s32.totalorder %s5984_s8, %s5977_s26 }
  0x43   : > { %p5980_p1 = pnand %p5978_p12, %p6277_p0 }
  0x44   : > { %p5987_p8 = por %p5986_p5, %p5985_p6 }
  0x45   : > { %p5981_p2 = pneg %p5980_p1 }
  0x47   : > { %p5988_p4 = pnand %p5987_p8, %p5981_p2 }
  0x49   : > { %5991 = shalt.err (!%p5988_p4)
}
  0x4a   : > { %5254 = dma.hbm_to_vmem [thread:$0]  (!%p6271_p13), %s7622_s4, 16, %s259_s23, [#allocation9]  }
  0x4b   : > { %s6164_s18 = smov [#allocation11]  }
  0x4c   : > { %s269_s16 = sshll.u32 %s6164_s18, 4  ;;  %s270_s16 = int_to_ptr.vmem [resolvable:$true] %s269_s16 }
  0x4d   : > { %s6003_s21 = scalar_lea.vmem %s270_s16, 16  ;;  %s6010_s22 = scalar_lea.vmem %s270_s16, 32 }
  0x4e   : > { %p6004_p10 = scmp.ne.s32.totalorder %s270_s16, %s6003_s21  ;;  %p6011_p7 = scmp.lt.s32.totalorder %s270_s16, %s270_s16 }
  0x4f   : > { %p6012_p9 = scmp.lt.s32.totalorder %s6010_s22, %s6003_s21 }
  0x50   : > { %p6006_p11 = pnand %p6004_p10, %p6277_p0 }
  0x51   : > { %p6013_p12 = por %p6012_p9, %p6011_p7 }
  0x52   : > { %p6007_p3 = pneg %p6006_p11 }
  0x54   : > { %p6014_p4 = pnand %p6013_p12, %p6007_p3 }
  0x56   : > { %6017 = shalt.err (!%p6014_p4)
}
  0x57   : > { %5257 = dma.hbm_to_vmem [thread:$0]  (!%p6271_p13), %s7623_s5, 16, %s270_s16, [#allocation12]  }
  0x58   : > { %p4700_p1 = scmp.ge.s32.totalorder %s6122_s29, 2 }
  0x59   : > { %p7655_p2 = scmp.ne.s32.totalorder (!%p4700_p1), %s7649_s11, 0 }
  0x5a   : > { %279 = sbr.rel (%p4700_p1) target bundleno = 129 (0x81), region = 40 }
  0x5f   : > { %282 = sbr.rel (!%p7655_p2) target bundleno = 129 (0x81), region = 44  ;;  %s283_s20 = sand.u32 (%p7655_p2), 1, %s6118_s28  }
  0x60   : > { %s4701_s23 = sshll.u32 (%p7655_p2), %s6122_s29, 4  ;;  %s5218_s19 = smul.u32 (%p7655_p2), 1280, %s283_s20 }
  0x61   : > { %s289_s26 = ssub.s32 (%p7655_p2), 25, %s4701_s23  ;;  %s6324_s9 = scalar_lea.sflag (%p7655_p2), [#allocation4], %s283_s20 }
  0x62   : > { %p290_p0 = scmp.lt.s32.totalorder (%p7655_p2), %s289_s26, 16  ;;  %s287_s15 = scalar_lea.vmem (%p7655_p2), [#allocation3], %s5218_s19 }
  0x64   : > { %s7785_s26 = smov (!%p290_p0, %s289_s26), 16 }
  0x65   : > { %s6321_s8 = smul.u32 1280, %s7785_s26 }
  0x67   : > { %s295_s17 = ssub.s32 20480, %s6321_s8 }
  0x68   : > { %296 = vsyncadd %s6324_s9, %s295_s17  ;;  %p4704_p13 = scmp.ne.s32.totalorder %s6321_s8, 0  ;;  %s5219_s11 = smul.u32 20480, %s6122_s29 }
  0x69   : > { %s302_s18 = sshll.u32 %s287_s15, 4  ;;  %s6022_s29 = scalar_lea.hbm %s7618_s0, 32000  ;;  %s6334_s18 = int_to_ptr.vmem [resolvable:$true] %s302_s18 }
  0x6a   : > { %s6332_s22 = scalar_lea.hbm %s7618_s0, %s5219_s11 }
  0x6b   : > { %s6018_s24 = scalar_lea.hbm %s6332_s22, %s6321_s8  ;;  %p6023_p10 = scmp.lt.s32.totalorder %s6332_s22, %s7618_s0 }
  0x6c   : > { %p6019_p6 = scmp.ne.s32.totalorder %s6332_s22, %s6018_s24  ;;  %p6024_p11 = scmp.lt.s32.totalorder %s6022_s29, %s6018_s24 }
  0x6e   : > { %p6020_p5 = pnand %p6019_p6, %p4704_p13  ;;  %p6025_p3 = por %p6024_p11, %p6023_p10 }
  0x70   : > { %p6021_p8 = pneg %p6020_p5 }
  0x72   : > { %p6026_p7 = pnand %p6025_p3, %p6021_p8 }
  0x74   : > { %6029 = shalt.err (!%p6026_p7)
}
  0x75   : > { %s6030_s26 = scalar_lea.vmem %s6334_s18, %s6321_s8  ;;  %s6165_s17 = smov [#allocation3]  }
  0x76   : > { %p6031_p9 = scmp.ne.s32.totalorder %s6334_s18, %s6030_s26  ;;  %s6034_s15 = sshll.u32 %s6165_s17, 4  ;;  %s6035_s15 = int_to_ptr.vmem [resolvable:$false] %s6034_s15 }
  0x77   : > { %s6036_s11 = scalar_lea.vmem %s6035_s15, 40960  ;;  %p6037_p1 = scmp.lt.s32.totalorder %s6334_s18, %s6035_s15 }
  0x78   : > { %p6032_p12 = pnand %p6031_p9, %p4704_p13  ;;  %p6038_p2 = scmp.lt.s32.totalorder %s6036_s11, %s6030_s26 }
  0x7a   : > { %p6033_p4 = pneg %p6032_p12  ;;  %p6039_p0 = por %p6038_p2, %p6037_p1 }
  0x7c   : > { %p6040_p6 = pnand %p6039_p0, %p6033_p4 }
  0x7e   : > { %6043 = shalt.err (!%p6040_p6)
}
  0x7f   : > { %s6166_s16 = smov 1280   ;;  %s6167_s21 = smov 80  }
  0x80   : > { %308 = dma.hbm_to_vmem [thread:$0]  (%p4704_p13), %s6332_s22, %s6321_s8, %s6334_s18, %s6324_s9, %s6166_s16, %s6166_s16, %s6167_s21  }
  0x81 PF: > { %p7656_p5 = scmp.ne.s32.totalorder %s7652_s14, 0 }
  0x83   : > { %314 = sbr.rel (%p7656_p5) target bundleno = 1125 (0x465), region = 48 }
  0x88   : > { %s6363_s24 = sand.u32 1, %s6114_s27   ;;  %p7657_p8 = scmp.ne.s32.totalorder %s7650_s12, 0 }
  0x89   : > { %s5220_s25 = smul.u32 1280, %s6363_s24  ;;  %s317_s20 = scalar_lea.sflag [#allocation4], %s6363_s24 }
  0x8b   : > { %s6367_s29 = scalar_lea.vmem [#allocation3], %s5220_s25 }
  0x8c   : > { %6093 = dma.done.wait (%p7657_p8), %s317_s20, 20480  }
  0x8d   : > { %6095 = vsyncadd (%p7657_p8), %s317_s20, 4294946816  ;;  %p7658_p13 = scmp.eq.s32.totalorder %s6230_s6, 0 }
  0x8f   : > { %6097 = dma.done.wait (%p7658_p13), [#allocation6], 41024   ;;  %p7659_p10 = pmov %p7658_p13 }
  0x91   : > { %6099 = vsyncadd (%p7659_p10), [#allocation6], 4294926272  ;;  %p7660_p11 = pmov %p7659_p10 }
  0x92   : > { %p7661_p3 = pmov %p7659_p10 }
  0x93   : > { %6101 = dma.done.wait (%p7660_p11), [#allocation9], 4112  }
  0x94   : > { %6103 = vsyncadd (%p7661_p3), [#allocation9], 4294963184  ;;  %p7662_p7 = pmov %p7661_p3 }
  0x95   : > { %p7663_p9 = pmov %p7661_p3 }
  0x96   : > { %6105 = dma.done.wait (%p7662_p7), [#allocation12], 16  }
  0x97   : > { %6107 = vsyncadd (%p7663_p9), [#allocation12], 4294967280  ;;  %v5375_v1 = vld [vmem:[#allocation5 + $0xe4] ss:$16 sps:$4 sm:$0xff]   ;;  %v5379_v3 = vld [vmem:[#allocation5 + $0xe0] ss:$16 sps:$4 sm:$0xff]  }
  0x98   : > { %v5377_v2 = vld [vmem:[#allocation5 + $0x2e4] ss:$16 sps:$4 sm:$0xff]   ;;  %2564 = vmatprep.subr.bf16.mxu0 %v5375_v1  ;;  %v5380_v4 = vld [vmem:[#allocation5 + $0x2e0] ss:$16 sps:$4 sm:$0xff]   ;;  %v383_v47 = vld [vmem:[%s6367_s29 + $0x8] sm:$0xff]  ;;  %s4714_s12 = sshll.u32 %s6363_s24, 7 }
  0x99   : > { %2677 = vmatprep.subr.bf16.mxu1 %v5377_v2  ;;  %v5381_v5 = vld [vmem:[#allocation5 + $0xc4] ss:$16 sps:$4 sm:$0xff]   ;;  %2565 = vmatpush1.bf16.msra.mxu0 %v5379_v3  ;;  %v5385_v7 = vld [vmem:[#allocation5 + $0xc0] ss:$16 sps:$4 sm:$0xff]   ;;  %v393_v48 = vld [vmem:[%s6367_s29 + $0x58] sm:$0xff]  ;;  %vm4341_vm0 = vcmask 7168  }
  0x9a   : > { %2678 = vmatpush1.bf16.msra.mxu1 %v5380_v4  ;;  %v5383_v6 = vld [vmem:[#allocation5 + $0x2c4] ss:$16 sps:$4 sm:$0xff]   ;;  %2566 = vmatprep.subr.bf16.mxu0 %v5381_v5  ;;  %v5386_v8 = vld [vmem:[#allocation5 + $0x2c0] ss:$16 sps:$4 sm:$0xff]   ;;  %v385_v49 = vld [vmem:[%s6367_s29 + $0x18] sm:$0xff]  ;;  %v6389_v54 = vpack.c.bf16 %v393_v48, %v383_v47  ;;  %s7481_s14 = scalar_lea.vmem [#allocation13], %s4714_s12  }
  0x9b   : > { %2679 = vmatprep.subr.bf16.mxu1 %v5383_v6  ;;  %v5387_v9 = vld [vmem:[#allocation5 + $0xa4] ss:$16 sps:$4 sm:$0xff]   ;;  %v5391_v11 = vld [vmem:[#allocation5 + $0xa0] ss:$16 sps:$4 sm:$0xff]   ;;  %v395_v50 = vld [vmem:[%s6367_s29 + $0x68] sm:$0xff]  ;;  %p7776_p12 = scmp.ne.s32.totalorder %s7651_s13, 0 }
  0x9c   : > { %v5389_v10 = vld [vmem:[#allocation5 + $0x2a4] ss:$16 sps:$4 sm:$0xff]   ;;  %v5392_v12 = vld [vmem:[#allocation5 + $0x2a0] ss:$16 sps:$4 sm:$0xff]   ;;  %v6391_v55 = vpack.c.bf16 %v395_v50, %v385_v49  ;;  %2596 = vmatprep.mubr.bf16.mxu0 %v6389_v54  ;;  %s5071_s8 = sshll.u32 (%p7776_p12), %s6230_s6, 4  ;;  %s5087_s9 = sshll.u32 (%p7776_p12), %s6230_s6, 7 }
  0x9d   : > { %2567 = vmatpush1.bf16.msra.mxu0 %v5385_v7  ;;  %v5393_v13 = vld [vmem:[#allocation5 + $0x84] ss:$16 sps:$4 sm:$0xff]   ;;  %v5397_v15 = vld [vmem:[#allocation5 + $0x80] ss:$16 sps:$4 sm:$0xff]   ;;  %s4366_s18 = ssub.s32 (%p7776_p12), 25, %s5071_s8  ;;  %s7522_s19 = scalar_lea.vmem (%p7776_p12), %s7625_s7, %s5087_s9  }
  0x9e   : > { %2680 = vmatpush1.bf16.msra.mxu1 %v5386_v8  ;;  %2568 = vmatprep.subr.bf16.mxu0 %v5387_v9  ;;  %v5395_v14 = vld [vmem:[#allocation5 + $0x284] ss:$16 sps:$4 sm:$0xff]   ;;  %v5398_v16 = vld [vmem:[#allocation5 + $0x280] ss:$16 sps:$4 sm:$0xff]   ;;  %p4367_p4 = scmp.lt.s32.totalorder (%p7776_p12), %s4366_s18, 16 }
  0x9f   : > { %2681 = vmatprep.subr.bf16.mxu1 %v5389_v10  ;;  %v5399_v17 = vld [vmem:[#allocation5 + $0x64] ss:$16 sps:$4 sm:$0xff]   ;;  %v5403_v19 = vld [vmem:[#allocation5 + $0x60] ss:$16 sps:$4 sm:$0xff]   ;;  %2709 = vmatprep.mubr.bf16.mxu1 %v6391_v55 }
  0xa0   : > { %v5401_v18 = vld [vmem:[#allocation5 + $0x264] ss:$16 sps:$4 sm:$0xff]   ;;  %v5404_v20 = vld [vmem:[#allocation5 + $0x260] ss:$16 sps:$4 sm:$0xff]  }
  0xa1   : > { %2569 = vmatpush1.bf16.msra.mxu0 %v5391_v11  ;;  %v5405_v21 = vld [vmem:[#allocation5 + $0x44] ss:$16 sps:$4 sm:$0xff]   ;;  %v5409_v23 = vld [vmem:[#allocation5 + $0x40] ss:$16 sps:$4 sm:$0xff]  }
  0xa2   : > { %2682 = vmatpush1.bf16.msra.mxu1 %v5392_v12  ;;  %2570 = vmatprep.subr.bf16.mxu0 %v5393_v13  ;;  %v5407_v22 = vld [vmem:[#allocation5 + $0x244] ss:$16 sps:$4 sm:$0xff]   ;;  %v5410_v24 = vld [vmem:[#allocation5 + $0x240] ss:$16 sps:$4 sm:$0xff]  }
  0xa3   : > { %2683 = vmatprep.subr.bf16.mxu1 %v5395_v14  ;;  %v5411_v25 = vld [vmem:[#allocation5 + $0x24] ss:$16 sps:$4 sm:$0xff]   ;;  %v5415_v27 = vld [vmem:[#allocation5 + $0x20] ss:$16 sps:$4 sm:$0xff]  }
  0xa4   : > { %v5413_v26 = vld [vmem:[#allocation5 + $0x224] ss:$16 sps:$4 sm:$0xff]   ;;  %v5416_v28 = vld [vmem:[#allocation5 + $0x220] ss:$16 sps:$4 sm:$0xff]  }
  0xa5   : > { %2571 = vmatpush1.bf16.msra.mxu0 %v5397_v15  ;;  %v5417_v29 = vld [vmem:[#allocation5 + $0x4] ss:$16 sps:$4 sm:$0xff]   ;;  %v5421_v31 = vld [vmem:[#allocation5] ss:$16 sps:$4 sm:$0xff]   ;;  %v403_v15 = vld [vmem:[%s6367_s29 + $0xa8] sm:$0xff] }
  0xa6   : > { %2684 = vmatpush1.bf16.msra.mxu1 %v5398_v16  ;;  %2572 = vmatprep.subr.bf16.mxu0 %v5399_v17  ;;  %v5419_v30 = vld [vmem:[#allocation5 + $0x204] ss:$16 sps:$4 sm:$0xff]   ;;  %v5422_v32 = vld [vmem:[#allocation5 + $0x200] ss:$16 sps:$4 sm:$0xff]   ;;  %v413_v16 = vld [vmem:[%s6367_s29 + $0xf8] sm:$0xff] }
  0xa7   : > { %2685 = vmatprep.subr.bf16.mxu1 %v5401_v18  ;;  %v5423_v33 = vld [vmem:[#allocation5 + $0x1e4] ss:$16 sps:$4 sm:$0xff]   ;;  %v5427_v35 = vld [vmem:[#allocation5 + $0x1e0] ss:$16 sps:$4 sm:$0xff]  }
  0xa8   : > { %v5425_v34 = vld [vmem:[#allocation5 + $0x3e4] ss:$16 sps:$4 sm:$0xff]   ;;  %v5428_v36 = vld [vmem:[#allocation5 + $0x3e0] ss:$16 sps:$4 sm:$0xff]  }
  0xa9   : > { %2573 = vmatpush1.bf16.msra.mxu0 %v5403_v19  ;;  %v5429_v37 = vld [vmem:[#allocation5 + $0x1c4] ss:$16 sps:$4 sm:$0xff]   ;;  %v5433_v39 = vld [vmem:[#allocation5 + $0x1c0] ss:$16 sps:$4 sm:$0xff]   ;;  %v405_v19 = vld [vmem:[%s6367_s29 + $0xb8] sm:$0xff] }
  0xaa   : > { %2686 = vmatpush1.bf16.msra.mxu1 %v5404_v20  ;;  %2574 = vmatprep.subr.bf16.mxu0 %v5405_v21  ;;  %v5431_v38 = vld [vmem:[#allocation5 + $0x3c4] ss:$16 sps:$4 sm:$0xff]   ;;  %v5434_v40 = vld [vmem:[#allocation5 + $0x3c0] ss:$16 sps:$4 sm:$0xff]   ;;  %v415_v20 = vld [vmem:[%s6367_s29 + $0x108] sm:$0xff] }
  0xab   : > { %2687 = vmatprep.subr.bf16.mxu1 %v5407_v22  ;;  %v5435_v41 = vld [vmem:[#allocation5 + $0x1a4] ss:$16 sps:$4 sm:$0xff]   ;;  %v5439_v43 = vld [vmem:[#allocation5 + $0x1a0] ss:$16 sps:$4 sm:$0xff]  }
  0xac   : > { %v5437_v42 = vld [vmem:[#allocation5 + $0x3a4] ss:$16 sps:$4 sm:$0xff]   ;;  %v5440_v44 = vld [vmem:[#allocation5 + $0x3a0] ss:$16 sps:$4 sm:$0xff]  }
  0xad   : > { %2575 = vmatpush1.bf16.msra.mxu0 %v5409_v23  ;;  %v5441_v45 = vld [vmem:[#allocation5 + $0x184] ss:$16 sps:$4 sm:$0xff]   ;;  %v5445_v51 = vld [vmem:[#allocation5 + $0x180] ss:$16 sps:$4 sm:$0xff]  }
  0xae   : > { %2688 = vmatpush1.bf16.msra.mxu1 %v5410_v24  ;;  %2576 = vmatprep.subr.bf16.mxu0 %v5411_v25  ;;  %v5443_v46 = vld [vmem:[#allocation5 + $0x384] ss:$16 sps:$4 sm:$0xff]   ;;  %v5446_v52 = vld [vmem:[#allocation5 + $0x380] ss:$16 sps:$4 sm:$0xff]   ;;  %v6407_v24 = vpack.c.bf16 %v413_v16, %v403_v15  ;;  %v6409_v25 = vpack.c.bf16 %v415_v20, %v405_v19  ;;  %v465_v19 = vld [vmem:[%s6367_s29 + $0x298] sm:$0xff] }
  0xaf   : > { %2689 = vmatprep.subr.bf16.mxu1 %v5413_v26  ;;  %v5447_v53 = vld [vmem:[#allocation5 + $0x164] ss:$16 sps:$4 sm:$0xff]   ;;  %v5451_v57 = vld [vmem:[#allocation5 + $0x160] ss:$16 sps:$4 sm:$0xff]   ;;  %v475_v20 = vld [vmem:[%s6367_s29 + $0x2e8] sm:$0xff] }
  0xb0   : > { %v5449_v56 = vld [vmem:[#allocation5 + $0x364] ss:$16 sps:$4 sm:$0xff]   ;;  %v5452_v58 = vld [vmem:[#allocation5 + $0x360] ss:$16 sps:$4 sm:$0xff]  }
  0xb1   : > { %2577 = vmatpush1.bf16.msra.mxu0 %v5415_v27  ;;  %v5453_v59 = vld [vmem:[#allocation5 + $0x144] ss:$16 sps:$4 sm:$0xff]   ;;  %v5457_v61 = vld [vmem:[#allocation5 + $0x140] ss:$16 sps:$4 sm:$0xff]  }
  0xb2   : > { %2690 = vmatpush1.bf16.msra.mxu1 %v5416_v28  ;;  %2578 = vmatprep.subr.bf16.mxu0 %v5417_v29  ;;  %v5455_v60 = vld [vmem:[#allocation5 + $0x344] ss:$16 sps:$4 sm:$0xff]   ;;  %v5458_v62 = vld [vmem:[#allocation5 + $0x340] ss:$16 sps:$4 sm:$0xff]  }
  0xb3   : > { %2691 = vmatprep.subr.bf16.mxu1 %v5419_v30  ;;  %v5459_v63 = vld [vmem:[#allocation5 + $0x124] ss:$16 sps:$4 sm:$0xff]   ;;  %v5463_v1 = vld [vmem:[#allocation5 + $0x120] ss:$16 sps:$4 sm:$0xff]  }
  0xb4   : > { %v5461_v0 = vld [vmem:[#allocation5 + $0x324] ss:$16 sps:$4 sm:$0xff]   ;;  %v5464_v2 = vld [vmem:[#allocation5 + $0x320] ss:$16 sps:$4 sm:$0xff]  }
  0xb5   : > { %2579 = vmatpush1.bf16.msra.mxu0 %v5421_v31  ;;  %v5465_v3 = vld [vmem:[#allocation5 + $0x104] ss:$16 sps:$4 sm:$0xff]   ;;  %v5469_v5 = vld [vmem:[#allocation5 + $0x100] ss:$16 sps:$4 sm:$0xff]  }
  0xb6   : > { %2692 = vmatpush1.bf16.msra.mxu1 %v5422_v32  ;;  %2580 = vmatprep.subr.bf16.mxu0 %v5423_v33  ;;  %v5467_v4 = vld [vmem:[#allocation5 + $0x304] ss:$16 sps:$4 sm:$0xff]   ;;  %v5470_v6 = vld [vmem:[#allocation5 + $0x300] ss:$16 sps:$4 sm:$0xff]  }
  0xb7   : > { %2693 = vmatprep.subr.bf16.mxu1 %v5425_v34  ;;  %v382_v7 = vld [vmem:[%s6367_s29] sm:$0xff]  ;;  %v392_v8 = vld [vmem:[%s6367_s29 + $0x50] sm:$0xff] }
  0xb8   : > { %v384_v9 = vld [vmem:[%s6367_s29 + $0x10] sm:$0xff]  ;;  %v394_v10 = vld [vmem:[%s6367_s29 + $0x60] sm:$0xff]  ;;  %v6401_v17 = vpack.c.bf16 %v392_v8, %v382_v7 }
  0xb9   : > { %2581 = vmatpush2.bf16.msra.mxu0 %v5427_v35  ;;  %v5473_v11 = vld [vmem:[#allocation5 + $0x4e4] ss:$16 sps:$4 sm:$0xff]   ;;  %v5471_v13 = vld [vmem:[#allocation5 + $0x4e0] ss:$16 sps:$4 sm:$0xff]   ;;  %v6403_v18 = vpack.c.bf16 %v394_v10, %v384_v9  ;;  %v423_v35 = vld [vmem:[%s6367_s29 + $0x148] sm:$0xff] }
  0xba   : > { %2694 = vmatpush2.bf16.msra.mxu1 %v5428_v36  ;;  %2582 = vmatprep.subr.bf16.mxu0 %v5429_v37  ;;  %v5476_v12 = vld [vmem:[#allocation5 + $0x6e4] ss:$16 sps:$4 sm:$0xff]   ;;  %v5474_v14 = vld [vmem:[#allocation5 + $0x6e0] ss:$16 sps:$4 sm:$0xff]   ;;  %v433_v36 = vld [vmem:[%s6367_s29 + $0x198] sm:$0xff] }
  0xbb   : > { %2695 = vmatprep.subr.bf16.mxu1 %v5431_v38  ;;  %v5479_v21 = vld [vmem:[#allocation5 + $0x4c4] ss:$16 sps:$4 sm:$0xff]   ;;  %v5477_v23 = vld [vmem:[#allocation5 + $0x4c0] ss:$16 sps:$4 sm:$0xff]  }
  0xbc   : > { %v5482_v22 = vld [vmem:[#allocation5 + $0x6c4] ss:$16 sps:$4 sm:$0xff]   ;;  %v5480_v26 = vld [vmem:[#allocation5 + $0x6c0] ss:$16 sps:$4 sm:$0xff]  }
  0xbd   : > { %2583 = vmatpush2.bf16.msra.mxu0 %v5433_v39  ;;  %v402_v27 = vld [vmem:[%s6367_s29 + $0xa0] sm:$0xff]  ;;  %v412_v28 = vld [vmem:[%s6367_s29 + $0xf0] sm:$0xff]  ;;  %v425_v39 = vld [vmem:[%s6367_s29 + $0x158] sm:$0xff] }
  0xbe   : > { %2696 = vmatpush2.bf16.msra.mxu1 %v5434_v40  ;;  %2584 = vmatprep.subr.bf16.mxu0 %v5435_v41  ;;  %v404_v29 = vld [vmem:[%s6367_s29 + $0xb0] sm:$0xff]  ;;  %v414_v30 = vld [vmem:[%s6367_s29 + $0x100] sm:$0xff]  ;;  %v6421_v37 = vpack.c.bf16 %v412_v28, %v402_v27  ;;  %v435_v40 = vld [vmem:[%s6367_s29 + $0x1a8] sm:$0xff]  ;;  %v6469_v27 = vpack.c.bf16 %v475_v20, %v465_v19 }
  0xbf   : > { %2697 = vmatprep.subr.bf16.mxu1 %v5437_v42  ;;  %v5485_v31 = vld [vmem:[#allocation5 + $0x4a4] ss:$16 sps:$4 sm:$0xff]   ;;  %v5483_v33 = vld [vmem:[#allocation5 + $0x4a0] ss:$16 sps:$4 sm:$0xff]   ;;  %v6423_v38 = vpack.c.bf16 %v414_v30, %v404_v29 }
  0xc0   : > { %v5488_v32 = vld [vmem:[#allocation5 + $0x6a4] ss:$16 sps:$4 sm:$0xff]   ;;  %v5486_v34 = vld [vmem:[#allocation5 + $0x6a0] ss:$16 sps:$4 sm:$0xff]  }
  0xc1   : > { %2585 = vmatpush2.bf16.msra.mxu0 %v5439_v43  ;;  %v5491_v41 = vld [vmem:[#allocation5 + $0x484] ss:$16 sps:$4 sm:$0xff]   ;;  %v5489_v43 = vld [vmem:[#allocation5 + $0x480] ss:$16 sps:$4 sm:$0xff]  }
  0xc2   : > { %2698 = vmatpush2.bf16.msra.mxu1 %v5440_v44  ;;  %2586 = vmatprep.subr.bf16.mxu0 %v5441_v45  ;;  %v5494_v42 = vld [vmem:[#allocation5 + $0x684] ss:$16 sps:$4 sm:$0xff]   ;;  %v6427_v44 = vpack.c.bf16 %v433_v36, %v423_v35  ;;  %v6429_v45 = vpack.c.bf16 %v435_v40, %v425_v39  ;;  %v5516_v28 = vld [vmem:[#allocation5 + $0x600] ss:$16 sps:$4 sm:$0xff]   ;;  %v483_v39 = vld [vmem:[%s6367_s29 + $0x328] sm:$0xff] }
  0xc3   : > { %2699 = vmatprep.subr.bf16.mxu1 %v5443_v46  ;;  %v5492_v46 = vld [vmem:[#allocation5 + $0x680] ss:$16 sps:$4 sm:$0xff]   ;;  %v5509_v9 = vld [vmem:[#allocation5 + $0x424] ss:$16 sps:$4 sm:$0xff]   ;;  %v493_v40 = vld [vmem:[%s6367_s29 + $0x378] sm:$0xff] }
  0xc4   : > { %v422_v47 = vld [vmem:[%s6367_s29 + $0x140] sm:$0xff]  ;;  %v432_v48 = vld [vmem:[%s6367_s29 + $0x190] sm:$0xff] }
  0xc5   : > { %2587 = vmatpush2.bf16.msra.mxu0 %v5445_v51  ;;  %v424_v49 = vld [vmem:[%s6367_s29 + $0x150] sm:$0xff]  ;;  %v434_v50 = vld [vmem:[%s6367_s29 + $0x1a0] sm:$0xff] }
  0xc6   : > { %2700 = vmatpush2.bf16.msra.mxu1 %v5446_v52  ;;  %2588 = vmatprep.subr.bf16.mxu0 %v5447_v53  ;;  %v5497_v51 = vld [vmem:[#allocation5 + $0x464] ss:$16 sps:$4 sm:$0xff]   ;;  %v5495_v53 = vld [vmem:[#allocation5 + $0x460] ss:$16 sps:$4 sm:$0xff]  }
  0xc7   : > { %2701 = vmatprep.subr.bf16.mxu1 %v5449_v56  ;;  %v5500_v52 = vld [vmem:[#allocation5 + $0x664] ss:$16 sps:$4 sm:$0xff]   ;;  %v5498_v56 = vld [vmem:[#allocation5 + $0x660] ss:$16 sps:$4 sm:$0xff]  }
  0xc8   : > { %v444_v7 = vld [vmem:[%s6367_s29 + $0x1f0] sm:$0xff]  ;;  %v454_v8 = vld [vmem:[%s6367_s29 + $0x240] sm:$0xff] }
  0xc9   : > { %2589 = vmatpush2.bf16.msra.mxu0 %v5451_v57  ;;  %v443_v57 = vld [vmem:[%s6367_s29 + $0x1e8] sm:$0xff]  ;;  %v5512_v10 = vld [vmem:[#allocation5 + $0x624] ss:$16 sps:$4 sm:$0xff]   ;;  %v6463_v16 = vpack.c.bf16 %v454_v8, %v444_v7  ;;  %v5519_v35 = vld [vmem:[#allocation5 + $0x5e0] ss:$16 sps:$4 sm:$0xff]  }
  0xca   : > { %2702 = vmatpush2.bf16.msra.mxu1 %v5452_v58  ;;  %2590 = vmatprep.subr.bf16.mxu0 %v5453_v59  ;;  %v453_v58 = vld [vmem:[%s6367_s29 + $0x238] sm:$0xff]  ;;  %v6441_v59 = vpack.c.bf16 %v432_v48, %v422_v47  ;;  %v462_v29 = vld [vmem:[%s6367_s29 + $0x280] sm:$0xff]  ;;  %v472_v30 = vld [vmem:[%s6367_s29 + $0x2d0] sm:$0xff] }
  0xcb   : > { %2703 = vmatprep.subr.bf16.mxu1 %v5455_v60  ;;  %v6443_v60 = vpack.c.bf16 %v434_v50, %v424_v49  ;;  %v5522_v36 = vld [vmem:[#allocation5 + $0x7e0] ss:$16 sps:$4 sm:$0xff]   ;;  %v5527_v47 = vld [vmem:[#allocation5 + $0x5c4] ss:$16 sps:$4 sm:$0xff]   ;;  %v6487_v50 = vpack.c.bf16 %v493_v40, %v483_v39  ;;  %v505_v7 = vld [vmem:[%s6367_s29 + $0x3d8] sm:$0xff] }
  0xcc   : > { %v5530_v48 = vld [vmem:[#allocation5 + $0x7c4] ss:$16 sps:$4 sm:$0xff]   ;;  %v5525_v49 = vld [vmem:[#allocation5 + $0x5c0] ss:$16 sps:$4 sm:$0xff]   ;;  %v515_v8 = vld [vmem:[%s6367_s29 + $0x428] sm:$0xff] }
  0xcd   : > { %2591 = vmatpush2.bf16.msra.mxu0 %v5457_v61  ;;  %v445_v61 = vld [vmem:[%s6367_s29 + $0x1f8] sm:$0xff]  ;;  %v502_v19 = vld [vmem:[%s6367_s29 + $0x3c0] sm:$0xff]  ;;  %v512_v20 = vld [vmem:[%s6367_s29 + $0x410] sm:$0xff] }
  0xce   : > { %2704 = vmatpush2.bf16.msra.mxu1 %v5458_v62  ;;  %2592 = vmatprep.subr.bf16.mxu0 %v5459_v63  ;;  %v455_v62 = vld [vmem:[%s6367_s29 + $0x248] sm:$0xff]  ;;  %v5503_v63 = vld [vmem:[#allocation5 + $0x444] ss:$16 sps:$4 sm:$0xff]  }
  0xcf   : > { %2705 = vmatprep.subr.bf16.mxu1 %v5461_v0  ;;  %v5506_v0 = vld [vmem:[#allocation5 + $0x644] ss:$16 sps:$4 sm:$0xff]  }
  0xd0   : > { %v5551_v39 = vld [vmem:[#allocation5 + $0x544] ss:$16 sps:$4 sm:$0xff]  }
  0xd1   : > { %2593 = vmatpush2.bf16.msra.mxu0 %v5463_v1  ;;  %v5501_v1 = vld [vmem:[#allocation5 + $0x440] ss:$16 sps:$4 sm:$0xff]   ;;  %v5554_v40 = vld [vmem:[#allocation5 + $0x744] ss:$16 sps:$4 sm:$0xff]  }
  0xd2   : > { %2706 = vmatpush2.bf16.msra.mxu1 %v5464_v2  ;;  %2594 = vmatprep.subr.bf16.mxu0 %v5465_v3  ;;  %v6447_v2 = vpack.c.bf16 %v453_v58, %v443_v57  ;;  %v6449_v3 = vpack.c.bf16 %v455_v62, %v445_v61  ;;  %v484_v57 = vld [vmem:[%s6367_s29 + $0x330] sm:$0xff]  ;;  %v494_v58 = vld [vmem:[%s6367_s29 + $0x380] sm:$0xff] }
  0xd3   : > { %2707 = vmatprep.subr.bf16.mxu1 %v5467_v4  ;;  %v5504_v4 = vld [vmem:[#allocation5 + $0x640] ss:$16 sps:$4 sm:$0xff]   ;;  %v5533_v61 = vld [vmem:[#allocation5 + $0x5a4] ss:$16 sps:$4 sm:$0xff]  }
  0xd4   : > { %v5536_v62 = vld [vmem:[#allocation5 + $0x7a4] ss:$16 sps:$4 sm:$0xff]  }
  0xd5   : > { %2595 = vmatpush2.bf16.msra.mxu0 %v5469_v5  ;;  %v442_v5 = vld [vmem:[%s6367_s29 + $0x1e0] sm:$0xff] }
  0xd6   : > { %2708 = vmatpush2.bf16.msra.mxu1 %v5470_v6  ;;  %2790 = vmatprep.subr.bf16.mxu0 %v5473_v11  ;;  %v452_v6 = vld [vmem:[%s6367_s29 + $0x230] sm:$0xff] }
  0xd7   : > { %2903 = vmatprep.subr.bf16.mxu1 %v5476_v12  ;;  %v5507_v11 = vld [vmem:[#allocation5 + $0x420] ss:$16 sps:$4 sm:$0xff]   ;;  %v6461_v15 = vpack.c.bf16 %v452_v6, %v442_v5  ;;  %v6503_v6 = vpack.c.bf16 %v494_v58, %v484_v57  ;;  %v5557_v57 = vld [vmem:[#allocation5 + $0x524] ss:$16 sps:$4 sm:$0xff]  }
  0xd8   : > { %2597 = vmatmul.mubr.bf16.vlgmr.msra.gmra.mxu0 %v6401_v17  ;;  %v5510_v12 = vld [vmem:[#allocation5 + $0x620] ss:$16 sps:$4 sm:$0xff]   ;;  %v5560_v58 = vld [vmem:[#allocation5 + $0x724] ss:$16 sps:$4 sm:$0xff]  }
  0xd9   : > { %2710 = vmatmul.mubr.bf16.vlgmr.msra.gmra.mxu1 %v6403_v18  ;;  %2791 = vmatpush1.bf16.msra.mxu0 %v5471_v13  ;;  %v463_v13 = vld [vmem:[%s6367_s29 + $0x288] sm:$0xff] }
  0xda   : > { %2904 = vmatpush1.bf16.msra.mxu1 %v5474_v14  ;;  %2792 = vmatprep.subr.bf16.mxu0 %v5479_v21  ;;  %v473_v14 = vld [vmem:[%s6367_s29 + $0x2d8] sm:$0xff]  ;;  %v5515_v21 = vld [vmem:[#allocation5 + $0x404] ss:$16 sps:$4 sm:$0xff]  }
  0xdb   : > { %2905 = vmatprep.subr.bf16.mxu1 %v5482_v22  ;;  %2606 = vmatprep.mubr.bf16.mxu0 %v6407_v24  ;;  %v5518_v22 = vld [vmem:[#allocation5 + $0x604] ss:$16 sps:$4 sm:$0xff]  }
  0xdc   : > { %2719 = vmatprep.mubr.bf16.mxu1 %v6409_v25 }
  0xdd   : > { %2793 = vmatpush1.bf16.msra.mxu0 %v5477_v23  ;;  %v5513_v23 = vld [vmem:[#allocation5 + $0x400] ss:$16 sps:$4 sm:$0xff]  }
  0xde   : > { %2906 = vmatpush1.bf16.msra.mxu1 %v5480_v26  ;;  %2794 = vmatprep.subr.bf16.mxu0 %v5485_v31  ;;  %v6467_v26 = vpack.c.bf16 %v473_v14, %v463_v13  ;;  %v464_v31 = vld [vmem:[%s6367_s29 + $0x290] sm:$0xff]  ;;  %v6509_v13 = vpack.c.bf16 %v515_v8, %v505_v7  ;;  %v389_v7 = vld [vmem:[%s6367_s29 + $0x38] sm:$0xff]  ;;  %v399_v8 = vld [vmem:[%s6367_s29 + $0x88] sm:$0xff] }
  0xdf   : > { %2907 = vmatprep.subr.bf16.mxu1 %v5488_v32  ;;  %v474_v32 = vld [vmem:[%s6367_s29 + $0x2e0] sm:$0xff] }
  0xe0   : > { %2607 = vmatmul.mubr.bf16.gmra.mxu0 %v6421_v37  ;;  %v5540_v14 = vld [vmem:[#allocation5 + $0x780] ss:$16 sps:$4 sm:$0xff]  }
  0xe1   : > { %2720 = vmatmul.mubr.bf16.gmra.mxu1 %v6423_v38  ;;  %2795 = vmatpush1.bf16.msra.mxu0 %v5483_v33  ;;  %v5521_v33 = vld [vmem:[#allocation5 + $0x5e4] ss:$16 sps:$4 sm:$0xff]  }
  0xe2   : > { %2908 = vmatpush1.bf16.msra.mxu1 %v5486_v34  ;;  %2796 = vmatprep.subr.bf16.mxu0 %v5491_v41  ;;  %v5524_v34 = vld [vmem:[#allocation5 + $0x7e4] ss:$16 sps:$4 sm:$0xff]   ;;  %v6481_v41 = vpack.c.bf16 %v472_v30, %v462_v29  ;;  %v5543_v29 = vld [vmem:[#allocation5 + $0x560] ss:$16 sps:$4 sm:$0xff]  }
  0xe3   : > { %2909 = vmatprep.subr.bf16.mxu1 %v5494_v42  ;;  %2616 = vmatprep.mubr.bf16.mxu0 %v6427_v44  ;;  %v6483_v42 = vpack.c.bf16 %v474_v32, %v464_v31  ;;  %v5546_v30 = vld [vmem:[#allocation5 + $0x760] ss:$16 sps:$4 sm:$0xff]   ;;  %v523_v31 = vld [vmem:[%s6367_s29 + $0x468] sm:$0xff]  ;;  %v533_v32 = vld [vmem:[%s6367_s29 + $0x4b8] sm:$0xff] }
  0xe4   : > { %2729 = vmatprep.mubr.bf16.mxu1 %v6429_v45 }
  0xe5   : > { %2797 = vmatpush1.bf16.msra.mxu0 %v5489_v43  ;;  %v485_v43 = vld [vmem:[%s6367_s29 + $0x338] sm:$0xff] }
  0xe6   : > { %2910 = vmatpush1.bf16.msra.mxu1 %v5492_v46  ;;  %2798 = vmatprep.subr.bf16.mxu0 %v5497_v51  ;;  %v495_v46 = vld [vmem:[%s6367_s29 + $0x388] sm:$0xff] }
  0xe7   : > { %2911 = vmatprep.subr.bf16.mxu1 %v5500_v52  ;;  %v6489_v51 = vpack.c.bf16 %v495_v46, %v485_v43  ;;  %v5528_v52 = vld [vmem:[#allocation5 + $0x7c0] ss:$16 sps:$4 sm:$0xff]   ;;  %v6527_v46 = vpack.c.bf16 %v533_v32, %v523_v31  ;;  %v5570_v32 = vld [vmem:[#allocation5 + $0xe8] ss:$16 sps:$4 sm:$0xff]  }
  0xe8   : > { %2617 = vmatmul.mubr.bf16.gmra.mxu0 %v6441_v59  ;;  %v5549_v43 = vld [vmem:[#allocation5 + $0x540] ss:$16 sps:$4 sm:$0xff]  }
  0xe9   : > { %2730 = vmatmul.mubr.bf16.gmra.mxu1 %v6443_v60  ;;  %2799 = vmatpush1.bf16.msra.mxu0 %v5495_v53  ;;  %v482_v53 = vld [vmem:[%s6367_s29 + $0x320] sm:$0xff] }
  0xea   : > { %2912 = vmatpush1.bf16.msra.mxu1 %v5498_v56  ;;  %2800 = vmatprep.subr.bf16.mxu0 %v5503_v63  ;;  %v492_v56 = vld [vmem:[%s6367_s29 + $0x370] sm:$0xff] }
  0xeb   : > { %2913 = vmatprep.subr.bf16.mxu1 %v5506_v0  ;;  %2626 = vmatprep.mubr.bf16.mxu0 %v6447_v2  ;;  %v5531_v63 = vld [vmem:[#allocation5 + $0x5a0] ss:$16 sps:$4 sm:$0xff]   ;;  %v6501_v5 = vpack.c.bf16 %v492_v56, %v482_v53 }
  0xec   : > { %2739 = vmatprep.mubr.bf16.mxu1 %v6449_v3  ;;  %v5534_v0 = vld [vmem:[#allocation5 + $0x7a0] ss:$16 sps:$4 sm:$0xff]  }
  0xed   : > { %2801 = vmatpush1.bf16.msra.mxu0 %v5501_v1  ;;  %v503_v1 = vld [vmem:[%s6367_s29 + $0x3c8] sm:$0xff]  ;;  %v524_v53 = vld [vmem:[%s6367_s29 + $0x470] sm:$0xff]  ;;  %v534_v56 = vld [vmem:[%s6367_s29 + $0x4c0] sm:$0xff] }
  0xee   : > { %2914 = vmatpush1.bf16.msra.mxu1 %v5504_v4  ;;  %2802 = vmatprep.subr.bf16.mxu0 %v5509_v9  ;;  %v513_v4 = vld [vmem:[%s6367_s29 + $0x418] sm:$0xff]  ;;  %v5539_v9 = vld [vmem:[#allocation5 + $0x584] ss:$16 sps:$4 sm:$0xff]   ;;  %v5567_v31 = vld [vmem:[#allocation5 + $0x8e0] ss:$16 sps:$4 sm:$0xff]  }
  0xef   : > { %2915 = vmatprep.subr.bf16.mxu1 %v5512_v10  ;;  %v5542_v10 = vld [vmem:[#allocation5 + $0x784] ss:$16 sps:$4 sm:$0xff]  }
  0xf0   : > { %2627 = vmatmul.mubr.bf16.gmra.mxu0 %v6461_v15 }
  0xf1   : > { %2740 = vmatmul.mubr.bf16.gmra.mxu1 %v6463_v16  ;;  %2803 = vmatpush1.bf16.msra.mxu0 %v5507_v11  ;;  %v5537_v11 = vld [vmem:[#allocation5 + $0x580] ss:$16 sps:$4 sm:$0xff]  }
  0xf2   : > { %2916 = vmatpush1.bf16.msra.mxu1 %v5510_v12  ;;  %2804 = vmatprep.subr.bf16.mxu0 %v5515_v21  ;;  %v6507_v12 = vpack.c.bf16 %v513_v4, %v503_v1  ;;  %v504_v21 = vld [vmem:[%s6367_s29 + $0x3d0] sm:$0xff]  ;;  %v6543_v4 = vpack.c.bf16 %v534_v56, %v524_v53 }
  0xf3   : > { %2917 = vmatprep.subr.bf16.mxu1 %v5518_v22  ;;  %2636 = vmatprep.mubr.bf16.mxu0 %v6467_v26  ;;  %v514_v22 = vld [vmem:[%s6367_s29 + $0x420] sm:$0xff] }
  0xf4   : > { %2749 = vmatprep.mubr.bf16.mxu1 %v6469_v27  ;;  %7665 = vst [vmem:[#allocation19_spill] sm:$0xff] %v6543_v4  ;;  %v5573_v53 = vld [vmem:[#allocation5 + $0x8c0] ss:$16 sps:$4 sm:$0xff]  }
  0xf5   : > { %2805 = vmatpush1.bf16.msra.mxu0 %v5513_v23  ;;  %v5545_v23 = vld [vmem:[#allocation5 + $0x564] ss:$16 sps:$4 sm:$0xff]  }
  0xf6   : > { %2918 = vmatpush1.bf16.msra.mxu1 %v5516_v28  ;;  %2806 = vmatprep.subr.bf16.mxu0 %v5521_v33  ;;  %v5548_v28 = vld [vmem:[#allocation5 + $0x764] ss:$16 sps:$4 sm:$0xff]   ;;  %v6521_v33 = vpack.c.bf16 %v512_v20, %v502_v19  ;;  %v6549_v19 = vpack.c.bf16 %v399_v8, %v389_v7  ;;  %v5564_v20 = vld [vmem:[#allocation5 + $0x700] ss:$16 sps:$4 sm:$0xff]   ;;  %v5584_v8 = vld [vmem:[#allocation5 + $0xac] ss:$16 sps:$4 sm:$0xff]  }
  0xf7   : > { %2919 = vmatprep.subr.bf16.mxu1 %v5524_v34  ;;  %v6523_v34 = vpack.c.bf16 %v514_v22, %v504_v21  ;;  %v386_v21 = vld [vmem:[%s6367_s29 + $0x20] sm:$0xff]  ;;  %v396_v22 = vld [vmem:[%s6367_s29 + $0x70] sm:$0xff] }
  0xf8   : > { %2637 = vmatmul.mubr.bf16.gmra.mxu0 %v6481_v41  ;;  %7666 = vst [vmem:[#allocation20_spill] sm:$0xff] %v6549_v19  ;;  %v5581_v7 = vld [vmem:[#allocation5 + $0x8a4] ss:$16 sps:$4 sm:$0xff]  }
  0xf9   : > { %2750 = vmatmul.mubr.bf16.gmra.mxu1 %v6483_v42  ;;  %2807 = vmatpush2.bf16.msra.mxu0 %v5519_v35  ;;  %v525_v35 = vld [vmem:[%s6367_s29 + $0x478] sm:$0xff] }
  0xfa   : > { %2920 = vmatpush2.bf16.msra.mxu1 %v5522_v36  ;;  %2808 = vmatprep.subr.bf16.mxu0 %v5527_v47  ;;  %v535_v36 = vld [vmem:[%s6367_s29 + $0x4c8] sm:$0xff] }
  0xfb   : > { %2921 = vmatprep.subr.bf16.mxu1 %v5530_v48  ;;  %2646 = vmatprep.mubr.bf16.mxu0 %v6487_v50  ;;  %v6529_v47 = vpack.c.bf16 %v535_v36, %v525_v35  ;;  %v5552_v48 = vld [vmem:[#allocation5 + $0x740] ss:$16 sps:$4 sm:$0xff]   ;;  %v407_v35 = vld [vmem:[%s6367_s29 + $0xc8] sm:$0xff]  ;;  %v417_v36 = vld [vmem:[%s6367_s29 + $0x118] sm:$0xff] }
  0xfc   : > { %2759 = vmatprep.mubr.bf16.mxu1 %v6489_v51  ;;  %v6567_v56 = vpack.c.bf16 %v417_v36, %v407_v35  ;;  %v5588_v36 = vld [vmem:[#allocation5 + $0x88] ss:$16 sps:$4 sm:$0xff]  }
  0xfd   : > { %2809 = vmatpush2.bf16.msra.mxu0 %v5525_v49  ;;  %7664 = vst [vmem:[#allocation18_spill] sm:$0xff] %v6529_v47  ;;  %v522_v49 = vld [vmem:[%s6367_s29 + $0x460] sm:$0xff] }
  0xfe   : > { %2922 = vmatpush2.bf16.msra.mxu1 %v5528_v52  ;;  %2810 = vmatprep.subr.bf16.mxu0 %v5533_v61  ;;  %v532_v52 = vld [vmem:[%s6367_s29 + $0x4b0] sm:$0xff] }
  0xff   : > { %2923 = vmatprep.subr.bf16.mxu1 %v5536_v62  ;;  %v5555_v61 = vld [vmem:[#allocation5 + $0x520] ss:$16 sps:$4 sm:$0xff]   ;;  %v6541_v1 = vpack.c.bf16 %v532_v52, %v522_v49  ;;  %v5575_v49 = vld [vmem:[#allocation5 + $0x8c4] ss:$16 sps:$4 sm:$0xff]   ;;  %v5578_v52 = vld [vmem:[#allocation5 + $0xcc] ss:$16 sps:$4 sm:$0xff]  }
 0x100   : > { %2647 = vmatmul.mubr.bf16.gmra.mxu0 %v6501_v5  ;;  %v5558_v62 = vld [vmem:[#allocation5 + $0x720] ss:$16 sps:$4 sm:$0xff]  }
 0x101   : > { %2760 = vmatmul.mubr.bf16.gmra.mxu1 %v6503_v6  ;;  %2811 = vmatpush2.bf16.msra.mxu0 %v5531_v63  ;;  %v387_v63 = vld [vmem:[%s6367_s29 + $0x28] sm:$0xff] }
 0x102   : > { %2924 = vmatpush2.bf16.msra.mxu1 %v5534_v0  ;;  %2812 = vmatprep.subr.bf16.mxu0 %v5539_v9  ;;  %v397_v0 = vld [vmem:[%s6367_s29 + $0x78] sm:$0xff]  ;;  %v5563_v9 = vld [vmem:[#allocation5 + $0x504] ss:$16 sps:$4 sm:$0xff]  }
 0x103   : > { %2925 = vmatprep.subr.bf16.mxu1 %v5542_v10  ;;  %2656 = vmatprep.mubr.bf16.mxu0 %v6507_v12  ;;  %v5566_v10 = vld [vmem:[#allocation5 + $0x704] ss:$16 sps:$4 sm:$0xff]  }
 0x104   : > { %2769 = vmatprep.mubr.bf16.mxu1 %v6509_v13 }
 0x105   : > { %2813 = vmatpush2.bf16.msra.mxu0 %v5537_v11  ;;  %v5561_v11 = vld [vmem:[#allocation5 + $0x500] ss:$16 sps:$4 sm:$0xff]  }
 0x106   : > { %2926 = vmatpush2.bf16.msra.mxu1 %v5540_v14  ;;  %2814 = vmatprep.subr.bf16.mxu0 %v5545_v23  ;;  %v6547_v14 = vpack.c.bf16 %v397_v0, %v387_v63  ;;  %v388_v23 = vld [vmem:[%s6367_s29 + $0x30] sm:$0xff]  ;;  %v418_v0 = vld [vmem:[%s6367_s29 + $0x120] sm:$0xff] }
 0x107   : > { %2927 = vmatprep.subr.bf16.mxu1 %v5548_v28  ;;  %v398_v28 = vld [vmem:[%s6367_s29 + $0x80] sm:$0xff]  ;;  %v408_v63 = vld [vmem:[%s6367_s29 + $0xd0] sm:$0xff] }
 0x108   : > { %2657 = vmatmul.mubr.bf16.gmra.mxu0 %v6521_v33 }
 0x109   : > { %2770 = vmatmul.mubr.bf16.gmra.mxu1 %v6523_v34  ;;  %2815 = vmatpush2.bf16.msra.mxu0 %v5543_v29  ;;  %v5569_v29 = vld [vmem:[#allocation5 + $0x8e4] ss:$16 sps:$4 sm:$0xff]  }
 0x10a   : > { %2928 = vmatpush2.bf16.msra.mxu1 %v5546_v30  ;;  %2816 = vmatprep.subr.bf16.mxu0 %v5551_v39  ;;  %v5572_v30 = vld [vmem:[#allocation5 + $0xec] ss:$16 sps:$4 sm:$0xff]   ;;  %v6561_v39 = vpack.c.bf16 %v396_v22, %v386_v21  ;;  %v6583_v22 = vpack.c.bf16 %v418_v0, %v408_v63 }
 0x10b   : > { %2929 = vmatprep.subr.bf16.mxu1 %v5554_v40  ;;  %2666 = vmatprep.mubr.bf16.mxu0 %v6527_v46  ;;  %v6563_v40 = vpack.c.bf16 %v398_v28, %v388_v23  ;;  %v429_v23 = vld [vmem:[%s6367_s29 + $0x178] sm:$0xff]  ;;  %v439_v28 = vld [vmem:[%s6367_s29 + $0x1c8] sm:$0xff] }
 0x10c   : > { %2779 = vmatprep.mubr.bf16.mxu1 %v6529_v47  ;;  %7669 = vst [vmem:[#allocation23_spill] sm:$0xff] %v6583_v22  ;;  %v6589_v35 = vpack.c.bf16 %v439_v28, %v429_v23  ;;  %v447_v63 = vld [vmem:[%s6367_s29 + $0x208] sm:$0xff]  ;;  %v457_v0 = vld [vmem:[%s6367_s29 + $0x258] sm:$0xff]  ;;  %v5597_v23 = vld [vmem:[#allocation5 + $0x840] ss:$16 sps:$4 sm:$0xff]  }
 0x10d   : > { %2817 = vmatpush2.bf16.msra.mxu0 %v5549_v43  ;;  %7667 = vst [vmem:[#allocation21_spill] sm:$0xff] %v6563_v40  ;;  %v409_v43 = vld [vmem:[%s6367_s29 + $0xd8] sm:$0xff]  ;;  %v6607_v28 = vpack.c.bf16 %v457_v0, %v447_v63  ;;  %v467_v63 = vld [vmem:[%s6367_s29 + $0x2a8] sm:$0xff] }
 0x10e   : > { %2930 = vmatpush2.bf16.msra.mxu1 %v5552_v48  ;;  %2818 = vmatprep.subr.bf16.mxu0 %v5557_v57  ;;  %v419_v48 = vld [vmem:[%s6367_s29 + $0x128] sm:$0xff]  ;;  %7670 = vst [vmem:[#allocation24_spill] sm:$0xff] %v6589_v35  ;;  %v477_v0 = vld [vmem:[%s6367_s29 + $0x2f8] sm:$0xff] }
 0x10f   : > { %2931 = vmatprep.subr.bf16.mxu1 %v5560_v58  ;;  %v6569_v57 = vpack.c.bf16 %v419_v48, %v409_v43  ;;  %v5576_v58 = vld [vmem:[#allocation5 + $0xc8] ss:$16 sps:$4 sm:$0xff]   ;;  %v426_v43 = vld [vmem:[%s6367_s29 + $0x160] sm:$0xff]  ;;  %v436_v48 = vld [vmem:[%s6367_s29 + $0x1b0] sm:$0xff] }
 0x110   : > { %2667 = vmatmul.mubr.bf16.gmra.mxu0 %v6541_v1 }
 0x111   : > { %2780 = vmatmul.mubr.bf16.gmra.mxu1 %v6543_v4  ;;  %2819 = vmatpush2.bf16.msra.mxu0 %v5555_v61  ;;  %7668 = vst [vmem:[#allocation22_spill] sm:$0xff] %v6569_v57  ;;  %v406_v61 = vld [vmem:[%s6367_s29 + $0xc0] sm:$0xff] }
 0x112   : > { %2932 = vmatpush2.bf16.msra.mxu1 %v5558_v62  ;;  %2820 = vmatprep.subr.bf16.mxu0 %v5563_v9  ;;  %v416_v62 = vld [vmem:[%s6367_s29 + $0x110] sm:$0xff] }
 0x113   : > { %2933 = vmatprep.subr.bf16.mxu1 %v5566_v10  ;;  %2822 = vmatprep.mubr.bf16.mxu0 %v6547_v14  ;;  %v5579_v9 = vld [vmem:[#allocation5 + $0x8a0] ss:$16 sps:$4 sm:$0xff]   ;;  %v5582_v10 = vld [vmem:[#allocation5 + $0xa8] ss:$16 sps:$4 sm:$0xff]   ;;  %v6581_v21 = vpack.c.bf16 %v416_v62, %v406_v61 }
 0x114   : > { %2935 = vmatprep.mubr.bf16.mxu1 %v6549_v19  ;;  %v5591_v61 = vld [vmem:[#allocation5 + $0x860] ss:$16 sps:$4 sm:$0xff]   ;;  %v5594_v62 = vld [vmem:[#allocation5 + $0x68] ss:$16 sps:$4 sm:$0xff]  }
 0x115   : > { %2821 = vmatpush2.bf16.msra.mxu0 %v5561_v11  ;;  %v427_v11 = vld [vmem:[%s6367_s29 + $0x168] sm:$0xff] }
 0x116   : > { %2934 = vmatpush2.bf16.msra.mxu1 %v5564_v20  ;;  %3016 = vmatprep.subr.bf16.mxu0 %v5569_v29  ;;  %v437_v20 = vld [vmem:[%s6367_s29 + $0x1b8] sm:$0xff]  ;;  %v5587_v29 = vld [vmem:[#allocation5 + $0x884] ss:$16 sps:$4 sm:$0xff]  }
 0x117   : > { %3129 = vmatprep.subr.bf16.mxu1 %v5572_v30  ;;  %v5590_v30 = vld [vmem:[#allocation5 + $0x8c] ss:$16 sps:$4 sm:$0xff]  }
 0x118   : > { %2823 = vmatmul.mubr.bf16.vlgmr.msra.gmra.mxu0 %v6561_v39 }
 0x119   : > { %2936 = vmatmul.mubr.bf16.vlgmr.msra.gmra.mxu1 %v6563_v40  ;;  %3017 = vmatpush1.bf16.msra.mxu0 %v5567_v31  ;;  %v5585_v31 = vld [vmem:[#allocation5 + $0x880] ss:$16 sps:$4 sm:$0xff]   ;;  %v5636_v40 = vld [vmem:[#allocation5 + $0x188] ss:$16 sps:$4 sm:$0xff]  }
 0x11a   : > { %3130 = vmatpush1.bf16.msra.mxu1 %v5570_v32  ;;  %3018 = vmatprep.subr.bf16.mxu0 %v5575_v49  ;;  %v6587_v32 = vpack.c.bf16 %v437_v20, %v427_v11  ;;  %v428_v49 = vld [vmem:[%s6367_s29 + $0x170] sm:$0xff]  ;;  %v5602_v20 = vld [vmem:[#allocation5 + $0x4c] ss:$16 sps:$4 sm:$0xff]  }
 0x11b   : > { %3131 = vmatprep.subr.bf16.mxu1 %v5578_v52  ;;  %2832 = vmatprep.mubr.bf16.mxu0 %v6567_v56  ;;  %v438_v52 = vld [vmem:[%s6367_s29 + $0x1c0] sm:$0xff] }
 0x11c   : > { %2945 = vmatprep.mubr.bf16.mxu1 %v6569_v57  ;;  %v5599_v11 = vld [vmem:[#allocation5 + $0x844] ss:$16 sps:$4 sm:$0xff]  }
 0x11d   : > { %3019 = vmatpush1.bf16.msra.mxu0 %v5573_v53  ;;  %v5593_v53 = vld [vmem:[#allocation5 + $0x864] ss:$16 sps:$4 sm:$0xff]  }
 0x11e   : > { %3132 = vmatpush1.bf16.msra.mxu1 %v5576_v58  ;;  %3020 = vmatprep.subr.bf16.mxu0 %v5581_v7  ;;  %v5596_v58 = vld [vmem:[#allocation5 + $0x6c] ss:$16 sps:$4 sm:$0xff]   ;;  %v6601_v7 = vpack.c.bf16 %v436_v48, %v426_v43  ;;  %v456_v43 = vld [vmem:[%s6367_s29 + $0x250] sm:$0xff]  ;;  %v458_v48 = vld [vmem:[%s6367_s29 + $0x260] sm:$0xff] }
 0x11f   : > { %3133 = vmatprep.subr.bf16.mxu1 %v5584_v8  ;;  %v6603_v8 = vpack.c.bf16 %v438_v52, %v428_v49  ;;  %v5605_v49 = vld [vmem:[#allocation5 + $0x824] ss:$16 sps:$4 sm:$0xff]   ;;  %v5608_v52 = vld [vmem:[#allocation5 + $0x2c] ss:$16 sps:$4 sm:$0xff]  }
 0x120   : > { %2833 = vmatmul.mubr.bf16.gmra.mxu0 %v6581_v21 }
 0x121   : > { %2946 = vmatmul.mubr.bf16.gmra.mxu1 %v6583_v22  ;;  %3021 = vmatpush1.bf16.msra.mxu0 %v5579_v9  ;;  %7671 = vst [vmem:[#allocation25_spill] sm:$0xff] %v6603_v8  ;;  %v449_v9 = vld [vmem:[%s6367_s29 + $0x218] sm:$0xff] }
 0x122   : > { %3134 = vmatpush1.bf16.msra.mxu1 %v5582_v10  ;;  %3022 = vmatprep.subr.bf16.mxu0 %v5587_v29  ;;  %v459_v10 = vld [vmem:[%s6367_s29 + $0x268] sm:$0xff] }
 0x123   : > { %3135 = vmatprep.subr.bf16.mxu1 %v5590_v30  ;;  %2842 = vmatprep.mubr.bf16.mxu0 %v6587_v32  ;;  %v6609_v29 = vpack.c.bf16 %v459_v10, %v449_v9  ;;  %v5600_v30 = vld [vmem:[#allocation5 + $0x48] ss:$16 sps:$4 sm:$0xff]  }
 0x124   : > { %2955 = vmatprep.mubr.bf16.mxu1 %v6589_v35  ;;  %v479_v10 = vld [vmem:[%s6367_s29 + $0x308] sm:$0xff] }
 0x125   : > { %3023 = vmatpush1.bf16.msra.mxu0 %v5585_v31  ;;  %7672 = vst [vmem:[#allocation26_spill] sm:$0xff] %v6609_v29  ;;  %v446_v31 = vld [vmem:[%s6367_s29 + $0x200] sm:$0xff] }
 0x126   : > { %3136 = vmatpush1.bf16.msra.mxu1 %v5588_v36  ;;  %3024 = vmatprep.subr.bf16.mxu0 %v5593_v53  ;;  %v448_v36 = vld [vmem:[%s6367_s29 + $0x210] sm:$0xff]  ;;  %v6621_v9 = vpack.c.bf16 %v456_v43, %v446_v31  ;;  %v5612_v31 = vld [vmem:[#allocation5 + $0x8] ss:$16 sps:$4 sm:$0xff]  }
 0x127   : > { %3137 = vmatprep.subr.bf16.mxu1 %v5596_v58  ;;  %v5603_v53 = vld [vmem:[#allocation5 + $0x820] ss:$16 sps:$4 sm:$0xff]   ;;  %v5606_v58 = vld [vmem:[#allocation5 + $0x28] ss:$16 sps:$4 sm:$0xff]  }
 0x128   : > { %2843 = vmatmul.mubr.bf16.gmra.mxu0 %v6601_v7  ;;  %v476_v43 = vld [vmem:[%s6367_s29 + $0x2f0] sm:$0xff] }
 0x129   : > { %2956 = vmatmul.mubr.bf16.gmra.mxu1 %v6603_v8  ;;  %3025 = vmatpush1.bf16.msra.mxu0 %v5591_v61  ;;  %v6623_v61 = vpack.c.bf16 %v458_v48, %v448_v36  ;;  %v6627_v8 = vpack.c.bf16 %v477_v0, %v467_v63  ;;  %v478_v36 = vld [vmem:[%s6367_s29 + $0x300] sm:$0xff]  ;;  %v5618_v63 = vld [vmem:[#allocation5 + $0x1e8] ss:$16 sps:$4 sm:$0xff]  }
 0x12a   : > { %3138 = vmatpush1.bf16.msra.mxu1 %v5594_v62  ;;  %3026 = vmatprep.subr.bf16.mxu0 %v5599_v11  ;;  %v469_v62 = vld [vmem:[%s6367_s29 + $0x2b8] sm:$0xff]  ;;  %v5611_v11 = vld [vmem:[#allocation5 + $0x804] ss:$16 sps:$4 sm:$0xff]   ;;  %v487_v0 = vld [vmem:[%s6367_s29 + $0x348] sm:$0xff] }
 0x12b   : > { %3139 = vmatprep.subr.bf16.mxu1 %v5602_v20  ;;  %2852 = vmatprep.mubr.bf16.mxu0 %v6607_v28  ;;  %7673 = vst [vmem:[#allocation27_spill] sm:$0xff] %v6623_v61  ;;  %v5614_v20 = vld [vmem:[#allocation5 + $0xc] ss:$16 sps:$4 sm:$0xff]   ;;  %v6629_v35 = vpack.c.bf16 %v479_v10, %v469_v62  ;;  %v5617_v48 = vld [vmem:[#allocation5 + $0x9e4] ss:$16 sps:$4 sm:$0xff]  }
 0x12c   : > { %2965 = vmatprep.mubr.bf16.mxu1 %v6609_v29  ;;  %v5609_v29 = vld [vmem:[#allocation5 + $0x800] ss:$16 sps:$4 sm:$0xff]   ;;  %v497_v62 = vld [vmem:[%s6367_s29 + $0x398] sm:$0xff] }
 0x12d   : > { %3027 = vmatpush1.bf16.msra.mxu0 %v5597_v23  ;;  %7674 = vst [vmem:[#allocation28_spill] sm:$0xff] %v6629_v35  ;;  %v466_v23 = vld [vmem:[%s6367_s29 + $0x2a0] sm:$0xff]  ;;  %v6647_v22 = vpack.c.bf16 %v497_v62, %v487_v0  ;;  %v507_v0 = vld [vmem:[%s6367_s29 + $0x3e8] sm:$0xff]  ;;  %v517_v62 = vld [vmem:[%s6367_s29 + $0x438] sm:$0xff] }
 0x12e   : > { %3140 = vmatpush1.bf16.msra.mxu1 %v5600_v30  ;;  %3028 = vmatprep.subr.bf16.mxu0 %v5605_v49  ;;  %v468_v30 = vld [vmem:[%s6367_s29 + $0x2b0] sm:$0xff]  ;;  %v5620_v49 = vld [vmem:[#allocation5 + $0x1ec] ss:$16 sps:$4 sm:$0xff]   ;;  %v6641_v10 = vpack.c.bf16 %v476_v43, %v466_v23  ;;  %v5624_v23 = vld [vmem:[#allocation5 + $0x1c8] ss:$16 sps:$4 sm:$0xff]   ;;  %v6667_v19 = vpack.c.bf16 %v517_v62, %v507_v0 }
 0x12f   : > { %3141 = vmatprep.subr.bf16.mxu1 %v5608_v52  ;;  %v5615_v52 = vld [vmem:[#allocation5 + $0x9e0] ss:$16 sps:$4 sm:$0xff]  }
 0x130   : > { %2853 = vmatmul.mubr.bf16.gmra.mxu0 %v6621_v9  ;;  %v496_v43 = vld [vmem:[%s6367_s29 + $0x390] sm:$0xff] }
 0x131   : > { %2966 = vmatmul.mubr.bf16.gmra.mxu1 %v6623_v61  ;;  %3029 = vmatpush1.bf16.msra.mxu0 %v5603_v53  ;;  %v6643_v53 = vpack.c.bf16 %v478_v36, %v468_v30  ;;  %v499_v61 = vld [vmem:[%s6367_s29 + $0x3a8] sm:$0xff]  ;;  %v498_v30 = vld [vmem:[%s6367_s29 + $0x3a0] sm:$0xff] }
 0x132   : > { %3142 = vmatpush1.bf16.msra.mxu1 %v5606_v58  ;;  %3030 = vmatprep.subr.bf16.mxu0 %v5611_v11  ;;  %v489_v58 = vld [vmem:[%s6367_s29 + $0x358] sm:$0xff]  ;;  %v5623_v11 = vld [vmem:[#allocation5 + $0x9c4] ss:$16 sps:$4 sm:$0xff]  }
 0x133   : > { %3143 = vmatprep.subr.bf16.mxu1 %v5614_v20  ;;  %2862 = vmatprep.mubr.bf16.mxu0 %v6627_v8  ;;  %7675 = vst [vmem:[#allocation29_spill] sm:$0xff] %v6643_v53  ;;  %v5626_v20 = vld [vmem:[#allocation5 + $0x1cc] ss:$16 sps:$4 sm:$0xff]   ;;  %v6649_v57 = vpack.c.bf16 %v499_v61, %v489_v58  ;;  %v5629_v36 = vld [vmem:[#allocation5 + $0x9a4] ss:$16 sps:$4 sm:$0xff]  }
 0x134   : > { %2975 = vmatprep.mubr.bf16.mxu1 %v6629_v35  ;;  %v5621_v35 = vld [vmem:[#allocation5 + $0x9c0] ss:$16 sps:$4 sm:$0xff]   ;;  %v5632_v61 = vld [vmem:[#allocation5 + $0x1ac] ss:$16 sps:$4 sm:$0xff]  }
 0x135   : > { %3031 = vmatpush1.bf16.msra.mxu0 %v5609_v29  ;;  %7676 = vst [vmem:[#allocation30_spill] sm:$0xff] %v6649_v57  ;;  %v486_v29 = vld [vmem:[%s6367_s29 + $0x340] sm:$0xff] }
 0x136   : > { %3144 = vmatpush1.bf16.msra.mxu1 %v5612_v31  ;;  %3032 = vmatprep.subr.bf16.mxu0 %v5617_v48  ;;  %v488_v31 = vld [vmem:[%s6367_s29 + $0x350] sm:$0xff]  ;;  %v6661_v58 = vpack.c.bf16 %v496_v43, %v486_v29  ;;  %v506_v29 = vld [vmem:[%s6367_s29 + $0x3e0] sm:$0xff] }
 0x137   : > { %3145 = vmatprep.subr.bf16.mxu1 %v5620_v49  ;;  %v5627_v48 = vld [vmem:[#allocation5 + $0x9a0] ss:$16 sps:$4 sm:$0xff]   ;;  %v5630_v49 = vld [vmem:[#allocation5 + $0x1a8] ss:$16 sps:$4 sm:$0xff]  }
 0x138   : > { %2863 = vmatmul.mubr.bf16.gmra.mxu0 %v6641_v10  ;;  %v516_v43 = vld [vmem:[%s6367_s29 + $0x430] sm:$0xff] }
 0x139   : > { %2976 = vmatmul.mubr.bf16.gmra.mxu1 %v6643_v53  ;;  %3033 = vmatpush2.bf16.msra.mxu0 %v5615_v52  ;;  %v6663_v52 = vpack.c.bf16 %v498_v30, %v488_v31  ;;  %v519_v53 = vld [vmem:[%s6367_s29 + $0x448] sm:$0xff]  ;;  %v5641_v31 = vld [vmem:[#allocation5 + $0x964] ss:$16 sps:$4 sm:$0xff]   ;;  %v6681_v0 = vpack.c.bf16 %v516_v43, %v506_v29 }
 0x13a   : > { %3146 = vmatpush2.bf16.msra.mxu1 %v5618_v63  ;;  %3034 = vmatprep.subr.bf16.mxu0 %v5623_v11  ;;  %v509_v63 = vld [vmem:[%s6367_s29 + $0x3f8] sm:$0xff]  ;;  %v5635_v11 = vld [vmem:[#allocation5 + $0x984] ss:$16 sps:$4 sm:$0xff]  }
 0x13b   : > { %3147 = vmatprep.subr.bf16.mxu1 %v5626_v20  ;;  %2872 = vmatprep.mubr.bf16.mxu0 %v6647_v22  ;;  %7677 = vst [vmem:[#allocation31_spill] sm:$0xff] %v6663_v52  ;;  %v5638_v20 = vld [vmem:[#allocation5 + $0x18c] ss:$16 sps:$4 sm:$0xff]   ;;  %v6669_v4 = vpack.c.bf16 %v519_v53, %v509_v63  ;;  %v5639_v53 = vld [vmem:[#allocation5 + $0x960] ss:$16 sps:$4 sm:$0xff]  }
 0x13c   : > { %2985 = vmatprep.mubr.bf16.mxu1 %v6649_v57  ;;  %v5633_v57 = vld [vmem:[#allocation5 + $0x980] ss:$16 sps:$4 sm:$0xff]   ;;  %v5644_v30 = vld [vmem:[#allocation5 + $0x16c] ss:$16 sps:$4 sm:$0xff]  }
 0x13d   : > { %3035 = vmatpush2.bf16.msra.mxu0 %v5621_v35  ;;  %7678 = vst [vmem:[#allocation32_spill] sm:$0xff] %v6669_v4  ;;  %v508_v35 = vld [vmem:[%s6367_s29 + $0x3f0] sm:$0xff]  ;;  %v529_v63 = vld [vmem:[%s6367_s29 + $0x498] sm:$0xff]  ;;  %v526_v43 = vld [vmem:[%s6367_s29 + $0x480] sm:$0xff] }
 0x13e   : > { %3148 = vmatpush2.bf16.msra.mxu1 %v5624_v23  ;;  %3036 = vmatprep.subr.bf16.mxu0 %v5629_v36  ;;  %v518_v23 = vld [vmem:[%s6367_s29 + $0x440] sm:$0xff]  ;;  %v527_v36 = vld [vmem:[%s6367_s29 + $0x488] sm:$0xff] }
 0x13f   : > { %3149 = vmatprep.subr.bf16.mxu1 %v5632_v61  ;;  %v537_v61 = vld [vmem:[%s6367_s29 + $0x4d8] sm:$0xff]  ;;  %v6683_v62 = vpack.c.bf16 %v518_v23, %v508_v35  ;;  %v536_v35 = vld [vmem:[%s6367_s29 + $0x4d0] sm:$0xff] }
 0x140   : > { %2873 = vmatmul.mubr.bf16.gmra.mxu0 %v6661_v58  ;;  %v6687_v47 = vpack.c.bf16 %v537_v61, %v527_v36  ;;  %v5653_v23 = vld [vmem:[#allocation5 + $0x924] ss:$16 sps:$4 sm:$0xff]   ;;  %v391_v61 = vld [vmem:[%s6367_s29 + $0x48] sm:$0xff] }
 0x141   : > { %2986 = vmatmul.mubr.bf16.gmra.mxu1 %v6663_v52  ;;  %3037 = vmatpush2.bf16.msra.mxu0 %v5627_v48  ;;  %7679 = vst [vmem:[#allocation33_spill] sm:$0xff] %v6683_v62  ;;  %v539_v48 = vld [vmem:[%s6367_s29 + $0x4e8] sm:$0xff] }
 0x142   : > { %3150 = vmatpush2.bf16.msra.mxu1 %v5630_v49  ;;  %3038 = vmatprep.subr.bf16.mxu0 %v5635_v11  ;;  %v5642_v49 = vld [vmem:[#allocation5 + $0x168] ss:$16 sps:$4 sm:$0xff]   ;;  %v5647_v11 = vld [vmem:[#allocation5 + $0x944] ss:$16 sps:$4 sm:$0xff]   ;;  %7680 = vst [vmem:[#allocation34_spill] sm:$0xff] %v6687_v47  ;;  %v6689_v29 = vpack.c.bf16 %v539_v48, %v529_v63 }
 0x143   : > { %3151 = vmatprep.subr.bf16.mxu1 %v5638_v20  ;;  %2882 = vmatprep.mubr.bf16.mxu0 %v6667_v19  ;;  %v5650_v20 = vld [vmem:[#allocation5 + $0x14c] ss:$16 sps:$4 sm:$0xff]   ;;  %v5648_v52 = vld [vmem:[#allocation5 + $0x148] ss:$16 sps:$4 sm:$0xff]  }
 0x144   : > { %2995 = vmatprep.mubr.bf16.mxu1 %v6669_v4  ;;  %v5645_v4 = vld [vmem:[#allocation5 + $0x940] ss:$16 sps:$4 sm:$0xff]   ;;  %v401_v63 = vld [vmem:[%s6367_s29 + $0x98] sm:$0xff] }
 0x145   : > { %3039 = vmatpush2.bf16.msra.mxu0 %v5633_v57  ;;  %v538_v57 = vld [vmem:[%s6367_s29 + $0x4e0] sm:$0xff]  ;;  %v5654_v48 = vld [vmem:[#allocation5 + $0x128] ss:$16 sps:$4 sm:$0xff]  }
 0x146   : > { %3152 = vmatpush2.bf16.msra.mxu1 %v5636_v40  ;;  %3040 = vmatprep.subr.bf16.mxu0 %v5641_v31  ;;  %v528_v40 = vld [vmem:[%s6367_s29 + $0x490] sm:$0xff]  ;;  %v5656_v31 = vld [vmem:[#allocation5 + $0x12c] ss:$16 sps:$4 sm:$0xff]  }
 0x147   : > { %3153 = vmatprep.subr.bf16.mxu1 %v5644_v30  ;;  %v6699_v30 = vpack.c.bf16 %v536_v35, %v526_v43  ;;  %v6701_v36 = vpack.c.bf16 %v538_v57, %v528_v40  ;;  %v390_v43 = vld [vmem:[%s6367_s29 + $0x40] sm:$0xff]  ;;  %v400_v35 = vld [vmem:[%s6367_s29 + $0x90] sm:$0xff]  ;;  %v5663_v40 = vld [vmem:[#allocation5 + $0x2e8] ss:$16 sps:$4 sm:$0xff]  }
 0x148   : > { %2883 = vmatmul.mubr.bf16.gmra.mxu0 %v6681_v0  ;;  %v6713_v57 = vpack.c.bf16 %v400_v35, %v390_v43  ;;  %v420_v43 = vld [vmem:[%s6367_s29 + $0x130] sm:$0xff]  ;;  %v5675_v35 = vld [vmem:[#allocation5 + $0x2a8] ss:$16 sps:$4 sm:$0xff]  }
 0x149   : > { %2996 = vmatmul.mubr.bf16.gmra.mxu1 %v6683_v62  ;;  %3041 = vmatpush2.bf16.msra.mxu0 %v5639_v53  ;;  %v5651_v53 = vld [vmem:[#allocation5 + $0x920] ss:$16 sps:$4 sm:$0xff]   ;;  %v5660_v62 = vld [vmem:[#allocation5 + $0x108] ss:$16 sps:$4 sm:$0xff]  }
 0x14a   : > { %3154 = vmatpush2.bf16.msra.mxu1 %v5642_v49  ;;  %3042 = vmatprep.subr.bf16.mxu0 %v5647_v11  ;;  %v5659_v49 = vld [vmem:[#allocation5 + $0x904] ss:$16 sps:$4 sm:$0xff]   ;;  %v5662_v11 = vld [vmem:[#allocation5 + $0x10c] ss:$16 sps:$4 sm:$0xff]  }
 0x14b   : > { %3155 = vmatprep.subr.bf16.mxu1 %v5650_v20  ;;  %2892 = vmatprep.mubr.bf16.mxu0 %v6687_v47  ;;  %v5657_v20 = vld [vmem:[#allocation5 + $0x900] ss:$16 sps:$4 sm:$0xff]   ;;  %v6705_v47 = vpack.c.bf16 %v401_v63, %v391_v61  ;;  %v421_v61 = vld [vmem:[%s6367_s29 + $0x138] sm:$0xff] }
 0x14c   : > { %3005 = vmatprep.mubr.bf16.mxu1 %v6689_v29  ;;  %v5671_v63 = vld [vmem:[#allocation5 + $0x2cc] ss:$16 sps:$4 sm:$0xff]  }
 0x14d   : > { %3043 = vmatpush2.bf16.msra.mxu0 %v5645_v4  ;;  %v5665_v4 = vld [vmem:[#allocation5 + $0x2ec] ss:$16 sps:$4 sm:$0xff]  }
 0x14e   : > { %3156 = vmatpush2.bf16.msra.mxu1 %v5648_v52  ;;  %3044 = vmatprep.subr.bf16.mxu0 %v5653_v23  ;;  %v5668_v52 = vld [vmem:[#allocation5 + $0x4ec] ss:$16 sps:$4 sm:$0xff]   ;;  %v5666_v23 = vld [vmem:[#allocation5 + $0x4e8] ss:$16 sps:$4 sm:$0xff]  }
 0x14f   : > { %3157 = vmatprep.subr.bf16.mxu1 %v5656_v31  ;;  %v411_v31 = vld [vmem:[%s6367_s29 + $0xe8] sm:$0xff] }
 0x150   : > { %2893 = vmatmul.mubr.bf16.gmra.mxu0 %v6699_v30 }
 0x151   : > { %3006 = vmatmul.mubr.bf16.gmra.mxu1 %v6701_v36  ;;  %3045 = vmatpush2.bf16.msra.mxu0 %v5651_v53  ;;  %v5674_v53 = vld [vmem:[#allocation5 + $0x4cc] ss:$16 sps:$4 sm:$0xff]  }
 0x152   : > { %3158 = vmatpush2.bf16.msra.mxu1 %v5654_v48  ;;  %3046 = vmatprep.subr.bf16.mxu0 %v5659_v49  ;;  %v5669_v48 = vld [vmem:[#allocation5 + $0x2c8] ss:$16 sps:$4 sm:$0xff]   ;;  %v6717_v49 = vpack.c.bf16 %v421_v61, %v411_v31 }
 0x153   : > { %3159 = vmatprep.subr.bf16.mxu1 %v5662_v11  ;;  %3048 = vmatprep.mubr.bf16.mxu0 %v6705_v47  ;;  %v410_v11 = vld [vmem:[%s6367_s29 + $0xe0] sm:$0xff]  ;;  %v441_v31 = vld [vmem:[%s6367_s29 + $0x1d8] sm:$0xff] }
 0x154   : > { %3161 = vmatprep.mubr.bf16.mxu1 %v6389_v54  ;;  %v5672_v54 = vld [vmem:[#allocation5 + $0x4c8] ss:$16 sps:$4 sm:$0xff]  }
 0x155   : > { %3047 = vmatpush2.bf16.msra.mxu0 %v5657_v20  ;;  %v5680_v20 = vld [vmem:[#allocation5 + $0x4ac] ss:$16 sps:$4 sm:$0xff]  }
 0x156   : > { %3160 = vmatpush2.bf16.msra.mxu1 %v5660_v62  ;;  %3242 = vmatprep.subr.bf16.mxu0 %v5665_v4  ;;  %v5677_v62 = vld [vmem:[#allocation5 + $0x2ac] ss:$16 sps:$4 sm:$0xff]   ;;  %v5678_v4 = vld [vmem:[#allocation5 + $0x4a8] ss:$16 sps:$4 sm:$0xff]  }
 0x157   : > { %3355 = vmatprep.subr.bf16.mxu1 %v5668_v52  ;;  %v6725_v52 = vpack.c.bf16 %v420_v43, %v410_v11  ;;  %v440_v11 = vld [vmem:[%s6367_s29 + $0x1d0] sm:$0xff]  ;;  %v5687_v43 = vld [vmem:[#allocation5 + $0x268] ss:$16 sps:$4 sm:$0xff]  }
 0x158   : > { %3049 = vmatmul.mubr.bf16.vlgmr.msra.gmra.mxu0 %v6713_v57 }
 0x159   : > { %3162 = vmatmul.mubr.bf16.vlgmr.msra.gmra.mxu1 %v6401_v17  ;;  %3243 = vmatpush1.bf16.msra.mxu0 %v5663_v40  ;;  %v431_v17 = vld [vmem:[%s6367_s29 + $0x188] sm:$0xff] }
 0x15a   : > { %3356 = vmatpush1.bf16.msra.mxu1 %v5666_v23  ;;  %3244 = vmatprep.subr.bf16.mxu0 %v5671_v63  ;;  %v5683_v40 = vld [vmem:[#allocation5 + $0x28c] ss:$16 sps:$4 sm:$0xff]   ;;  %v6729_v61 = vpack.c.bf16 %v441_v31, %v431_v17  ;;  %v5684_v63 = vld [vmem:[#allocation5 + $0x488] ss:$16 sps:$4 sm:$0xff]  }
 0x15b   : > { %3357 = vmatprep.subr.bf16.mxu1 %v5674_v53  ;;  %3058 = vmatprep.mubr.bf16.mxu0 %v6717_v49  ;;  %v5686_v23 = vld [vmem:[#allocation5 + $0x48c] ss:$16 sps:$4 sm:$0xff]   ;;  %v430_v53 = vld [vmem:[%s6367_s29 + $0x180] sm:$0xff]  ;;  %v5693_v31 = vld [vmem:[#allocation5 + $0x248] ss:$16 sps:$4 sm:$0xff]  }
 0x15c   : > { %3171 = vmatprep.mubr.bf16.mxu1 %v6407_v24  ;;  %v5681_v24 = vld [vmem:[#allocation5 + $0x288] ss:$16 sps:$4 sm:$0xff]  }
 0x15d   : > { %3245 = vmatpush1.bf16.msra.mxu0 %v5669_v48  ;;  %v5689_v48 = vld [vmem:[#allocation5 + $0x26c] ss:$16 sps:$4 sm:$0xff]  }
 0x15e   : > { %3358 = vmatpush1.bf16.msra.mxu1 %v5672_v54  ;;  %3246 = vmatprep.subr.bf16.mxu0 %v5677_v62  ;;  %v5692_v54 = vld [vmem:[#allocation5 + $0x46c] ss:$16 sps:$4 sm:$0xff]   ;;  %v5690_v62 = vld [vmem:[#allocation5 + $0x468] ss:$16 sps:$4 sm:$0xff]  }
 0x15f   : > { %3359 = vmatprep.subr.bf16.mxu1 %v5680_v20  ;;  %v451_v20 = vld [vmem:[%s6367_s29 + $0x228] sm:$0xff]  ;;  %v461_v17 = vld [vmem:[%s6367_s29 + $0x278] sm:$0xff] }
 0x160   : > { %3059 = vmatmul.mubr.bf16.gmra.mxu0 %v6725_v52 }
 0x161   : > { %3172 = vmatmul.mubr.bf16.gmra.mxu1 %v6421_v37  ;;  %3247 = vmatpush1.bf16.msra.mxu0 %v5675_v35  ;;  %v6737_v37 = vpack.c.bf16 %v440_v11, %v430_v53  ;;  %v5695_v35 = vld [vmem:[#allocation5 + $0x24c] ss:$16 sps:$4 sm:$0xff]   ;;  %v460_v53 = vld [vmem:[%s6367_s29 + $0x270] sm:$0xff]  ;;  %v5699_v11 = vld [vmem:[#allocation5 + $0x228] ss:$16 sps:$4 sm:$0xff]  }
 0x162   : > { %3360 = vmatpush1.bf16.msra.mxu1 %v5678_v4  ;;  %3248 = vmatprep.subr.bf16.mxu0 %v5683_v40  ;;  %v5698_v4 = vld [vmem:[#allocation5 + $0x44c] ss:$16 sps:$4 sm:$0xff]   ;;  %v6741_v40 = vpack.c.bf16 %v461_v17, %v451_v20  ;;  %v5702_v20 = vld [vmem:[#allocation5 + $0x428] ss:$16 sps:$4 sm:$0xff]  }
 0x163   : > { %3361 = vmatprep.subr.bf16.mxu1 %v5686_v23  ;;  %3068 = vmatprep.mubr.bf16.mxu0 %v6729_v61  ;;  %v450_v23 = vld [vmem:[%s6367_s29 + $0x220] sm:$0xff]  ;;  %v5705_v17 = vld [vmem:[#allocation5 + $0x208] ss:$16 sps:$4 sm:$0xff]  }
 0x164   : > { %3181 = vmatprep.mubr.bf16.mxu1 %v6427_v44  ;;  %v5696_v44 = vld [vmem:[#allocation5 + $0x448] ss:$16 sps:$4 sm:$0xff]  }
 0x165   : > { %3249 = vmatpush1.bf16.msra.mxu0 %v5681_v24  ;;  %v5701_v24 = vld [vmem:[#allocation5 + $0x22c] ss:$16 sps:$4 sm:$0xff]  }
 0x166   : > { %3362 = vmatpush1.bf16.msra.mxu1 %v5684_v63  ;;  %3250 = vmatprep.subr.bf16.mxu0 %v5689_v48  ;;  %v5704_v63 = vld [vmem:[#allocation5 + $0x42c] ss:$16 sps:$4 sm:$0xff]   ;;  %v6749_v48 = vpack.c.bf16 %v460_v53, %v450_v23  ;;  %v480_v23 = vld [vmem:[%s6367_s29 + $0x310] sm:$0xff]  ;;  %v5711_v53 = vld [vmem:[#allocation5 + $0x3e8] ss:$16 sps:$4 sm:$0xff]  }
 0x167   : > { %3363 = vmatprep.subr.bf16.mxu1 %v5692_v54  ;;  %v471_v54 = vld [vmem:[%s6367_s29 + $0x2c8] sm:$0xff] }
 0x168   : > { %3069 = vmatmul.mubr.bf16.gmra.mxu0 %v6737_v37 }
 0x169   : > { %3182 = vmatmul.mubr.bf16.gmra.mxu1 %v6441_v59  ;;  %3251 = vmatpush1.bf16.msra.mxu0 %v5687_v43  ;;  %v481_v59 = vld [vmem:[%s6367_s29 + $0x318] sm:$0xff] }
 0x16a   : > { %3364 = vmatpush1.bf16.msra.mxu1 %v5690_v62  ;;  %3252 = vmatprep.subr.bf16.mxu0 %v5695_v35  ;;  %v5707_v43 = vld [vmem:[#allocation5 + $0x20c] ss:$16 sps:$4 sm:$0xff]   ;;  %v5708_v35 = vld [vmem:[#allocation5 + $0x408] ss:$16 sps:$4 sm:$0xff]  }
 0x16b   : > { %3365 = vmatprep.subr.bf16.mxu1 %v5698_v4  ;;  %3078 = vmatprep.mubr.bf16.mxu0 %v6741_v40  ;;  %v5710_v62 = vld [vmem:[#allocation5 + $0x40c] ss:$16 sps:$4 sm:$0xff]   ;;  %v6753_v4 = vpack.c.bf16 %v481_v59, %v471_v54 }
 0x16c   : > { %3191 = vmatprep.mubr.bf16.mxu1 %v6447_v2  ;;  %v470_v2 = vld [vmem:[%s6367_s29 + $0x2c0] sm:$0xff]  ;;  %v501_v54 = vld [vmem:[%s6367_s29 + $0x3b8] sm:$0xff] }
 0x16d   : > { %3253 = vmatpush1.bf16.msra.mxu0 %v5693_v31  ;;  %v5713_v31 = vld [vmem:[#allocation5 + $0x3ec] ss:$16 sps:$4 sm:$0xff]  }
 0x16e   : > { %3366 = vmatpush1.bf16.msra.mxu1 %v5696_v44  ;;  %3254 = vmatprep.subr.bf16.mxu0 %v5701_v24  ;;  %v5716_v44 = vld [vmem:[#allocation5 + $0x5ec] ss:$16 sps:$4 sm:$0xff]   ;;  %v6761_v24 = vpack.c.bf16 %v480_v23, %v470_v2  ;;  %v5723_v23 = vld [vmem:[#allocation5 + $0x3a8] ss:$16 sps:$4 sm:$0xff]  }
 0x16f   : > { %3367 = vmatprep.subr.bf16.mxu1 %v5704_v63  ;;  %v491_v63 = vld [vmem:[%s6367_s29 + $0x368] sm:$0xff] }
 0x170   : > { %3079 = vmatmul.mubr.bf16.gmra.mxu0 %v6749_v48  ;;  %v5722_v59 = vld [vmem:[#allocation5 + $0x5cc] ss:$16 sps:$4 sm:$0xff]  }
 0x171   : > { %3192 = vmatmul.mubr.bf16.gmra.mxu1 %v6461_v15  ;;  %3255 = vmatpush1.bf16.msra.mxu0 %v5699_v11  ;;  %v5714_v15 = vld [vmem:[#allocation5 + $0x5e8] ss:$16 sps:$4 sm:$0xff]   ;;  %v5719_v11 = vld [vmem:[#allocation5 + $0x3cc] ss:$16 sps:$4 sm:$0xff]  }
 0x172   : > { %3368 = vmatpush1.bf16.msra.mxu1 %v5702_v20  ;;  %3256 = vmatprep.subr.bf16.mxu0 %v5707_v43  ;;  %v5717_v20 = vld [vmem:[#allocation5 + $0x3c8] ss:$16 sps:$4 sm:$0xff]   ;;  %v5728_v2 = vld [vmem:[#allocation5 + $0x5ac] ss:$16 sps:$4 sm:$0xff]  }
 0x173   : > { %3369 = vmatprep.subr.bf16.mxu1 %v5710_v62  ;;  %3088 = vmatprep.mubr.bf16.mxu0 %v6753_v4  ;;  %v5720_v43 = vld [vmem:[#allocation5 + $0x5c8] ss:$16 sps:$4 sm:$0xff]   ;;  %v6765_v62 = vpack.c.bf16 %v501_v54, %v491_v63  ;;  %v5734_v54 = vld [vmem:[#allocation5 + $0x58c] ss:$16 sps:$4 sm:$0xff]  }
 0x174   : > { %3201 = vmatprep.mubr.bf16.mxu1 %v6467_v26  ;;  %v490_v26 = vld [vmem:[%s6367_s29 + $0x360] sm:$0xff]  ;;  %v521_v63 = vld [vmem:[%s6367_s29 + $0x458] sm:$0xff] }
 0x175   : > { %3257 = vmatpush1.bf16.msra.mxu0 %v5705_v17  ;;  %v500_v17 = vld [vmem:[%s6367_s29 + $0x3b0] sm:$0xff] }
 0x176   : > { %3370 = vmatpush1.bf16.msra.mxu1 %v5708_v35  ;;  %3258 = vmatprep.subr.bf16.mxu0 %v5713_v31  ;;  %v5725_v35 = vld [vmem:[#allocation5 + $0x3ac] ss:$16 sps:$4 sm:$0xff]  }
 0x177   : > { %3371 = vmatprep.subr.bf16.mxu1 %v5716_v44  ;;  %v511_v31 = vld [vmem:[%s6367_s29 + $0x408] sm:$0xff]  ;;  %v6774_v44 = vpack.c.bf16 %v500_v17, %v490_v26 }
 0x178   : > { %3089 = vmatmul.mubr.bf16.gmra.mxu0 %v6761_v24  ;;  %v5740_v26 = vld [vmem:[#allocation5 + $0x56c] ss:$16 sps:$4 sm:$0xff]   ;;  %v5735_v17 = vld [vmem:[#allocation5 + $0x368] ss:$16 sps:$4 sm:$0xff]  }
 0x179   : > { %3202 = vmatmul.mubr.bf16.gmra.mxu1 %v6481_v41  ;;  %3259 = vmatpush2.bf16.msra.mxu0 %v5711_v53  ;;  %v5726_v41 = vld [vmem:[#allocation5 + $0x5a8] ss:$16 sps:$4 sm:$0xff]   ;;  %v5731_v53 = vld [vmem:[#allocation5 + $0x38c] ss:$16 sps:$4 sm:$0xff]  }
 0x17a   : > { %3372 = vmatpush2.bf16.msra.mxu1 %v5714_v15  ;;  %3260 = vmatprep.subr.bf16.mxu0 %v5719_v11  ;;  %v5729_v15 = vld [vmem:[#allocation5 + $0x388] ss:$16 sps:$4 sm:$0xff]  }
 0x17b   : > { %3373 = vmatprep.subr.bf16.mxu1 %v5722_v59  ;;  %3098 = vmatprep.mubr.bf16.mxu0 %v6765_v62  ;;  %v5732_v11 = vld [vmem:[#allocation5 + $0x588] ss:$16 sps:$4 sm:$0xff]   ;;  %v6777_v59 = vpack.c.bf16 %v521_v63, %v511_v31  ;;  %v5746_v63 = vld [vmem:[#allocation5 + $0x54c] ss:$16 sps:$4 sm:$0xff]  }
 0x17c   : > { %3211 = vmatprep.mubr.bf16.mxu1 %v6487_v50  ;;  %v510_v50 = vld [vmem:[%s6367_s29 + $0x400] sm:$0xff]  ;;  %v541_v31 = vld [vmem:[%s6367_s29 + $0x4f8] sm:$0xff] }
 0x17d   : > { %3261 = vmatpush2.bf16.msra.mxu0 %v5717_v20  ;;  %v520_v20 = vld [vmem:[%s6367_s29 + $0x450] sm:$0xff] }
 0x17e   : > { %3374 = vmatpush2.bf16.msra.mxu1 %v5720_v43  ;;  %3262 = vmatprep.subr.bf16.mxu0 %v5725_v35  ;;  %v5737_v43 = vld [vmem:[#allocation5 + $0x36c] ss:$16 sps:$4 sm:$0xff]  }
 0x17f   : > { %3375 = vmatprep.subr.bf16.mxu1 %v5728_v2  ;;  %v531_v35 = vld [vmem:[%s6367_s29 + $0x4a8] sm:$0xff]  ;;  %v6786_v2 = vpack.c.bf16 %v520_v20, %v510_v50  ;;  %v540_v50 = vld [vmem:[%s6367_s29 + $0x4f0] sm:$0xff]  ;;  %v944_v20 = vlaneseq }
 0x180   : > { %3099 = vmatmul.mubr.bf16.gmra.mxu0 %v6774_v44 }
 0x181   : > { %3212 = vmatmul.mubr.bf16.gmra.mxu1 %v6501_v5  ;;  %3263 = vmatpush2.bf16.msra.mxu0 %v5723_v23  ;;  %v5738_v5 = vld [vmem:[#allocation5 + $0x568] ss:$16 sps:$4 sm:$0xff]   ;;  %v5743_v23 = vld [vmem:[#allocation5 + $0x34c] ss:$16 sps:$4 sm:$0xff]  }
 0x182   : > { %3376 = vmatpush2.bf16.msra.mxu1 %v5726_v41  ;;  %3264 = vmatprep.subr.bf16.mxu0 %v5731_v53  ;;  %v5741_v41 = vld [vmem:[#allocation5 + $0x348] ss:$16 sps:$4 sm:$0xff]  }
 0x183   : > { %3377 = vmatprep.subr.bf16.mxu1 %v5734_v54  ;;  %3108 = vmatprep.mubr.bf16.mxu0 %v6777_v59  ;;  %v5744_v53 = vld [vmem:[#allocation5 + $0x548] ss:$16 sps:$4 sm:$0xff]   ;;  %v6789_v54 = vpack.c.bf16 %v541_v31, %v531_v35  ;;  %v5758_v31 = vld [vmem:[#allocation5 + $0x50c] ss:$16 sps:$4 sm:$0xff]  }
 0x184   : > { %3221 = vmatprep.mubr.bf16.mxu1 %v6507_v12  ;;  %v530_v12 = vld [vmem:[%s6367_s29 + $0x4a0] sm:$0xff]  ;;  %v5750_v35 = vld [vmem:[#allocation5 + $0x528] ss:$16 sps:$4 sm:$0xff]  }
 0x185   : > { %3265 = vmatpush2.bf16.msra.mxu0 %v5729_v15  ;;  %v5749_v15 = vld [vmem:[#allocation5 + $0x32c] ss:$16 sps:$4 sm:$0xff]  }
 0x186   : > { %3378 = vmatpush2.bf16.msra.mxu1 %v5732_v11  ;;  %3266 = vmatprep.subr.bf16.mxu0 %v5737_v43  ;;  %v5752_v11 = vld [vmem:[#allocation5 + $0x52c] ss:$16 sps:$4 sm:$0xff]   ;;  %v6797_v43 = vpack.c.bf16 %v540_v50, %v530_v12  ;;  %v5759_v50 = vld [vmem:[#allocation5 + $0x6e8] ss:$16 sps:$4 sm:$0xff]  }
 0x187   : > { %3379 = vmatprep.subr.bf16.mxu1 %v5740_v26  ;;  %v5747_v26 = vld [vmem:[#allocation5 + $0x328] ss:$16 sps:$4 sm:$0xff]  }
 0x188   : > { %3109 = vmatmul.mubr.bf16.gmra.mxu0 %v6786_v2  ;;  %7681 = vst [vmem:[#allocation35_spill] sm:$0xff] %v6797_v43 }
 0x189   : > { %3222 = vmatmul.mubr.bf16.gmra.mxu1 %v6521_v33  ;;  %3267 = vmatpush2.bf16.msra.mxu0 %v5735_v17  ;;  %v6799_v33 = vshrl.u32 %v944_v20, 7  ;;  %v5755_v17 = vld [vmem:[#allocation5 + $0x30c] ss:$16 sps:$4 sm:$0xff]   ;;  %v5762_v20 = vld [vmem:[#allocation5 + $0x8e8] ss:$16 sps:$4 sm:$0xff]  }
 0x18a   : > { %3380 = vmatpush2.bf16.msra.mxu1 %v5738_v5  ;;  %3268 = vmatprep.subr.bf16.mxu0 %v5743_v23  ;;  %v5753_v5 = vld [vmem:[#allocation5 + $0x308] ss:$16 sps:$4 sm:$0xff]  }
 0x18b   : > { %3381 = vmatprep.subr.bf16.mxu1 %v5746_v63  ;;  %3118 = vmatprep.mubr.bf16.mxu0 %v6789_v54  ;;  %7682 = vst [vmem:[#allocation36_spill] sm:$0xff] %v6799_v33  ;;  %v5756_v23 = vld [vmem:[#allocation5 + $0x508] ss:$16 sps:$4 sm:$0xff]   ;;  %v946_v63 = vsub.s32 0, %v6799_v33  ;;  %v950_v12 = vsub.s32 1, %v6799_v33 }
 0x18c   : > { %3231 = vmatprep.mubr.bf16.mxu1 %v6527_v46  ;;  %v942_v46 = vld [vmem:[#allocation7] sm:$0xf] }
 0x18d   : > { %3269 = vmatpush2.bf16.msra.mxu0 %v5741_v41  ;;  %v5761_v41 = vld [vmem:[#allocation5 + $0x6ec] ss:$16 sps:$4 sm:$0xff]  }
 0x18e   : > { %3382 = vmatpush2.bf16.msra.mxu1 %v5744_v53  ;;  %3270 = vmatprep.subr.bf16.mxu0 %v5749_v15  ;;  %v5764_v53 = vld [vmem:[#allocation5 + $0x8ec] ss:$16 sps:$4 sm:$0xff]  }
 0x18f   : > { %3383 = vmatprep.subr.bf16.mxu1 %v5752_v11  ;;  %v5767_v15 = vld [vmem:[#allocation5 + $0x6cc] ss:$16 sps:$4 sm:$0xff]  }
 0x190   : > { %3119 = vmatmul.mubr.bf16.gmra.mxu0 %v6797_v43  ;;  %v5770_v11 = vld [vmem:[#allocation5 + $0x8cc] ss:$16 sps:$4 sm:$0xff]  }
 0x191   : > { %3232 = vmatmul.mubr.bf16.gmra.mxu1 %v6541_v1  ;;  %3271 = vmatpush2.bf16.msra.mxu0 %v5747_v26  ;;  %v6807_v1 = vrot.slane %v942_v46, %v946_v63  ;;  %v6809_v26 = vrot.slane %v942_v46, %v950_v12  ;;  %v5773_v63 = vld [vmem:[#allocation5 + $0x6ac] ss:$16 sps:$4 sm:$0xff]   ;;  %v5771_v12 = vld [vmem:[#allocation5 + $0x6a8] ss:$16 sps:$4 sm:$0xff]  }
 0x192   : > { %3384 = vmatpush2.bf16.msra.mxu1 %v5750_v35  ;;  %3272 = vmatprep.subr.bf16.mxu0 %v5755_v17 }
 0x193   : > { %3385 = vmatprep.subr.bf16.mxu1 %v5758_v31  ;;  %3274 = vmatprep.mubr.bf16.mxu0 %v6391_v55  ;;  %v5765_v55 = vld [vmem:[#allocation5 + $0x6c8] ss:$16 sps:$4 sm:$0xff]  }
 0x194   : > { %3387 = vmatprep.mubr.bf16.mxu1 %v6547_v14  ;;  %v5768_v31 = vld [vmem:[#allocation5 + $0x8c8] ss:$16 sps:$4 sm:$0xff]  }
 0x195   : > { %3273 = vmatpush2.bf16.msra.mxu0 %v5753_v5 }
 0x196   : > { %3386 = vmatpush2.bf16.msra.mxu1 %v5756_v23  ;;  %3468 = vmatprep.subr.bf16.mxu0 %v5761_v41  ;;  %v5776_v41 = vld [vmem:[#allocation5 + $0x8ac] ss:$16 sps:$4 sm:$0xff]  }
 0x197   : > { %3581 = vmatprep.subr.bf16.mxu1 %v5764_v53 }
 0x198   : > { %v2598_v35 = vpop.f32.mrf.mxu0  ;;  %3275 = vmatmul.mubr.bf16.vlgmr.msra.gmra.mxu0 %v6403_v18 }
 0x199   : > { %v2711_v17 = vpop.f32.mrf.mxu1  ;;  %3388 = vmatmul.mubr.bf16.vlgmr.msra.gmra.mxu1 %v6561_v39  ;;  %v2599_v14 = vadd.f32 %v2598_v35, %v6807_v1  ;;  %3469 = vmatpush1.bf16.msra.mxu0 %v5759_v50 }
 0x19a   : > { %3582 = vmatpush1.bf16.msra.mxu1 %v5762_v20  ;;  %v2600_v5 = vpop.f32.mrf.mxu0  ;;  %3470 = vmatprep.subr.bf16.mxu0 %v5767_v15  ;;  %v5774_v15 = vld [vmem:[#allocation5 + $0x8a8] ss:$16 sps:$4 sm:$0xff]  }
 0x19b   : > { %v2713_v23 = vpop.f32.mrf.mxu1  ;;  %3583 = vmatprep.subr.bf16.mxu1 %v5770_v11  ;;  %v6814_v46 = vadd.f32 %v2711_v17, %v2599_v14  ;;  %v2601_v53 = vadd.f32 %v2600_v5, %v6809_v26  ;;  %3284 = vmatprep.mubr.bf16.mxu0 %v6409_v25  ;;  %v5779_v17 = vld [vmem:[#allocation5 + $0x68c] ss:$16 sps:$4 sm:$0xff]  }
 0x19c   : > { %3397 = vmatprep.mubr.bf16.mxu1 %v6567_v56  ;;  %v2602_v18 = vpop.f32.mrf.mxu0  ;;  %v5782_v14 = vld [vmem:[#allocation5 + $0x88c] ss:$16 sps:$4 sm:$0xff]   ;;  %v5777_v56 = vld [vmem:[#allocation5 + $0x688] ss:$16 sps:$4 sm:$0xff]  }
 0x19d   : > { %v2715_v39 = vpop.f32.mrf.mxu1  ;;  %v6819_v50 = vadd.f32 %v2713_v23, %v2601_v53  ;;  %v2603_v20 = vadd.f32 %v2602_v18, %v6807_v1  ;;  %3471 = vmatpush1.bf16.msra.mxu0 %v5765_v55  ;;  %v5780_v55 = vld [vmem:[#allocation5 + $0x888] ss:$16 sps:$4 sm:$0xff]   ;;  %v5788_v18 = vld [vmem:[#allocation5 + $0x86c] ss:$16 sps:$4 sm:$0xff]  }
 0x19e   : > { %3584 = vmatpush1.bf16.msra.mxu1 %v5768_v31  ;;  %v2604_v11 = vpop.f32.mrf.mxu0  ;;  %3472 = vmatprep.subr.bf16.mxu0 %v5773_v63  ;;  %v5785_v63 = vld [vmem:[#allocation5 + $0x66c] ss:$16 sps:$4 sm:$0xff]  }
 0x19f   : > { %v2717_v35 = vpop.f32.mrf.mxu1  ;;  %3585 = vmatprep.subr.bf16.mxu1 %v5776_v41  ;;  %v6822_v5 = vadd.f32 %v2715_v39, %v2603_v20  ;;  %v2605_v25 = vadd.f32 %v2604_v11, %v6809_v26 }
 0x1a0   : > { %v2608_v33 = vpop.f32.mrf.mxu0  ;;  %3285 = vmatmul.mubr.bf16.gmra.mxu0 %v6423_v38  ;;  %v5783_v38 = vld [vmem:[#allocation5 + $0x668] ss:$16 sps:$4 sm:$0xff]  }
 0x1a1   : > { %v2721_v43 = vpop.f32.mrf.mxu1  ;;  %3398 = vmatmul.mubr.bf16.gmra.mxu1 %v6581_v21  ;;  %v6827_v31 = vadd.f32 %v2717_v35, %v2605_v25  ;;  %v2609_v23 = vadd.f32 %v2608_v33, %v6807_v1  ;;  %3473 = vmatpush1.bf16.msra.mxu0 %v5771_v12  ;;  %v5786_v33 = vld [vmem:[#allocation5 + $0x868] ss:$16 sps:$4 sm:$0xff]   ;;  %v5791_v35 = vld [vmem:[#allocation5 + $0x64c] ss:$16 sps:$4 sm:$0xff]  }
 0x1a2   : > { %3586 = vmatpush1.bf16.msra.mxu1 %v5774_v15  ;;  %v2610_v41 = vpop.f32.mrf.mxu0  ;;  %3474 = vmatprep.subr.bf16.mxu0 %v5779_v17 }
 0x1a3   : > { %v2723_v53 = vpop.f32.mrf.mxu1  ;;  %3587 = vmatprep.subr.bf16.mxu1 %v5782_v14  ;;  %v6830_v39 = vadd.f32 %v2721_v43, %v2609_v23  ;;  %v2611_v20 = vadd.f32 %v2610_v41, %v6809_v26  ;;  %3294 = vmatprep.mubr.bf16.mxu0 %v6429_v45  ;;  %v5794_v14 = vld [vmem:[#allocation5 + $0x84c] ss:$16 sps:$4 sm:$0xff]  }
 0x1a4   : > { %3407 = vmatprep.mubr.bf16.mxu1 %v6587_v32  ;;  %v2612_v21 = vpop.f32.mrf.mxu0  ;;  %v5789_v32 = vld [vmem:[#allocation5 + $0x648] ss:$16 sps:$4 sm:$0xff]  }
 0x1a5   : > { %v2725_v11 = vpop.f32.mrf.mxu1  ;;  %v6835_v12 = vadd.f32 %v2723_v53, %v2611_v20  ;;  %v2613_v15 = vadd.f32 %v2612_v21, %v6807_v1  ;;  %3475 = vmatpush1.bf16.msra.mxu0 %v5777_v56  ;;  %v5792_v53 = vld [vmem:[#allocation5 + $0x848] ss:$16 sps:$4 sm:$0xff]   ;;  %v5800_v21 = vld [vmem:[#allocation5 + $0x82c] ss:$16 sps:$4 sm:$0xff]  }
 0x1a6   : > { %3588 = vmatpush1.bf16.msra.mxu1 %v5780_v55  ;;  %v2614_v17 = vpop.f32.mrf.mxu0  ;;  %3476 = vmatprep.subr.bf16.mxu0 %v5785_v63  ;;  %v5797_v63 = vld [vmem:[#allocation5 + $0x62c] ss:$16 sps:$4 sm:$0xff]  }
 0x1a7   : > { %v2727_v43 = vpop.f32.mrf.mxu1  ;;  %3589 = vmatprep.subr.bf16.mxu1 %v5788_v18  ;;  %v6838_v25 = vadd.f32 %v2725_v11, %v2613_v15  ;;  %v2615_v45 = vadd.f32 %v2614_v17, %v6809_v26 }
 0x1a8   : > { %v2618_v23 = vpop.f32.mrf.mxu0  ;;  %3295 = vmatmul.mubr.bf16.gmra.mxu0 %v6443_v60  ;;  %v5795_v60 = vld [vmem:[#allocation5 + $0x628] ss:$16 sps:$4 sm:$0xff]  }
 0x1a9   : > { %v2731_v41 = vpop.f32.mrf.mxu1  ;;  %3408 = vmatmul.mubr.bf16.gmra.mxu1 %v6601_v7  ;;  %v6843_v56 = vadd.f32 %v2727_v43, %v2615_v45  ;;  %v2619_v55 = vadd.f32 %v2618_v23, %v6807_v1  ;;  %3477 = vmatpush1.bf16.msra.mxu0 %v5783_v38  ;;  %v5798_v43 = vld [vmem:[#allocation5 + $0x828] ss:$16 sps:$4 sm:$0xff]   ;;  %v5806_v23 = vld [vmem:[#allocation5 + $0x80c] ss:$16 sps:$4 sm:$0xff]  }
 0x1aa   : > { %3590 = vmatpush1.bf16.msra.mxu1 %v5786_v33  ;;  %v2620_v18 = vpop.f32.mrf.mxu0  ;;  %3478 = vmatprep.subr.bf16.mxu0 %v5791_v35  ;;  %v5803_v35 = vld [vmem:[#allocation5 + $0x60c] ss:$16 sps:$4 sm:$0xff]  }
 0x1ab   : > { %7683 = vst [vmem:[#allocation37_spill] sm:$0xff] %v6843_v56  ;;  %v2733_v20 = vpop.f32.mrf.mxu1  ;;  %3591 = vmatprep.subr.bf16.mxu1 %v5794_v14  ;;  %v6846_v11 = vadd.f32 %v2731_v41, %v2619_v55  ;;  %v2621_v15 = vadd.f32 %v2620_v18, %v6809_v26  ;;  %3304 = vmatprep.mubr.bf16.mxu0 %v6449_v3  ;;  %v5804_v55 = vld [vmem:[#allocation5 + $0x808] ss:$16 sps:$4 sm:$0xff]  }
 0x1ac   : > { %3417 = vmatprep.mubr.bf16.mxu1 %v6607_v28  ;;  %v2622_v7 = vpop.f32.mrf.mxu0  ;;  %v5801_v28 = vld [vmem:[#allocation5 + $0x608] ss:$16 sps:$4 sm:$0xff]  }
 0x1ad   : > { %v2735_v17 = vpop.f32.mrf.mxu1  ;;  %v6851_v38 = vadd.f32 %v2733_v20, %v2621_v15  ;;  %v2623_v33 = vadd.f32 %v2622_v7, %v6807_v1  ;;  %3479 = vmatpush1.bf16.msra.mxu0 %v5789_v32  ;;  %v5809_v32 = vld [vmem:[#allocation5 + $0x7ec] ss:$16 sps:$4 sm:$0xff]  }
 0x1ae   : > { %3592 = vmatpush1.bf16.msra.mxu1 %v5792_v53  ;;  %v2624_v14 = vpop.f32.mrf.mxu0  ;;  %3480 = vmatprep.subr.bf16.mxu0 %v5797_v63  ;;  %v5812_v53 = vld [vmem:[#allocation5 + $0x9ec] ss:$16 sps:$4 sm:$0xff]  }
 0x1af   : > { %v2737_v45 = vpop.f32.mrf.mxu1  ;;  %3593 = vmatprep.subr.bf16.mxu1 %v5800_v21  ;;  %v6854_v41 = vadd.f32 %v2735_v17, %v2623_v33  ;;  %v2625_v3 = vadd.f32 %v2624_v14, %v6809_v26 }
 0x1b0   : > { %v2628_v18 = vpop.f32.mrf.mxu0  ;;  %3305 = vmatmul.mubr.bf16.gmra.mxu0 %v6463_v16  ;;  %v5807_v16 = vld [vmem:[#allocation5 + $0x7e8] ss:$16 sps:$4 sm:$0xff]  }
 0x1b1   : > { %v2741_v56 = vpop.f32.mrf.mxu1  ;;  %3418 = vmatmul.mubr.bf16.gmra.mxu1 %v6621_v9  ;;  %v6859_v20 = vadd.f32 %v2737_v45, %v2625_v3  ;;  %v2629_v63 = vadd.f32 %v2628_v18, %v6807_v1  ;;  %3481 = vmatpush1.bf16.msra.mxu0 %v5795_v60  ;;  %v5810_v9 = vld [vmem:[#allocation5 + $0x9e8] ss:$16 sps:$4 sm:$0xff]   ;;  %v5815_v45 = vld [vmem:[#allocation5 + $0x7cc] ss:$16 sps:$4 sm:$0xff]  }
 0x1b2   : > { %3594 = vmatpush1.bf16.msra.mxu1 %v5798_v43  ;;  %v2630_v21 = vpop.f32.mrf.mxu0  ;;  %3482 = vmatprep.subr.bf16.mxu0 %v5803_v35  ;;  %v5818_v3 = vld [vmem:[#allocation5 + $0x9cc] ss:$16 sps:$4 sm:$0xff]   ;;  %v5816_v18 = vld [vmem:[#allocation5 + $0x9c8] ss:$16 sps:$4 sm:$0xff]  }
 0x1b3   : > { %v2743_v15 = vpop.f32.mrf.mxu1  ;;  %3595 = vmatprep.subr.bf16.mxu1 %v5806_v23  ;;  %v6862_v7 = vadd.f32 %v2741_v56, %v2629_v63  ;;  %v2631_v17 = vadd.f32 %v2630_v21, %v6809_v26  ;;  %3314 = vmatprep.mubr.bf16.mxu0 %v6469_v27 }
 0x1b4   : > { %3427 = vmatprep.mubr.bf16.mxu1 %v6627_v8  ;;  %v2632_v33 = vpop.f32.mrf.mxu0  ;;  %v5813_v8 = vld [vmem:[#allocation5 + $0x7c8] ss:$16 sps:$4 sm:$0xff]  }
 0x1b5   : > { %v2745_v14 = vpop.f32.mrf.mxu1  ;;  %v6867_v60 = vadd.f32 %v2743_v15, %v2631_v17  ;;  %v2633_v43 = vadd.f32 %v2632_v33, %v6807_v1  ;;  %3483 = vmatpush1.bf16.msra.mxu0 %v5801_v28  ;;  %v5821_v15 = vld [vmem:[#allocation5 + $0x7ac] ss:$16 sps:$4 sm:$0xff]  }
 0x1b6   : > { %3596 = vmatpush1.bf16.msra.mxu1 %v5804_v55  ;;  %v2634_v56 = vpop.f32.mrf.mxu0  ;;  %3484 = vmatprep.subr.bf16.mxu0 %v5809_v32 }
 0x1b7   : > { %v2747_v35 = vpop.f32.mrf.mxu1  ;;  %3597 = vmatprep.subr.bf16.mxu1 %v5812_v53  ;;  %v6870_v23 = vadd.f32 %v2745_v14, %v2633_v43  ;;  %v2635_v27 = vadd.f32 %v2634_v56, %v6809_v26  ;;  %v5824_v53 = vld [vmem:[#allocation5 + $0x9ac] ss:$16 sps:$4 sm:$0xff]  }
 0x1b8   : > { %v2638_v63 = vpop.f32.mrf.mxu0  ;;  %3315 = vmatmul.mubr.bf16.gmra.mxu0 %v6483_v42 }
 0x1b9   : > { %v2751_v21 = vpop.f32.mrf.mxu1  ;;  %3428 = vmatmul.mubr.bf16.gmra.mxu1 %v6641_v10  ;;  %v6875_v17 = vadd.f32 %v2747_v35, %v2635_v27  ;;  %v2639_v28 = vadd.f32 %v2638_v63, %v6807_v1  ;;  %3485 = vmatpush2.bf16.msra.mxu0 %v5807_v16  ;;  %v5827_v35 = vld [vmem:[#allocation5 + $0x78c] ss:$16 sps:$4 sm:$0xff]  }
 0x1ba   : > { %3598 = vmatpush2.bf16.msra.mxu1 %v5810_v9  ;;  %v2640_v55 = vpop.f32.mrf.mxu0  ;;  %3486 = vmatprep.subr.bf16.mxu0 %v5815_v45  ;;  %v5819_v9 = vld [vmem:[#allocation5 + $0x7a8] ss:$16 sps:$4 sm:$0xff]   ;;  %v5830_v27 = vld [vmem:[#allocation5 + $0x98c] ss:$16 sps:$4 sm:$0xff]  }
 0x1bb   : > { %v2753_v32 = vpop.f32.mrf.mxu1  ;;  %3599 = vmatprep.subr.bf16.mxu1 %v5818_v3  ;;  %v6878_v33 = vadd.f32 %v2751_v21, %v2639_v28  ;;  %v2641_v14 = vadd.f32 %v2640_v55, %v6809_v26  ;;  %3324 = vmatprep.mubr.bf16.mxu0 %v6489_v51  ;;  %v5822_v45 = vld [vmem:[#allocation5 + $0x9a8] ss:$16 sps:$4 sm:$0xff]  }
 0x1bc   : > { %3437 = vmatprep.mubr.bf16.mxu1 %v6647_v22  ;;  %v2642_v42 = vpop.f32.mrf.mxu0  ;;  %v5828_v28 = vld [vmem:[#allocation5 + $0x988] ss:$16 sps:$4 sm:$0xff]  }
 0x1bd   : > { %v2755_v10 = vpop.f32.mrf.mxu1  ;;  %v6883_v43 = vadd.f32 %v2753_v32, %v2641_v14  ;;  %v2643_v16 = vadd.f32 %v2642_v42, %v6807_v1  ;;  %3487 = vmatpush2.bf16.msra.mxu0 %v5813_v8  ;;  %v5836_v14 = vld [vmem:[#allocation5 + $0x96c] ss:$16 sps:$4 sm:$0xff]  }
 0x1be   : > { %3600 = vmatpush2.bf16.msra.mxu1 %v5816_v18  ;;  %v2644_v3 = vpop.f32.mrf.mxu0  ;;  %3488 = vmatprep.subr.bf16.mxu0 %v5821_v15  ;;  %v5825_v15 = vld [vmem:[#allocation5 + $0x788] ss:$16 sps:$4 sm:$0xff]  }
 0x1bf   : > { %v2757_v56 = vpop.f32.mrf.mxu1  ;;  %3601 = vmatprep.subr.bf16.mxu1 %v5824_v53  ;;  %v6886_v63 = vadd.f32 %v2755_v10, %v2643_v16  ;;  %v2645_v51 = vadd.f32 %v2644_v3, %v6809_v26  ;;  %v5833_v53 = vld [vmem:[#allocation5 + $0x76c] ss:$16 sps:$4 sm:$0xff]   ;;  %v5834_v3 = vld [vmem:[#allocation5 + $0x968] ss:$16 sps:$4 sm:$0xff]  }
 0x1c0   : > { %v2648_v22 = vpop.f32.mrf.mxu0  ;;  %3325 = vmatmul.mubr.bf16.gmra.mxu0 %v6503_v6 }
 0x1c1   : > { %v2761_v21 = vpop.f32.mrf.mxu1  ;;  %3438 = vmatmul.mubr.bf16.gmra.mxu1 %v6661_v58  ;;  %v6891_v8 = vadd.f32 %v2757_v56, %v2645_v51  ;;  %v2649_v18 = vadd.f32 %v2648_v22, %v6807_v1  ;;  %3489 = vmatpush2.bf16.msra.mxu0 %v5819_v9  ;;  %v5842_v51 = vld [vmem:[#allocation5 + $0x94c] ss:$16 sps:$4 sm:$0xff]  }
 0x1c2   : > { %3602 = vmatpush2.bf16.msra.mxu1 %v5822_v45  ;;  %v2650_v55 = vpop.f32.mrf.mxu0  ;;  %3490 = vmatprep.subr.bf16.mxu0 %v5827_v35  ;;  %v5831_v45 = vld [vmem:[#allocation5 + $0x768] ss:$16 sps:$4 sm:$0xff]  }
 0x1c3   : > { %v2763_v32 = vpop.f32.mrf.mxu1  ;;  %3603 = vmatprep.subr.bf16.mxu1 %v5830_v27  ;;  %v6894_v42 = vadd.f32 %v2761_v21, %v2649_v18  ;;  %v2651_v6 = vadd.f32 %v2650_v55, %v6809_v26  ;;  %3334 = vmatprep.mubr.bf16.mxu0 %v6509_v13  ;;  %v5839_v27 = vld [vmem:[#allocation5 + $0x74c] ss:$16 sps:$4 sm:$0xff]   ;;  %v5840_v55 = vld [vmem:[#allocation5 + $0x948] ss:$16 sps:$4 sm:$0xff]  }
 0x1c4   : > { %3447 = vmatprep.mubr.bf16.mxu1 %v6667_v19  ;;  %v2652_v58 = vpop.f32.mrf.mxu0 }
 0x1c5   : > { %v2765_v10 = vpop.f32.mrf.mxu1  ;;  %v6899_v16 = vadd.f32 %v2763_v32, %v2651_v6  ;;  %v2653_v9 = vadd.f32 %v2652_v58, %v6807_v1  ;;  %3491 = vmatpush2.bf16.msra.mxu0 %v5825_v15  ;;  %v5848_v6 = vld [vmem:[#allocation5 + $0x92c] ss:$16 sps:$4 sm:$0xff]  }
 0x1c6   : > { %3604 = vmatpush2.bf16.msra.mxu1 %v5828_v28  ;;  %v2654_v56 = vpop.f32.mrf.mxu0  ;;  %3492 = vmatprep.subr.bf16.mxu0 %v5833_v53  ;;  %v5837_v28 = vld [vmem:[#allocation5 + $0x748] ss:$16 sps:$4 sm:$0xff]  }
 0x1c7   : > { %v2767_v35 = vpop.f32.mrf.mxu1  ;;  %3605 = vmatprep.subr.bf16.mxu1 %v5836_v14  ;;  %v6902_v22 = vadd.f32 %v2765_v10, %v2653_v9  ;;  %v2655_v13 = vadd.f32 %v2654_v56, %v6809_v26  ;;  %v5845_v14 = vld [vmem:[#allocation5 + $0x72c] ss:$16 sps:$4 sm:$0xff]  }
 0x1c8   : > { %v2658_v19 = vpop.f32.mrf.mxu0  ;;  %3335 = vmatmul.mubr.bf16.gmra.mxu0 %v6523_v34  ;;  %v7686_v10 = vld [vmem:[#allocation18_spill] sm:$0xff] }
 0x1c9   : > { %7684 = vst [vmem:[#allocation38_spill] sm:$0xff] %v6902_v22  ;;  %v2771_v21 = vpop.f32.mrf.mxu1  ;;  %3448 = vmatmul.mubr.bf16.gmra.mxu1 %v6681_v0  ;;  %v6907_v18 = vadd.f32 %v2767_v35, %v2655_v13  ;;  %v2659_v15 = vadd.f32 %v2658_v19, %v6807_v1  ;;  %3493 = vmatpush2.bf16.msra.mxu0 %v5831_v45  ;;  %v7687_v0 = vld [vmem:[#allocation34_spill] sm:$0xff] }
 0x1ca   : > { %3606 = vmatpush2.bf16.msra.mxu1 %v5834_v3  ;;  %v2660_v32 = vpop.f32.mrf.mxu0  ;;  %3494 = vmatprep.subr.bf16.mxu0 %v5839_v27  ;;  %v5843_v35 = vld [vmem:[#allocation5 + $0x728] ss:$16 sps:$4 sm:$0xff]   ;;  %v5851_v19 = vld [vmem:[#allocation5 + $0x70c] ss:$16 sps:$4 sm:$0xff]  }
 0x1cb   : > { %7685 = vst [vmem:[#allocation39_spill] sm:$0xff] %v6907_v18  ;;  %v2773_v53 = vpop.f32.mrf.mxu1  ;;  %3607 = vmatprep.subr.bf16.mxu1 %v5842_v51  ;;  %v6910_v58 = vadd.f32 %v2771_v21, %v2659_v15  ;;  %v2661_v34 = vadd.f32 %v2660_v32, %v6809_v26  ;;  %3344 = vmatprep.mubr.bf16.mxu0 %v7686_v10  ;;  %v5846_v27 = vld [vmem:[#allocation5 + $0x928] ss:$16 sps:$4 sm:$0xff]   ;;  %v5854_v21 = vld [vmem:[#allocation5 + $0x90c] ss:$16 sps:$4 sm:$0xff]  }
 0x1cc   : > { %3457 = vmatprep.mubr.bf16.mxu1 %v7687_v0  ;;  %v2662_v9 = vpop.f32.mrf.mxu0 }
 0x1cd   : > { %v2775_v56 = vpop.f32.mrf.mxu1  ;;  %v6915_v45 = vadd.f32 %v2773_v53, %v2661_v34  ;;  %v2663_v3 = vadd.f32 %v2662_v9, %v6807_v1  ;;  %3495 = vmatpush2.bf16.msra.mxu0 %v5837_v28  ;;  %v7689_v53 = vld [vmem:[#allocation19_spill] sm:$0xff] }
 0x1ce   : > { %3608 = vmatpush2.bf16.msra.mxu1 %v5840_v55  ;;  %v2664_v51 = vpop.f32.mrf.mxu0  ;;  %3496 = vmatprep.subr.bf16.mxu0 %v5845_v14  ;;  %v5849_v14 = vld [vmem:[#allocation5 + $0x708] ss:$16 sps:$4 sm:$0xff]  }
 0x1cf   : > { %v2777_v13 = vpop.f32.mrf.mxu1  ;;  %3609 = vmatprep.subr.bf16.mxu1 %v5848_v6  ;;  %v6918_v15 = vadd.f32 %v2775_v56, %v2663_v3  ;;  %v2665_v32 = vadd.f32 %v2664_v51, %v6809_v26  ;;  %v5852_v6 = vld [vmem:[#allocation5 + $0x908] ss:$16 sps:$4 sm:$0xff]   ;;  %v5855_v56 = vld [vmem:[#allocation8 + $0x78] sm:$0xff]  }
 0x1d0   : > { %v2668_v10 = vpop.f32.mrf.mxu0  ;;  %3345 = vmatmul.mubr.bf16.gmra.mxu0 %v7689_v53  ;;  %v7691_v53 = vld [vmem:[#allocation20_spill] sm:$0xff] }
 0x1d1   : > { %7688 = vst [vmem:[#allocation18_spill] sm:$0xff] %v6918_v15  ;;  %v2781_v0 = vpop.f32.mrf.mxu1  ;;  %3458 = vmatmul.mubr.bf16.gmra.mxu1 %v6699_v30  ;;  %v6923_v28 = vadd.f32 %v2777_v13, %v2665_v32  ;;  %v2669_v55 = vadd.f32 %v2668_v10, %v6807_v1  ;;  %3497 = vmatpush2.bf16.msra.mxu0 %v5843_v35 }
 0x1d2   : > { %3610 = vmatpush2.bf16.msra.mxu1 %v5846_v27  ;;  %v2670_v34 = vpop.f32.mrf.mxu0  ;;  %3498 = vmatprep.subr.bf16.mxu0 %v5851_v19 }
 0x1d3   : > { %7690 = vst [vmem:[#allocation34_spill] sm:$0xff] %v6923_v28  ;;  %v2783_v9 = vpop.f32.mrf.mxu1  ;;  %3611 = vmatprep.subr.bf16.mxu1 %v5854_v21  ;;  %v6926_v3 = vadd.f32 %v2781_v0, %v2669_v55  ;;  %v2671_v51 = vadd.f32 %v2670_v34, %v6809_v26  ;;  %3500 = vmatprep.mubr.bf16.mxu0 %v7691_v53  ;;  %v5856_v21 = vld [vmem:[#allocation8 + $0x38] sm:$0xff]   ;;  %v5857_v55 = vld [vmem:[#allocation8 + $0x70] sm:$0xff]  }
 0x1d4   : > { %3613 = vmatprep.mubr.bf16.mxu1 %v6705_v47  ;;  %v2672_v30 = vpop.f32.mrf.mxu0  ;;  %v7693_v47 = vld [vmem:[#allocation21_spill] sm:$0xff]  ;;  %v5874_v28 = vld [vmem:[#allocation8 + $0xb0] sm:$0xff]  }
 0x1d5   : > { %v2785_v13 = vpop.f32.mrf.mxu1  ;;  %v6931_v32 = vadd.f32 %v2783_v9, %v2671_v51  ;;  %v2673_v35 = vadd.f32 %v2672_v30, %v6807_v1  ;;  %3499 = vmatpush2.bf16.msra.mxu0 %v5849_v14  ;;  %v7695_v14 = vld [vmem:[#allocation22_spill] sm:$0xff]  ;;  %v5858_v51 = vld [vmem:[#allocation8 + $0x30] sm:$0xff]  }
 0x1d6   : > { %3612 = vmatpush2.bf16.msra.mxu1 %v5852_v6  ;;  %v2674_v27 = vpop.f32.mrf.mxu0  ;;  %5090 = vmatprep.subr.bf16.mxu0 %v5855_v56 }
 0x1d7   : > { %v2787_v19 = vpop.f32.mrf.mxu1  ;;  %v6934_v10 = vadd.f32 %v2785_v13, %v2673_v35  ;;  %v2675_v0 = vadd.f32 %v2674_v27, %v6809_v26  ;;  %v5859_v13 = vld [vmem:[#allocation8 + $0x68] sm:$0xff]  }
 0x1d8   : > { %v2824_v34 = vpop.f32.mrf.mxu0  ;;  %3501 = vmatmul.mubr.bf16.vlgmr.msra.gmra.mxu0 %v7693_v47 }
 0x1d9   : > { %7692 = vst [vmem:[#allocation19_spill] sm:$0xff] %v6934_v10  ;;  %v2937_v53 = vpop.f32.mrf.mxu1  ;;  %3614 = vmatmul.mubr.bf16.vlgmr.msra.gmra.mxu1 %v6713_v57  ;;  %v6939_v9 = vadd.f32 %v2787_v19, %v2675_v0  ;;  %v2825_v1 = vadd.f32 %v2824_v34, %v6814_v46  ;;  %3510 = vmatprep.mubr.bf16.mxu0 %v7695_v14  ;;  %v5862_v14 = vld [vmem:[#allocation8 + $0x20] sm:$0xff]  }
 0x1da   : > { %3623 = vmatprep.mubr.bf16.mxu1 %v6717_v49  ;;  %v2826_v6 = vpop.f32.mrf.mxu0  ;;  %5091 = vmatpush3.bf16.msra.mxu0 %v5856_v21  ;;  %v5860_v49 = vld [vmem:[#allocation8 + $0x28] sm:$0xff]   ;;  %v5861_v21 = vld [vmem:[#allocation8 + $0x60] sm:$0xff]  }
 0x1db   : > { %7694 = vst [vmem:[#allocation20_spill] sm:$0xff] %v6939_v9  ;;  %v2939_v56 = vpop.f32.mrf.mxu1  ;;  %v6944_v26 = vadd.f32 %v2937_v53, %v2825_v1  ;;  %v2827_v30 = vadd.f32 %v2826_v6, %v6819_v50  ;;  %5092 = vmatprep.subr.bf16.mxu0 %v5857_v55  ;;  %v7696_v53 = vld [vmem:[#allocation23_spill] sm:$0xff]  ;;  %v7697_v55 = vld [vmem:[#allocation24_spill] sm:$0xff] }
 0x1dc   : > { %v6947_v35 = vpop.f32.mrf.mxu0  ;;  %v5871_v9 = vld [vmem:[#allocation8 + $0xf8] sm:$0xff]  }
 0x1dd   : > { %v6949_v57 = vpop.f32.mrf.mxu1  ;;  %v6951_v27 = vadd.f32 %v2939_v56, %v2827_v30  ;;  %5154 = vmatprep.subr.bf16.mxu1 %v5871_v9 }
 0x1de   : > { %v6953_v46 = vpop.f32.mrf.mxu0  ;;  %5093 = vmatpush3.bf16.msra.mxu0 %v5858_v51  ;;  %v5863_v51 = vld [vmem:[#allocation8 + $0x58] sm:$0xff]  }
 0x1df   : > { %v6955_v19 = vpop.f32.mrf.mxu1  ;;  %5094 = vmatprep.subr.bf16.mxu0 %v5859_v13 }
 0x1e0   : > { %v2834_v0 = vpop.f32.mrf.mxu0  ;;  %3511 = vmatmul.mubr.bf16.gmra.mxu0 %v7696_v53 }
 0x1e1   : > { %v2947_v34 = vpop.f32.mrf.mxu1  ;;  %3624 = vmatmul.mubr.bf16.gmra.mxu1 %v6725_v52  ;;  %v2835_v50 = vadd.f32 %v2834_v0, %v6830_v39  ;;  %3520 = vmatprep.mubr.bf16.mxu0 %v7697_v55 }
 0x1e2   : > { %3633 = vmatprep.mubr.bf16.mxu1 %v6729_v61  ;;  %v2836_v47 = vpop.f32.mrf.mxu0  ;;  %5095 = vmatpush3.bf16.msra.mxu0 %v5860_v49  ;;  %v5864_v61 = vld [vmem:[#allocation8 + $0x18] sm:$0xff]   ;;  %v5865_v49 = vld [vmem:[#allocation8 + $0x50] sm:$0xff]  }
 0x1e3   : > { %v2949_v1 = vpop.f32.mrf.mxu1  ;;  %v6962_v6 = vadd.f32 %v2947_v34, %v2835_v50  ;;  %v2837_v56 = vadd.f32 %v2836_v47, %v6835_v12  ;;  %5096 = vmatprep.subr.bf16.mxu0 %v5861_v21  ;;  %v7698_v50 = vld [vmem:[#allocation25_spill] sm:$0xff]  ;;  %v7699_v21 = vld [vmem:[#allocation26_spill] sm:$0xff] }
 0x1e4   : > { %v6965_v30 = vpop.f32.mrf.mxu0 }
 0x1e5   : > { %v6967_v13 = vpop.f32.mrf.mxu1  ;;  %v6969_v52 = vadd.f32 %v2949_v1, %v2837_v56  ;;  %v5866_v1 = vld [vmem:[#allocation8 + $0x10] sm:$0xff]  }
 0x1e6   : > { %v6971_v39 = vpop.f32.mrf.mxu0  ;;  %5097 = vmatpush3.bf16.msra.mxu0 %v5862_v14 }
 0x1e7   : > { %v6973_v0 = vpop.f32.mrf.mxu1  ;;  %5098 = vmatprep.subr.bf16.mxu0 %v5863_v51  ;;  %v5867_v51 = vld [vmem:[#allocation8 + $0x48] sm:$0xff]  }
 0x1e8   : > { %v2844_v34 = vpop.f32.mrf.mxu0  ;;  %3521 = vmatmul.mubr.bf16.gmra.mxu0 %v7698_v50  ;;  %v5872_v50 = vld [vmem:[#allocation8 + $0xb8] sm:$0xff]  }
 0x1e9   : > { %v2957_v53 = vpop.f32.mrf.mxu1  ;;  %3634 = vmatmul.mubr.bf16.gmra.mxu1 %v6737_v37  ;;  %v2845_v12 = vadd.f32 %v2844_v34, %v6846_v11  ;;  %3530 = vmatprep.mubr.bf16.mxu0 %v7699_v21 }
 0x1ea   : > { %3643 = vmatprep.mubr.bf16.mxu1 %v6741_v40  ;;  %v2846_v55 = vpop.f32.mrf.mxu0  ;;  %5099 = vmatpush3.bf16.msra.mxu0 %v5864_v61  ;;  %v5868_v61 = vld [vmem:[#allocation8 + $0x8] sm:$0xff]  }
 0x1eb   : > { %v2959_v47 = vpop.f32.mrf.mxu1  ;;  %v6980_v14 = vadd.f32 %v2957_v53, %v2845_v12  ;;  %v2847_v56 = vadd.f32 %v2846_v55, %v6851_v38  ;;  %5100 = vmatprep.subr.bf16.mxu0 %v5865_v49  ;;  %5155 = vmatpush3.bf16.msra.mxu1 %v5872_v50  ;;  %v5869_v38 = vld [vmem:[#allocation8 + $0x40] sm:$0xff]   ;;  %v7700_v12 = vld [vmem:[#allocation27_spill] sm:$0xff]  ;;  %v7701_v55 = vld [vmem:[#allocation28_spill] sm:$0xff] }
 0x1ec   : > { %v6983_v10 = vpop.f32.mrf.mxu0  ;;  %v5873_v50 = vld [vmem:[#allocation8 + $0xf0] sm:$0xff]  }
 0x1ed   : > { %v6985_v37 = vpop.f32.mrf.mxu1  ;;  %v6987_v11 = vadd.f32 %v2959_v47, %v2847_v56  ;;  %5156 = vmatprep.subr.bf16.mxu1 %v5873_v50 }
 0x1ee   : > { %v6989_v40 = vpop.f32.mrf.mxu0  ;;  %5101 = vmatpush3.bf16.msra.mxu0 %v5866_v1  ;;  %v5870_v1 = vld [vmem:[#allocation8] sm:$0xff]  }
 0x1ef   : > { %v6991_v34 = vpop.f32.mrf.mxu1  ;;  %5102 = vmatprep.subr.bf16.mxu0 %v5867_v51  ;;  %5157 = vmatpush3.bf16.msra.mxu1 %v5874_v28  ;;  %v5876_v28 = vld [vmem:[#allocation8 + $0xa8] sm:$0xff]  }
 0x1f0   : > { %v2854_v49 = vpop.f32.mrf.mxu0  ;;  %3531 = vmatmul.mubr.bf16.gmra.mxu0 %v7700_v12 }
 0x1f1   : > { %v2967_v53 = vpop.f32.mrf.mxu1  ;;  %3644 = vmatmul.mubr.bf16.gmra.mxu1 %v6749_v48  ;;  %v2855_v21 = vadd.f32 %v2854_v49, %v6862_v7  ;;  %3540 = vmatprep.mubr.bf16.mxu0 %v7701_v55 }
 0x1f2   : > { %3653 = vmatprep.mubr.bf16.mxu1 %v6753_v4  ;;  %v2856_v9 = vpop.f32.mrf.mxu0  ;;  %5103 = vmatpush3.bf16.msra.mxu0 %v5868_v61 }
 0x1f3   : > { %v2969_v47 = vpop.f32.mrf.mxu1  ;;  %v6998_v56 = vadd.f32 %v2967_v53, %v2855_v21  ;;  %v2857_v51 = vadd.f32 %v2856_v9, %v6867_v60  ;;  %5104 = vmatprep.subr.bf16.mxu0 %v5869_v38  ;;  %v7702_v21 = vld [vmem:[#allocation29_spill] sm:$0xff]  ;;  %v7703_v38 = vld [vmem:[#allocation30_spill] sm:$0xff] }
 0x1f4   : > { %v7001_v12 = vpop.f32.mrf.mxu0 }
 0x1f5   : > { %v7003_v48 = vpop.f32.mrf.mxu1  ;;  %v7005_v7 = vadd.f32 %v2969_v47, %v2857_v51 }
 0x1f6   : > { %v7007_v49 = vpop.f32.mrf.mxu0  ;;  %5105 = vmatpush3.bf16.msra.mxu0 %v5870_v1  ;;  %v5875_v1 = vld [vmem:[#allocation8 + $0xe8] sm:$0xff]  }
 0x1f7   : > { %v7009_v4 = vpop.f32.mrf.mxu1  ;;  %5158 = vmatprep.subr.bf16.mxu1 %v5875_v1  ;;  %v5877_v1 = vld [vmem:[#allocation8 + $0xe0] sm:$0xff]  }
 0x1f8   : > { %v2864_v61 = vpop.f32.mrf.mxu0  ;;  %3541 = vmatmul.mubr.bf16.gmra.mxu0 %v7702_v21  ;;  %5159 = vmatpush3.bf16.msra.mxu1 %v5876_v28  ;;  %v5878_v28 = vld [vmem:[#allocation8 + $0xa0] sm:$0xff]  }
 0x1f9   : > { %v2977_v53 = vpop.f32.mrf.mxu1  ;;  %3654 = vmatmul.mubr.bf16.gmra.mxu1 %v6761_v24  ;;  %v2865_v60 = vadd.f32 %v2864_v61, %v6878_v33  ;;  %3550 = vmatprep.mubr.bf16.mxu0 %v7703_v38 }
 0x1fa   : > { %3663 = vmatprep.mubr.bf16.mxu1 %v6765_v62  ;;  %v2866_v55 = vpop.f32.mrf.mxu0  ;;  %5160 = vmatprep.subr.bf16.mxu1 %v5877_v1  ;;  %v5880_v1 = vld [vmem:[#allocation8 + $0x98] sm:$0xff]  }
 0x1fb   : > { %v2979_v9 = vpop.f32.mrf.mxu1  ;;  %v7016_v47 = vadd.f32 %v2977_v53, %v2865_v60  ;;  %v2867_v51 = vadd.f32 %v2866_v55, %v6883_v43  ;;  %v7704_v53 = vld [vmem:[#allocation31_spill] sm:$0xff]  ;;  %v7705_v60 = vld [vmem:[#allocation32_spill] sm:$0xff] }
 0x1fc   : > { %v7019_v50 = vpop.f32.mrf.mxu0  ;;  %5161 = vmatpush3.bf16.msra.mxu1 %v5878_v28 }
 0x1fd   : > { %v7021_v15 = vpop.f32.mrf.mxu1  ;;  %v7023_v21 = vadd.f32 %v2979_v9, %v2867_v51 }
 0x1fe   : > { %v7025_v24 = vpop.f32.mrf.mxu0 }
 0x1ff   : > { %v7027_v33 = vpop.f32.mrf.mxu1 }
 0x200   : > { %v2874_v62 = vpop.f32.mrf.mxu0  ;;  %3551 = vmatmul.mubr.bf16.gmra.mxu0 %v7704_v53 }
 0x201   : > { %v2987_v61 = vpop.f32.mrf.mxu1  ;;  %3664 = vmatmul.mubr.bf16.gmra.mxu1 %v6774_v44  ;;  %v2875_v43 = vadd.f32 %v2874_v62, %v6894_v42  ;;  %3560 = vmatprep.mubr.bf16.mxu0 %v7705_v60 }
 0x202   : > { %3673 = vmatprep.mubr.bf16.mxu1 %v6777_v59  ;;  %v2876_v38 = vpop.f32.mrf.mxu0 }
 0x203   : > { %v2989_v55 = vpop.f32.mrf.mxu1  ;;  %v7034_v9 = vadd.f32 %v2987_v61, %v2875_v43  ;;  %v2877_v51 = vadd.f32 %v2876_v38, %v6899_v16  ;;  %v7707_v61 = vld [vmem:[#allocation33_spill] sm:$0xff] }
 0x204   : > { %v7037_v18 = vpop.f32.mrf.mxu0 }
 0x205   : > { %v7039_v22 = vpop.f32.mrf.mxu1  ;;  %v7041_v53 = vadd.f32 %v2989_v55, %v2877_v51  ;;  %v5879_v51 = vld [vmem:[#allocation8 + $0xd8] sm:$0xff]  }
 0x206   : > { %v7043_v44 = vpop.f32.mrf.mxu0  ;;  %5162 = vmatprep.subr.bf16.mxu1 %v5879_v51 }
 0x207   : > { %7706 = vst [vmem:[#allocation21_spill] sm:$0xff] %v7041_v53  ;;  %v7045_v42 = vpop.f32.mrf.mxu1  ;;  %5163 = vmatpush3.bf16.msra.mxu1 %v5880_v1  ;;  %v5882_v1 = vld [vmem:[#allocation8 + $0x90] sm:$0xff]  }
 0x208   : > { %v2884_v59 = vpop.f32.mrf.mxu0  ;;  %3561 = vmatmul.mubr.bf16.gmra.mxu0 %v7707_v61 }
 0x209   : > { %v2997_v62 = vpop.f32.mrf.mxu1  ;;  %3674 = vmatmul.mubr.bf16.gmra.mxu1 %v6786_v2  ;;  %v2885_v16 = vadd.f32 %v2884_v59, %v6910_v58  ;;  %3570 = vmatprep.mubr.bf16.mxu0 %v6689_v29  ;;  %v7712_v59 = vld [vmem:[#allocation35_spill] sm:$0xff] }
 0x20a   : > { %3683 = vmatprep.mubr.bf16.mxu1 %v6789_v54  ;;  %v2886_v43 = vpop.f32.mrf.mxu0 }
 0x20b   : > { %v2999_v60 = vpop.f32.mrf.mxu1  ;;  %v7052_v38 = vadd.f32 %v2997_v62, %v2885_v16  ;;  %v2887_v55 = vadd.f32 %v2886_v43, %v6915_v45  ;;  %v7713_v62 = vld [vmem:[#allocation36_spill] sm:$0xff] }
 0x20c   : > { %v7055_v28 = vpop.f32.mrf.mxu0  ;;  %v954_v16 = vsub.s32 2, %v7713_v62  ;;  %v958_v51 = vsub.s32 3, %v7713_v62 }
 0x20d   : > { %7708 = vst [vmem:[#allocation22_spill] sm:$0xff] %v7052_v38  ;;  %v7057_v53 = vpop.f32.mrf.mxu1  ;;  %v7059_v61 = vadd.f32 %v2999_v60, %v2887_v55 }
 0x20e   : > { %7709 = vst [vmem:[#allocation23_spill] sm:$0xff] %v7057_v53  ;;  %v7061_v2 = vpop.f32.mrf.mxu0 }
 0x20f   : > { %7710 = vst [vmem:[#allocation24_spill] sm:$0xff] %v7059_v61  ;;  %v7063_v29 = vpop.f32.mrf.mxu1  ;;  %v5881_v61 = vld [vmem:[#allocation8 + $0xd0] sm:$0xff]  }
 0x210   : > { %7711 = vst [vmem:[#allocation25_spill] sm:$0xff] %v7063_v29  ;;  %v2894_v54 = vpop.f32.mrf.mxu0  ;;  %3571 = vmatmul.mubr.bf16.gmra.mxu0 %v6701_v36  ;;  %5164 = vmatprep.subr.bf16.mxu1 %v5881_v61 }
 0x211   : > { %v3007_v58 = vpop.f32.mrf.mxu1  ;;  %3684 = vmatmul.mubr.bf16.gmra.mxu1 %v7712_v59  ;;  %v2895_v45 = vadd.f32 %v2894_v54, %v6926_v3  ;;  %v5887_v59 = vld [vmem:[#allocation7] sm:$0xf] }
 0x212   : > { %v2896_v43 = vpop.f32.mrf.mxu0  ;;  %v7079_v3 = vrot.slane %v5887_v59, %v954_v16  ;;  %5165 = vmatpush3.bf16.msra.mxu1 %v5882_v1 }
 0x213   : > { %v3009_v38 = vpop.f32.mrf.mxu1  ;;  %v7069_v60 = vadd.f32 %v3007_v58, %v2895_v45  ;;  %v2897_v55 = vadd.f32 %v2896_v43, %v6931_v32  ;;  %v2829_v32 = vadd.f32 %v6947_v35, %v6822_v5  ;;  %v7087_v45 = vrot.slane %v5887_v59, %v958_v51 }
 0x214   : > { %v7073_v29 = vpop.f32.mrf.mxu0 }
 0x215   : > { %7714 = vst [vmem:[#allocation26_spill] sm:$0xff] %v7069_v60  ;;  %v7075_v53 = vpop.f32.mrf.mxu1  ;;  %v7077_v36 = vadd.f32 %v3009_v38, %v2897_v55  ;;  %v2831_v38 = vadd.f32 %v6953_v46, %v6827_v31  ;;  %v5883_v46 = vld [vmem:[#allocation8 + $0xc8] sm:$0xff]  }
 0x216   : > { %7715 = vst [vmem:[#allocation27_spill] sm:$0xff] %v7075_v53  ;;  %v7081_v54 = vpop.f32.mrf.mxu0  ;;  %5166 = vmatprep.subr.bf16.mxu1 %v5883_v46 }
 0x217   : > { %7716 = vst [vmem:[#allocation28_spill] sm:$0xff] %v7077_v36  ;;  %v7083_v58 = vpop.f32.mrf.mxu1  ;;  %v2942_v36 = vadd.f32 %v6949_v57, %v2829_v32  ;;  %v2944_v51 = vadd.f32 %v6955_v19, %v2831_v38 }
 0x218   : > { %7717 = vst [vmem:[#allocation29_spill] sm:$0xff] %v7083_v58  ;;  %v3050_v62 = vpop.f32.mrf.mxu0 }
 0x219   : > { %v3163_v43 = vpop.f32.mrf.mxu1  ;;  %v3051_v58 = vadd.f32 %v3050_v62, %v6944_v26  ;;  %v2839_v26 = vadd.f32 %v6965_v30, %v6838_v25 }
 0x21a   : > { %v7092_v55 = vadd.f32 %v3163_v43, %v7079_v3  ;;  %v3052_v16 = vpop.f32.mrf.mxu0  ;;  %v5884_v43 = vld [vmem:[#allocation8 + $0x88] sm:$0xff]  }
 0x21b   : > { %v3165_v61 = vpop.f32.mrf.mxu1  ;;  %v3053_v59 = vadd.f32 %v3052_v16, %v6951_v27  ;;  %v3694_v57 = vmax.f32 %v3051_v58, 0.0  ;;  %5167 = vmatpush3.bf16.msra.mxu1 %v5884_v43  ;;  %v2952_v25 = vadd.f32 %v6967_v13, %v2839_v26  ;;  %v5886_v58 = vld [vmem:[#allocation8 + $0x80] sm:$0xff]  }
 0x21c   : > { %7718 = vst [vmem:[#allocation30_spill] sm:$0xff] %v7092_v55  ;;  %v7097_v1 = vadd.f32 %v3165_v61, %v7087_v45  ;;  %v3054_v5 = vpop.f32.mrf.mxu0  ;;  %v7722_v61 = vld [vmem:[#allocation37_spill] sm:$0xff] }
 0x21d   : > { %v3167_v35 = vpop.f32.mrf.mxu1  ;;  %v3055_v60 = vadd.f32 %v3054_v5, %v2942_v36  ;;  %v2841_v19 = vadd.f32 %v6971_v39, %v7722_v61  ;;  %v3695_v38 = vmax.f32 %v3053_v59, 0.0 }
 0x21e   : > { %7719 = vst [vmem:[#allocation31_spill] sm:$0xff] %v7097_v1  ;;  %v7102_v31 = vadd.f32 %v3167_v35, %v7079_v3  ;;  %v3056_v55 = vpop.f32.mrf.mxu0  ;;  %v5885_v1 = vld [vmem:[#allocation8 + $0xc0] sm:$0xff]  }
 0x21f   : > { %v7104_v53 = vpop.f32.mrf.mxu1  ;;  %v3698_v32 = vmax.f32 %v3055_v60, 0.0  ;;  %v3057_v62 = vadd.f32 %v3056_v55, %v2944_v51  ;;  %v2954_v55 = vadd.f32 %v6973_v0, %v2841_v19  ;;  %5168 = vmatprep.subr.bf16.mxu1 %v5885_v1  ;;  %v2851_v1 = vadd.f32 %v6989_v40, %v6859_v20 }
 0x220   : > { %7720 = vst [vmem:[#allocation32_spill] sm:$0xff] %v7102_v31  ;;  %7721 = vst [vmem:[#allocation33_spill] sm:$0xff] %v7104_v53  ;;  %v3060_v27 = vpop.f32.mrf.mxu0  ;;  %5169 = vmatpush3.bf16.msra.mxu1 %v5886_v58 }
 0x221   : > { %v3173_v36 = vpop.f32.mrf.mxu1  ;;  %v3758_v16 = vpack.c.bf16 %v3698_v32, %v3694_v57  ;;  %v3699_v5 = vmax.f32 %v3057_v62, 0.0  ;;  %v3061_v30 = vadd.f32 %v3060_v27, %v6962_v6  ;;  %v2964_v40 = vadd.f32 %v6991_v34, %v2851_v1 }
 0x222   : > { %v7111_v35 = vadd.f32 %v3173_v36, %v7079_v3  ;;  %v3062_v31 = vpop.f32.mrf.mxu0  ;;  %v2861_v34 = vadd.f32 %v7007_v49, %v6875_v17 }
 0x223   : > { %v3175_v53 = vpop.f32.mrf.mxu1  ;;  %v3759_v39 = vpack.c.bf16 %v3699_v5, %v3695_v38  ;;  %v3063_v46 = vadd.f32 %v3062_v31, %v6969_v52  ;;  %v3702_v26 = vmax.f32 %v3061_v30, 0.0 }
 0x224   : > { %v7116_v60 = vadd.f32 %v3175_v53, %v7087_v45  ;;  %v3064_v51 = vpop.f32.mrf.mxu0  ;;  %v2849_v53 = vadd.f32 %v6983_v10, %v6854_v41  ;;  %v2974_v49 = vadd.f32 %v7009_v4, %v2861_v34  ;;  %v2871_v4 = vadd.f32 %v7025_v24, %v6891_v8 }
 0x225   : > { %v3177_v59 = vpop.f32.mrf.mxu1  ;;  %v3065_v43 = vadd.f32 %v3064_v51, %v2952_v25  ;;  %4085 = vmatprep.mubr.bf16.mxu0 %v3759_v39  ;;  %v3703_v62 = vmax.f32 %v3063_v46, 0.0 }
 0x226   : > { %v7121_v57 = vadd.f32 %v3177_v59, %v7079_v3  ;;  %v3066_v13 = vpop.f32.mrf.mxu0  ;;  %4086 = vmatmul.mubr.bf16.vlgmr.msra.gmra.mxu0 %v3758_v16  ;;  %v2962_v16 = vadd.f32 %v6985_v37, %v2849_v53  ;;  %v2984_v24 = vadd.f32 %v7027_v33, %v2871_v4  ;;  %v7724_v33 = vld [vmem:[#allocation39_spill] sm:$0xff] }
 0x227   : > { %v7123_v6 = vpop.f32.mrf.mxu1  ;;  %v3706_v0 = vmax.f32 %v3065_v43, 0.0  ;;  %v3067_v32 = vadd.f32 %v3066_v13, %v2954_v55 }
 0x228   : > { %v3070_v52 = vpop.f32.mrf.mxu0 }
 0x229   : > { %v3183_v31 = vpop.f32.mrf.mxu1  ;;  %v3762_v61 = vpack.c.bf16 %v3706_v0, %v3702_v26  ;;  %v3707_v19 = vmax.f32 %v3067_v32, 0.0  ;;  %v3071_v41 = vadd.f32 %v3070_v52, %v6980_v14  ;;  %v2859_v14 = vadd.f32 %v7001_v12, %v6870_v23 }
 0x22a   : > { %v7130_v27 = vadd.f32 %v3183_v31, %v7079_v3  ;;  %v3072_v36 = vpop.f32.mrf.mxu0 }
 0x22b   : > { %v3185_v38 = vpop.f32.mrf.mxu1  ;;  %v3763_v5 = vpack.c.bf16 %v3707_v19, %v3703_v62  ;;  %v3073_v30 = vadd.f32 %v3072_v36, %v6987_v11  ;;  %v3710_v37 = vmax.f32 %v3071_v41, 0.0  ;;  %v2972_v52 = vadd.f32 %v7003_v48, %v2859_v14 }
 0x22c   : > { %v7135_v10 = vadd.f32 %v3185_v38, %v7087_v45  ;;  %v3074_v25 = vpop.f32.mrf.mxu0 }
 0x22d   : > { %v3187_v20 = vpop.f32.mrf.mxu1  ;;  %v3075_v39 = vadd.f32 %v3074_v25, %v2962_v16  ;;  %4093 = vmatprep.mubr.bf16.mxu0 %v3763_v5  ;;  %v3711_v13 = vmax.f32 %v3073_v30, 0.0 }
 0x22e   : > { %v7140_v58 = vadd.f32 %v3187_v20, %v7079_v3  ;;  %v3076_v55 = vpop.f32.mrf.mxu0  ;;  %4094 = vmatmul.mubr.bf16.gmra.mxu0 %v3762_v61 }
 0x22f   : > { %v7142_v51 = vpop.f32.mrf.mxu1  ;;  %v3714_v59 = vmax.f32 %v3075_v39, 0.0  ;;  %v3077_v46 = vadd.f32 %v3076_v55, %v2964_v40 }
 0x230   : > { %v3080_v43 = vpop.f32.mrf.mxu0 }
 0x231   : > { %v3193_v11 = vpop.f32.mrf.mxu1  ;;  %v3766_v53 = vpack.c.bf16 %v3714_v59, %v3710_v37  ;;  %v3715_v26 = vmax.f32 %v3077_v46, 0.0  ;;  %v3081_v23 = vadd.f32 %v3080_v43, %v6998_v56  ;;  %v2869_v56 = vadd.f32 %v7019_v50, %v6886_v63 }
 0x232   : > { %v7149_v0 = vadd.f32 %v3193_v11, %v7079_v3  ;;  %v3082_v32 = vpop.f32.mrf.mxu0 }
 0x233   : > { %v3195_v1 = vpop.f32.mrf.mxu1  ;;  %v3767_v31 = vpack.c.bf16 %v3715_v26, %v3711_v13  ;;  %v3083_v61 = vadd.f32 %v3082_v32, %v7005_v7  ;;  %v3718_v48 = vmax.f32 %v3081_v23, 0.0  ;;  %v2982_v37 = vadd.f32 %v7021_v15, %v2869_v56  ;;  %v7723_v13 = vld [vmem:[#allocation38_spill] sm:$0xff] }
 0x234   : > { %v7154_v12 = vadd.f32 %v3195_v1, %v7087_v45  ;;  %v3084_v62 = vpop.f32.mrf.mxu0  ;;  %v2879_v15 = vadd.f32 %v7037_v18, %v7723_v13 }
 0x235   : > { %v3197_v17 = vpop.f32.mrf.mxu1  ;;  %v3085_v19 = vadd.f32 %v3084_v62, %v2972_v52  ;;  %4101 = vmatprep.mubr.bf16.mxu0 %v3767_v31  ;;  %v3719_v20 = vmax.f32 %v3083_v61, 0.0 }
 0x236   : > { %v7159_v36 = vadd.f32 %v3197_v17, %v7079_v3  ;;  %v3086_v38 = vpop.f32.mrf.mxu0  ;;  %4102 = vmatmul.mubr.bf16.gmra.mxu0 %v3766_v53 }
 0x237   : > { %v7161_v16 = vpop.f32.mrf.mxu1  ;;  %v3722_v41 = vmax.f32 %v3085_v19, 0.0  ;;  %v3087_v5 = vadd.f32 %v3086_v38, %v2974_v49  ;;  %v2992_v38 = vadd.f32 %v7039_v22, %v2879_v15 }
 0x238   : > { %v3090_v25 = vpop.f32.mrf.mxu0 }
 0x239   : > { %v3203_v7 = vpop.f32.mrf.mxu1  ;;  %v3770_v40 = vpack.c.bf16 %v3722_v41, %v3718_v48  ;;  %v3723_v30 = vmax.f32 %v3087_v5, 0.0  ;;  %v3091_v63 = vadd.f32 %v3090_v25, %v7016_v47  ;;  %v7725_v25 = vld [vmem:[#allocation21_spill] sm:$0xff] }
 0x23a   : > { %v7168_v39 = vadd.f32 %v3203_v7, %v7079_v3  ;;  %v3092_v55 = vpop.f32.mrf.mxu0 }
 0x23b   : > { %v3205_v14 = vpop.f32.mrf.mxu1  ;;  %v3771_v59 = vpack.c.bf16 %v3723_v30, %v3719_v20  ;;  %v3093_v34 = vadd.f32 %v3092_v55, %v7023_v21  ;;  %v3726_v26 = vmax.f32 %v3091_v63, 0.0  ;;  %v2881_v21 = vadd.f32 %v7043_v44, %v7724_v33  ;;  %v7726_v30 = vld [vmem:[#allocation18_spill] sm:$0xff] }
 0x23c   : > { %v7173_v50 = vadd.f32 %v3205_v14, %v7087_v45  ;;  %v3094_v46 = vpop.f32.mrf.mxu0  ;;  %v2889_v22 = vadd.f32 %v7055_v28, %v7726_v30 }
 0x23d   : > { %v3207_v8 = vpop.f32.mrf.mxu1  ;;  %v3095_v43 = vadd.f32 %v3094_v46, %v2982_v37  ;;  %4109 = vmatprep.mubr.bf16.mxu0 %v3771_v59  ;;  %v3727_v62 = vmax.f32 %v3093_v34, 0.0  ;;  %v2994_v4 = vadd.f32 %v7045_v42, %v2881_v21  ;;  %v7727_v42 = vld [vmem:[#allocation34_spill] sm:$0xff] }
 0x23e   : > { %v7178_v11 = vadd.f32 %v3207_v8, %v7079_v3  ;;  %v3096_v53 = vpop.f32.mrf.mxu0  ;;  %4110 = vmatmul.mubr.bf16.gmra.mxu0 %v3770_v40  ;;  %v2891_v46 = vadd.f32 %v7061_v2, %v7727_v42 }
 0x23f   : > { %v3209_v47 = vpop.f32.mrf.mxu1  ;;  %v3730_v32 = vmax.f32 %v3095_v43, 0.0  ;;  %v3097_v1 = vadd.f32 %v3096_v53, %v2984_v24 }
 0x240   : > { %v7183_v52 = vadd.f32 %v3209_v47, %v7087_v45  ;;  %v3100_v23 = vpop.f32.mrf.mxu0  ;;  %v7728_v47 = vld [vmem:[#allocation23_spill] sm:$0xff] }
 0x241   : > { %v3213_v31 = vpop.f32.mrf.mxu1  ;;  %v3774_v17 = vpack.c.bf16 %v3730_v32, %v3726_v26  ;;  %v3731_v49 = vmax.f32 %v3097_v1, 0.0  ;;  %v3101_v48 = vadd.f32 %v3100_v23, %v7034_v9  ;;  %v3002_v26 = vadd.f32 %v7728_v47, %v2889_v22  ;;  %v7729_v1 = vld [vmem:[#allocation22_spill] sm:$0xff] }
 0x242   : > { %v7188_v61 = vadd.f32 %v3213_v31, %v7079_v3  ;;  %v3102_v18 = vpop.f32.mrf.mxu0  ;;  %v7730_v31 = vld [vmem:[#allocation25_spill] sm:$0xff] }
 0x243   : > { %v3215_v19 = vpop.f32.mrf.mxu1  ;;  %v3775_v56 = vpack.c.bf16 %v3731_v49, %v3727_v62  ;;  %v3103_v7 = vadd.f32 %v3102_v18, %v7725_v25  ;;  %v3734_v9 = vmax.f32 %v3101_v48, 0.0  ;;  %v3004_v62 = vadd.f32 %v7730_v31, %v2891_v46  ;;  %v7736_v46 = vld [vmem:[#allocation27_spill] sm:$0xff] }
 0x244   : > { %v7193_v41 = vadd.f32 %v3215_v19, %v7087_v45  ;;  %v3104_v5 = vpop.f32.mrf.mxu0 }
 0x245   : > { %v3217_v44 = vpop.f32.mrf.mxu1  ;;  %v3105_v20 = vadd.f32 %v3104_v5, %v2992_v38  ;;  %4117 = vmatprep.mubr.bf16.mxu0 %v3775_v56  ;;  %v3735_v34 = vmax.f32 %v3103_v7, 0.0  ;;  %v7733_v38 = vld [vmem:[#allocation19_spill] sm:$0xff] }
 0x246   : > { %v7198_v40 = vadd.f32 %v3217_v44, %v7079_v3  ;;  %v3106_v55 = vpop.f32.mrf.mxu0  ;;  %4118 = vmatmul.mubr.bf16.gmra.mxu0 %v3774_v17  ;;  %v7731_v17 = vld [vmem:[#allocation24_spill] sm:$0xff]  ;;  %v2899_v56 = vadd.f32 %v7073_v29, %v7733_v38 }
 0x247   : > { %v3219_v14 = vpop.f32.mrf.mxu1  ;;  %v3738_v37 = vmax.f32 %v3105_v20, 0.0  ;;  %v3107_v63 = vadd.f32 %v3106_v55, %v2994_v4  ;;  %v7735_v20 = vld [vmem:[#allocation20_spill] sm:$0xff] }
 0x248   : > { %v7203_v59 = vadd.f32 %v3219_v14, %v7087_v45  ;;  %v3110_v8 = vpop.f32.mrf.mxu0  ;;  %v2901_v30 = vadd.f32 %v7081_v54, %v7735_v20 }
 0x249   : > { %v3223_v24 = vpop.f32.mrf.mxu1  ;;  %v3778_v43 = vpack.c.bf16 %v3738_v37, %v3734_v9  ;;  %v3739_v13 = vmax.f32 %v3107_v63, 0.0  ;;  %v3111_v33 = vadd.f32 %v3110_v8, %v7729_v1  ;;  %v3012_v8 = vadd.f32 %v7736_v46, %v2899_v56 }
 0x24a   : > { %v7208_v15 = vadd.f32 %v3223_v24, %v7079_v3  ;;  %v3112_v28 = vpop.f32.mrf.mxu0 }
 0x24b   : > { %v3225_v53 = vpop.f32.mrf.mxu1  ;;  %v3779_v32 = vpack.c.bf16 %v3739_v13, %v3735_v34  ;;  %v3113_v49 = vadd.f32 %v3112_v28, %v7731_v17  ;;  %v3742_v44 = vmax.f32 %v3111_v33, 0.0  ;;  %v7737_v34 = vld [vmem:[#allocation26_spill] sm:$0xff] }
 0x24c   : > { %v7213_v21 = vadd.f32 %v3225_v53, %v7087_v45  ;;  %v3114_v23 = vpop.f32.mrf.mxu0  ;;  %v7738_v53 = vld [vmem:[#allocation29_spill] sm:$0xff] }
 0x24d   : > { %v3227_v2 = vpop.f32.mrf.mxu1  ;;  %v3115_v18 = vadd.f32 %v3114_v23, %v3002_v26  ;;  %4125 = vmatprep.mubr.bf16.mxu0 %v3779_v32  ;;  %v3743_v14 = vmax.f32 %v3113_v49, 0.0  ;;  %v3014_v47 = vadd.f32 %v7738_v53, %v2901_v30  ;;  %v7739_v26 = vld [vmem:[#allocation28_spill] sm:$0xff] }
 0x24e   : > { %v7218_v19 = vadd.f32 %v3227_v2, %v7079_v3  ;;  %v3116_v48 = vpop.f32.mrf.mxu0  ;;  %4126 = vmatmul.mubr.bf16.gmra.mxu0 %v3778_v43 }
 0x24f   : > { %v3229_v5 = vpop.f32.mrf.mxu1  ;;  %v3746_v4 = vmax.f32 %v3115_v18, 0.0  ;;  %v3117_v25 = vadd.f32 %v3116_v48, %v3004_v62 }
 0x250   : > { %7732 = vst [vmem:[#allocation35_spill] sm:$0xff] %v7218_v19  ;;  %v7223_v7 = vadd.f32 %v3229_v5, %v7087_v45  ;;  %v3120_v22 = vpop.f32.mrf.mxu0 }
 0x251   : > { %v3233_v55 = vpop.f32.mrf.mxu1  ;;  %v3782_v9 = vpack.c.bf16 %v3746_v4, %v3742_v44  ;;  %v3747_v37 = vmax.f32 %v3117_v25, 0.0  ;;  %v3121_v43 = vadd.f32 %v3120_v22, %v7737_v34  ;;  %v7742_v44 = vld [vmem:[#allocation30_spill] sm:$0xff]  ;;  %v7743_v22 = vld [vmem:[#allocation31_spill] sm:$0xff] }
 0x252   : > { %7734 = vst [vmem:[#allocation36_spill] sm:$0xff] %v7223_v7  ;;  %v7228_v63 = vadd.f32 %v3233_v55, %v7079_v3  ;;  %v3122_v29 = vpop.f32.mrf.mxu0 }
 0x253   : > { %v3235_v42 = vpop.f32.mrf.mxu1  ;;  %v3783_v24 = vpack.c.bf16 %v3747_v37, %v3743_v14  ;;  %v3123_v32 = vadd.f32 %v3122_v29, %v7739_v26  ;;  %v3750_v31 = vmax.f32 %v3121_v43, 0.0 }
 0x254   : > { %v7233_v13 = vadd.f32 %v3235_v42, %v7087_v45  ;;  %v3124_v28 = vpop.f32.mrf.mxu0 }
 0x255   : > { %v3237_v54 = vpop.f32.mrf.mxu1  ;;  %v3125_v1 = vadd.f32 %v3124_v28, %v3012_v8  ;;  %4133 = vmatprep.mubr.bf16.mxu0 %v3783_v24  ;;  %v3751_v56 = vmax.f32 %v3123_v32, 0.0 }
 0x256   : > { %v7238_v33 = vadd.f32 %v3237_v54, %v7079_v3  ;;  %v3126_v23 = vpop.f32.mrf.mxu0  ;;  %4134 = vmatmul.mubr.bf16.gmra.mxu0 %v3782_v9 }
 0x257   : > { %v3239_v2 = vpop.f32.mrf.mxu1  ;;  %v3754_v62 = vmax.f32 %v3125_v1, 0.0  ;;  %v3127_v17 = vadd.f32 %v3126_v23, %v3014_v47 }
 0x258   : > { %7740 = vst [vmem:[#allocation37_spill] sm:$0xff] %v7238_v33  ;;  %v7241_v49 = vadd.f32 %v3239_v2, %v7087_v45  ;;  %v3276_v18 = vpop.f32.mrf.mxu0 }
 0x259   : > { %v3389_v38 = vpop.f32.mrf.mxu1  ;;  %v3786_v48 = vpack.c.bf16 %v3754_v62, %v3750_v31  ;;  %v3755_v5 = vmax.f32 %v3127_v17, 0.0  ;;  %v3277_v4 = vadd.f32 %v3276_v18, %v7742_v44 }
 0x25a   : > { %7741 = vst [vmem:[#allocation38_spill] sm:$0xff] %v7241_v49  ;;  %v3278_v25 = vpop.f32.mrf.mxu0 }
 0x25b   : > { %v3391_v3 = vpop.f32.mrf.mxu1  ;;  %v3787_v20 = vpack.c.bf16 %v3755_v5, %v3751_v56  ;;  %v7244_v30 = vadd.f32 %v3389_v38, %v3277_v4  ;;  %v3279_v55 = vadd.f32 %v3278_v25, %v7743_v22 }
 0x25c   : > { %v7247_v14 = vpop.f32.mrf.mxu0 }
 0x25d   : > { %v7249_v9 = vpop.f32.mrf.mxu1  ;;  %v7251_v37 = vadd.f32 %v3391_v3, %v3279_v55  ;;  %4141 = vmatprep.mubr.bf16.mxu0 %v3787_v20 }
 0x25e   : > { %v7253_v29 = vpop.f32.mrf.mxu0  ;;  %4142 = vmatmul.mubr.bf16.gmra.mxu0 %v3786_v48 }
 0x25f   : > { %v7255_v42 = vpop.f32.mrf.mxu1 }
 0x260   : > { %v3286_v46 = vpop.f32.mrf.mxu0 }
 0x261   : > { %v3399_v8 = vpop.f32.mrf.mxu1  ;;  %v3287_v24 = vadd.f32 %v3286_v46, %v7111_v35 }
 0x262   : > { %v3288_v34 = vpop.f32.mrf.mxu0 }
 0x263   : > { %v3401_v43 = vpop.f32.mrf.mxu1  ;;  %v7258_v28 = vadd.f32 %v3399_v8, %v3287_v24  ;;  %v3289_v54 = vadd.f32 %v3288_v34, %v7116_v60 }
 0x264   : > { %v7261_v53 = vpop.f32.mrf.mxu0 }
 0x265   : > { %v7263_v47 = vpop.f32.mrf.mxu1  ;;  %v7265_v26 = vadd.f32 %v3401_v43, %v3289_v54 }
 0x266   : > { %v7267_v32 = vpop.f32.mrf.mxu0 }
 0x267   : > { %v7269_v1 = vpop.f32.mrf.mxu1 }
 0x268   : > { %v3296_v23 = vpop.f32.mrf.mxu0 }
 0x269   : > { %v3409_v2 = vpop.f32.mrf.mxu1  ;;  %v3297_v35 = vadd.f32 %v3296_v23, %v7130_v27 }
 0x26a   : > { %v3298_v31 = vpop.f32.mrf.mxu0 }
 0x26b   : > { %v3411_v62 = vpop.f32.mrf.mxu1  ;;  %v7272_v17 = vadd.f32 %v3409_v2, %v3297_v35  ;;  %v3299_v60 = vadd.f32 %v3298_v31, %v7135_v10 }
 0x26c   : > { %v7275_v18 = vpop.f32.mrf.mxu0 }
 0x26d   : > { %v7277_v38 = vpop.f32.mrf.mxu1  ;;  %v7279_v56 = vadd.f32 %v3411_v62, %v3299_v60 }
 0x26e   : > { %v7281_v48 = vpop.f32.mrf.mxu0 }
 0x26f   : > { %v7283_v5 = vpop.f32.mrf.mxu1 }
 0x270   : > { %v3306_v44 = vpop.f32.mrf.mxu0 }
 0x271   : > { %v3419_v4 = vpop.f32.mrf.mxu1  ;;  %v3307_v27 = vadd.f32 %v3306_v44, %v7149_v0 }
 0x272   : > { %v3308_v25 = vpop.f32.mrf.mxu0 }
 0x273   : > { %v3421_v3 = vpop.f32.mrf.mxu1  ;;  %v7286_v20 = vadd.f32 %v3419_v4, %v3307_v27  ;;  %v3309_v10 = vadd.f32 %v3308_v25, %v7154_v12 }
 0x274   : > { %v7289_v22 = vpop.f32.mrf.mxu0 }
 0x275   : > { %v7291_v55 = vpop.f32.mrf.mxu1  ;;  %v7293_v46 = vadd.f32 %v3421_v3, %v3309_v10 }
 0x276   : > { %v7295_v8 = vpop.f32.mrf.mxu0 }
 0x277   : > { %v7297_v24 = vpop.f32.mrf.mxu1 }
 0x278   : > { %v3316_v34 = vpop.f32.mrf.mxu0 }
 0x279   : > { %v3429_v43 = vpop.f32.mrf.mxu1  ;;  %v3317_v0 = vadd.f32 %v3316_v34, %v7168_v39 }
 0x27a   : > { %v3318_v54 = vpop.f32.mrf.mxu0 }
 0x27b   : > { %v3431_v23 = vpop.f32.mrf.mxu1  ;;  %v7300_v2 = vadd.f32 %v3429_v43, %v3317_v0  ;;  %v3319_v12 = vadd.f32 %v3318_v54, %v7173_v50 }
 0x27c   : > { %v7303_v35 = vpop.f32.mrf.mxu0 }
 0x27d   : > { %v7305_v31 = vpop.f32.mrf.mxu1  ;;  %v7307_v62 = vadd.f32 %v3431_v23, %v3319_v12 }
 0x27e   : > { %v7309_v60 = vpop.f32.mrf.mxu0 }
 0x27f   : > { %v7311_v44 = vpop.f32.mrf.mxu1 }
 0x280   : > { %v3326_v4 = vpop.f32.mrf.mxu0 }
 0x281   : > { %v3439_v27 = vpop.f32.mrf.mxu1  ;;  %v3327_v39 = vadd.f32 %v3326_v4, %v7188_v61 }
 0x282   : > { %v3328_v25 = vpop.f32.mrf.mxu0 }
 0x283   : > { %v3441_v3 = vpop.f32.mrf.mxu1  ;;  %v7314_v10 = vadd.f32 %v3439_v27, %v3327_v39  ;;  %v3329_v50 = vadd.f32 %v3328_v25, %v7193_v41 }
 0x284   : > { %v7317_v34 = vpop.f32.mrf.mxu0 }
 0x285   : > { %v7319_v43 = vpop.f32.mrf.mxu1  ;;  %v7321_v0 = vadd.f32 %v3441_v3, %v3329_v50 }
 0x286   : > { %v7323_v54 = vpop.f32.mrf.mxu0 }
 0x287   : > { %7744 = vst [vmem:[#allocation39_spill] sm:$0xff] %v7321_v0  ;;  %v7325_v23 = vpop.f32.mrf.mxu1 }
 0x288   : > { %7745 = vst [vmem:[#allocation21_spill] sm:$0xff] %v7325_v23  ;;  %v3336_v12 = vpop.f32.mrf.mxu0 }
 0x289   : > { %v3449_v49 = vpop.f32.mrf.mxu1  ;;  %v3337_v61 = vadd.f32 %v3336_v12, %v7208_v15 }
 0x28a   : > { %v3338_v4 = vpop.f32.mrf.mxu0 }
 0x28b   : > { %v3451_v33 = vpop.f32.mrf.mxu1  ;;  %v7328_v27 = vadd.f32 %v3449_v49, %v3337_v61  ;;  %v3339_v41 = vadd.f32 %v3338_v4, %v7213_v21 }
 0x28c   : > { %v7331_v39 = vpop.f32.mrf.mxu0 }
 0x28d   : > { %7746 = vst [vmem:[#allocation18_spill] sm:$0xff] %v7328_v27  ;;  %v7333_v25 = vpop.f32.mrf.mxu1  ;;  %v7335_v3 = vadd.f32 %v3451_v33, %v3339_v41 }
 0x28e   : > { %7747 = vst [vmem:[#allocation34_spill] sm:$0xff] %v7333_v25  ;;  %v7337_v50 = vpop.f32.mrf.mxu0 }
 0x28f   : > { %7748 = vst [vmem:[#allocation23_spill] sm:$0xff] %v7335_v3  ;;  %7749 = vst [vmem:[#allocation22_spill] sm:$0xff] %v7337_v50  ;;  %v7339_v7 = vpop.f32.mrf.mxu1 }
 0x290   : > { %7750 = vst [vmem:[#allocation25_spill] sm:$0xff] %v7339_v7  ;;  %v3346_v19 = vpop.f32.mrf.mxu0  ;;  %v7757_v7 = vld [vmem:[#allocation33_spill] sm:$0xff] }
 0x291   : > { %v3459_v23 = vpop.f32.mrf.mxu1  ;;  %v3347_v15 = vadd.f32 %v3346_v19, %v7228_v63  ;;  %v3170_v25 = vadd.f32 %v7757_v7, %v7087_v45  ;;  %v7758_v19 = vld [vmem:[#allocation32_spill] sm:$0xff] }
 0x292   : > { %v3348_v12 = vpop.f32.mrf.mxu0  ;;  %v3281_v63 = vadd.f32 %v7247_v14, %v7758_v19  ;;  %v3180_v14 = vadd.f32 %v7123_v6, %v7087_v45 }
 0x293   : > { %v3461_v0 = vpop.f32.mrf.mxu1  ;;  %v7342_v49 = vadd.f32 %v3459_v23, %v3347_v15  ;;  %v3349_v21 = vadd.f32 %v3348_v12, %v7233_v13  ;;  %v3283_v13 = vadd.f32 %v7253_v29, %v3170_v25  ;;  %v3291_v29 = vadd.f32 %v7261_v53, %v7121_v57 }
 0x294   : > { %v7345_v61 = vpop.f32.mrf.mxu0 }
 0x295   : > { %7751 = vst [vmem:[#allocation24_spill] sm:$0xff] %v7342_v49  ;;  %7752 = vst [vmem:[#allocation19_spill] sm:$0xff] %v7345_v61  ;;  %v7347_v4 = vpop.f32.mrf.mxu1  ;;  %v7349_v33 = vadd.f32 %v3461_v0, %v3349_v21  ;;  %v3394_v0 = vadd.f32 %v7249_v9, %v3281_v63  ;;  %v3293_v9 = vadd.f32 %v7267_v32, %v3180_v14 }
 0x296   : > { %7753 = vst [vmem:[#allocation20_spill] sm:$0xff] %v7347_v4  ;;  %v7351_v41 = vpop.f32.mrf.mxu0 }
 0x297   : > { %7754 = vst [vmem:[#allocation27_spill] sm:$0xff] %v7349_v33  ;;  %7755 = vst [vmem:[#allocation26_spill] sm:$0xff] %v7351_v41  ;;  %v7353_v3 = vpop.f32.mrf.mxu1  ;;  %v3396_v41 = vadd.f32 %v7255_v42, %v3283_v13  ;;  %v3406_v32 = vadd.f32 %v7269_v1, %v3293_v9 }
 0x298   : > { %7756 = vst [vmem:[#allocation29_spill] sm:$0xff] %v7353_v3  ;;  %v3502_v23 = vpop.f32.mrf.mxu0 }
 0x299   : > { %v3615_v15 = vpop.f32.mrf.mxu1  ;;  %v3503_v12 = vadd.f32 %v3502_v23, %v7244_v30 }
 0x29a   : > { %v3504_v49 = vpop.f32.mrf.mxu0 }
 0x29b   : > { %v3617_v4 = vpop.f32.mrf.mxu1  ;;  %v3505_v21 = vadd.f32 %v3504_v49, %v7251_v37  ;;  %v3616_v7 = vadd.f32 %v3615_v15, %v3503_v12  ;;  %v3404_v15 = vadd.f32 %v7263_v47, %v3291_v29 }
 0x29c   : > { %v3506_v33 = vpop.f32.mrf.mxu0 }
 0x29d   : > { %v3619_v3 = vpop.f32.mrf.mxu1  ;;  %v3507_v61 = vadd.f32 %v3506_v33, %v3394_v0  ;;  %v3618_v19 = vadd.f32 %v3617_v4, %v3505_v21  ;;  %v3696_v63 = vmax.f32 %v3616_v7, 0.0 }
 0x29e   : > { %v3508_v25 = vpop.f32.mrf.mxu0 }
 0x29f   : > { %v3621_v30 = vpop.f32.mrf.mxu1  ;;  %v3620_v23 = vadd.f32 %v3619_v3, %v3507_v61  ;;  %v3509_v27 = vadd.f32 %v3508_v25, %v3396_v41  ;;  %v3697_v12 = vmax.f32 %v3618_v19, 0.0 }
 0x2a0   : > { %v3512_v37 = vpop.f32.mrf.mxu0 }
 0x2a1   : > { %v3625_v49 = vpop.f32.mrf.mxu1  ;;  %v3700_v50 = vmax.f32 %v3620_v23, 0.0  ;;  %v3622_v42 = vadd.f32 %v3621_v30, %v3509_v27  ;;  %v3513_v33 = vadd.f32 %v3512_v37, %v7258_v28  ;;  %v3190_v27 = vadd.f32 %v7142_v51, %v7087_v45 }
 0x2a2   : > { %v3514_v6 = vpop.f32.mrf.mxu0  ;;  %v3301_v28 = vadd.f32 %v7275_v18, %v7140_v58 }
 0x2a3   : > { %v3627_v13 = vpop.f32.mrf.mxu1  ;;  %v3760_v57 = vpack.c.bf16 %v3700_v50, %v3696_v63  ;;  %v3701_v53 = vmax.f32 %v3622_v42, 0.0  ;;  %v3515_v4 = vadd.f32 %v3514_v6, %v7265_v26  ;;  %v3626_v0 = vadd.f32 %v3625_v49, %v3513_v33 }
 0x2a4   : > { %v3516_v3 = vpop.f32.mrf.mxu0  ;;  %v3303_v26 = vadd.f32 %v7281_v48, %v3190_v27  ;;  %v3414_v51 = vadd.f32 %v7277_v38, %v3301_v28 }
 0x2a5   : > { %v3629_v61 = vpop.f32.mrf.mxu1  ;;  %v3761_v41 = vpack.c.bf16 %v3701_v53, %v3697_v12  ;;  %v3517_v21 = vadd.f32 %v3516_v3, %v3404_v15  ;;  %v3628_v14 = vadd.f32 %v3627_v13, %v3515_v4  ;;  %v3704_v1 = vmax.f32 %v3626_v0, 0.0 }
 0x2a6   : > { %v3518_v47 = vpop.f32.mrf.mxu0  ;;  %v3416_v48 = vadd.f32 %v7283_v5, %v3303_v26 }
 0x2a7   : > { %v3631_v7 = vpop.f32.mrf.mxu1  ;;  %v3630_v50 = vadd.f32 %v3629_v61, %v3517_v21  ;;  %v3519_v29 = vadd.f32 %v3518_v47, %v3406_v32  ;;  %4182 = vmatprep.mubr.bf16.mxu1 %v3761_v41  ;;  %v3705_v18 = vmax.f32 %v3628_v14, 0.0 }
 0x2a8   : > { %v3522_v25 = vpop.f32.mrf.mxu0  ;;  %4183 = vmatmul.mubr.bf16.vlgmr.msra.gmra.mxu1 %v3760_v57  ;;  %v3200_v57 = vadd.f32 %v7161_v16, %v7087_v45 }
 0x2a9   : > { %v3635_v30 = vpop.f32.mrf.mxu1  ;;  %v3708_v19 = vmax.f32 %v3630_v50, 0.0  ;;  %v3632_v23 = vadd.f32 %v3631_v7, %v3519_v29  ;;  %v3523_v9 = vadd.f32 %v3522_v25, %v7272_v17  ;;  %v3311_v17 = vadd.f32 %v7289_v22, %v7159_v36 }
 0x2aa   : > { %v3524_v37 = vpop.f32.mrf.mxu0 }
 0x2ab   : > { %v3637_v58 = vpop.f32.mrf.mxu1  ;;  %v3764_v49 = vpack.c.bf16 %v3708_v19, %v3704_v1  ;;  %v3709_v63 = vmax.f32 %v3632_v23, 0.0  ;;  %v3525_v42 = vadd.f32 %v3524_v37, %v7279_v56  ;;  %v3636_v13 = vadd.f32 %v3635_v30, %v3523_v9 }
 0x2ac   : > { %v3526_v33 = vpop.f32.mrf.mxu0  ;;  %v3313_v56 = vadd.f32 %v7295_v8, %v3200_v57  ;;  %v3424_v45 = vadd.f32 %v7291_v55, %v3311_v17  ;;  %v3321_v30 = vadd.f32 %v7303_v35, %v7178_v11  ;;  %v3323_v9 = vadd.f32 %v7309_v60, %v7183_v52 }
 0x2ad   : > { %v3639_v15 = vpop.f32.mrf.mxu1  ;;  %v3765_v6 = vpack.c.bf16 %v3709_v63, %v3705_v18  ;;  %v3527_v12 = vadd.f32 %v3526_v33, %v3414_v51  ;;  %v3638_v4 = vadd.f32 %v3637_v58, %v3525_v42  ;;  %v3712_v5 = vmax.f32 %v3636_v13, 0.0 }
 0x2ae   : > { %v3528_v38 = vpop.f32.mrf.mxu0  ;;  %v3426_v8 = vadd.f32 %v7297_v24, %v3313_v56  ;;  %v3436_v52 = vadd.f32 %v7311_v44, %v3323_v9  ;;  %v3331_v57 = vadd.f32 %v7317_v34, %v7198_v40  ;;  %v7764_v9 = vld [vmem:[#allocation18_spill] sm:$0xff] }
 0x2af   : > { %v3641_v53 = vpop.f32.mrf.mxu1  ;;  %v3640_v3 = vadd.f32 %v3639_v15, %v3527_v12  ;;  %v3529_v61 = vadd.f32 %v3528_v38, %v3416_v48  ;;  %4190 = vmatprep.mubr.bf16.mxu1 %v3765_v6  ;;  %v3713_v22 = vmax.f32 %v3638_v4, 0.0  ;;  %v3333_v4 = vadd.f32 %v7323_v54, %v7203_v59  ;;  %v7760_v59 = vld [vmem:[#allocation21_spill] sm:$0xff] }
 0x2b0   : > { %v3532_v32 = vpop.f32.mrf.mxu0  ;;  %4191 = vmatmul.mubr.bf16.gmra.mxu1 %v3764_v49  ;;  %v3434_v49 = vadd.f32 %v7305_v31, %v3321_v30 }
 0x2b1   : > { %v3645_v41 = vpop.f32.mrf.mxu1  ;;  %v3716_v0 = vmax.f32 %v3640_v3, 0.0  ;;  %v3642_v21 = vadd.f32 %v3641_v53, %v3529_v61  ;;  %v3533_v27 = vadd.f32 %v3532_v32, %v7286_v20  ;;  %v3446_v54 = vadd.f32 %v7760_v59, %v3333_v4  ;;  %v7771_v4 = vld [vmem:[#allocation26_spill] sm:$0xff] }
 0x2b2   : > { %v3534_v16 = vpop.f32.mrf.mxu0 }
 0x2b3   : > { %v3647_v36 = vpop.f32.mrf.mxu1  ;;  %v3768_v28 = vpack.c.bf16 %v3716_v0, %v3712_v5  ;;  %v3717_v47 = vmax.f32 %v3642_v21, 0.0  ;;  %v3535_v7 = vadd.f32 %v3534_v16, %v7293_v46  ;;  %v3646_v26 = vadd.f32 %v3645_v41, %v3533_v27  ;;  %v7759_v27 = vld [vmem:[#allocation39_spill] sm:$0xff] }
 0x2b4   : > { %v3536_v14 = vpop.f32.mrf.mxu0  ;;  %v3444_v41 = vadd.f32 %v7319_v43, %v3331_v57 }
 0x2b5   : > { %v3649_v50 = vpop.f32.mrf.mxu1  ;;  %v3769_v29 = vpack.c.bf16 %v3717_v47, %v3713_v22  ;;  %v3537_v25 = vadd.f32 %v3536_v14, %v3424_v45  ;;  %v3648_v55 = vadd.f32 %v3647_v36, %v3535_v7  ;;  %v3720_v37 = vmax.f32 %v3646_v26, 0.0  ;;  %v7761_v7 = vld [vmem:[#allocation35_spill] sm:$0xff]  ;;  %v7762_v26 = vld [vmem:[#allocation36_spill] sm:$0xff] }
 0x2b6   : > { %v3538_v20 = vpop.f32.mrf.mxu0  ;;  %v3341_v14 = vadd.f32 %v7331_v39, %v7761_v7 }
 0x2b7   : > { %v3651_v1 = vpop.f32.mrf.mxu1  ;;  %v3650_v19 = vadd.f32 %v3649_v50, %v3537_v25  ;;  %v3539_v23 = vadd.f32 %v3538_v20, %v3426_v8  ;;  %4198 = vmatprep.mubr.bf16.mxu1 %v3769_v29  ;;  %v3721_v63 = vmax.f32 %v3648_v55, 0.0  ;;  %v7763_v25 = vld [vmem:[#allocation22_spill] sm:$0xff] }
 0x2b8   : > { %v3542_v46 = vpop.f32.mrf.mxu0  ;;  %4199 = vmatmul.mubr.bf16.gmra.mxu1 %v3768_v28  ;;  %v3343_v30 = vadd.f32 %v7763_v25, %v7762_v26 }
 0x2b9   : > { %v3655_v51 = vpop.f32.mrf.mxu1  ;;  %v3724_v24 = vmax.f32 %v3650_v19, 0.0  ;;  %v3652_v58 = vadd.f32 %v3651_v1, %v3539_v23  ;;  %v3543_v18 = vadd.f32 %v3542_v46, %v7300_v2 }
 0x2ba   : > { %v3544_v11 = vpop.f32.mrf.mxu0 }
 0x2bb   : > { %v3657_v35 = vpop.f32.mrf.mxu1  ;;  %v3772_v42 = vpack.c.bf16 %v3724_v24, %v3720_v37  ;;  %v3725_v33 = vmax.f32 %v3652_v58, 0.0  ;;  %v3545_v15 = vadd.f32 %v3544_v11, %v7307_v62  ;;  %v3656_v13 = vadd.f32 %v3655_v51, %v3543_v18  ;;  %v7765_v51 = vld [vmem:[#allocation34_spill] sm:$0xff]  ;;  %v7766_v11 = vld [vmem:[#allocation23_spill] sm:$0xff] }
 0x2bc   : > { %v3546_v48 = vpop.f32.mrf.mxu0  ;;  %v3454_v37 = vadd.f32 %v7765_v51, %v3341_v14 }
 0x2bd   : > { %v3659_v6 = vpop.f32.mrf.mxu1  ;;  %v3773_v60 = vpack.c.bf16 %v3725_v33, %v3721_v63  ;;  %v3547_v12 = vadd.f32 %v3546_v48, %v3434_v49  ;;  %v3658_v31 = vadd.f32 %v3657_v35, %v3545_v15  ;;  %v3728_v61 = vmax.f32 %v3656_v13, 0.0  ;;  %v7767_v33 = vld [vmem:[#allocation25_spill] sm:$0xff]  ;;  %v7769_v13 = vld [vmem:[#allocation19_spill] sm:$0xff] }
 0x2be   : > { %v3548_v2 = vpop.f32.mrf.mxu0  ;;  %v3456_v15 = vadd.f32 %v7767_v33, %v3343_v30 }
 0x2bf   : > { %v3661_v17 = vpop.f32.mrf.mxu1  ;;  %v3660_v38 = vadd.f32 %v3659_v6, %v3547_v12  ;;  %v3549_v53 = vadd.f32 %v3548_v2, %v3436_v52  ;;  %4206 = vmatprep.mubr.bf16.mxu1 %v3773_v60  ;;  %v3729_v5 = vmax.f32 %v3658_v31, 0.0  ;;  %v7768_v60 = vld [vmem:[#allocation37_spill] sm:$0xff] }
 0x2c0   : > { %v3552_v62 = vpop.f32.mrf.mxu0  ;;  %4207 = vmatmul.mubr.bf16.gmra.mxu1 %v3772_v42  ;;  %v3351_v12 = vadd.f32 %v7769_v13, %v7768_v60  ;;  %v7429_v60 = vld [vmem:[#allocation10] ss:$0 sm:$0xff] }
 0x2c1   : > { %v3665_v3 = vpop.f32.mrf.mxu1  ;;  %v3732_v44 = vmax.f32 %v3660_v38, 0.0  ;;  %v3662_v56 = vadd.f32 %v3661_v17, %v3549_v53  ;;  %v3553_v32 = vadd.f32 %v3552_v62, %v7314_v10  ;;  %v7770_v53 = vld [vmem:[#allocation38_spill] sm:$0xff] }
 0x2c2   : > { %v3554_v40 = vpop.f32.mrf.mxu0  ;;  %v3353_v62 = vadd.f32 %v7771_v4, %v7770_v53 }
 0x2c3   : > { %v3667_v34 = vpop.f32.mrf.mxu1  ;;  %v3776_v0 = vpack.c.bf16 %v3732_v44, %v3728_v61  ;;  %v3733_v21 = vmax.f32 %v3662_v56, 0.0  ;;  %v3555_v45 = vadd.f32 %v3554_v40, %v7759_v27  ;;  %v3666_v28 = vadd.f32 %v3665_v3, %v3553_v32 }
 0x2c4   : > { %v3556_v16 = vpop.f32.mrf.mxu0 }
 0x2c5   : > { %v3669_v36 = vpop.f32.mrf.mxu1  ;;  %v3777_v22 = vpack.c.bf16 %v3733_v21, %v3729_v5  ;;  %v3557_v47 = vadd.f32 %v3556_v16, %v3444_v41  ;;  %v3668_v43 = vadd.f32 %v3667_v34, %v3555_v45  ;;  %v3736_v55 = vmax.f32 %v3666_v28, 0.0  ;;  %v7772_v41 = vld [vmem:[#allocation24_spill] sm:$0xff]  ;;  %v7775_v28 = vld [vmem:[#allocation29_spill] sm:$0xff] }
 0x2c6   : > { %v3558_v10 = vpop.f32.mrf.mxu0  ;;  %v7773_v34 = vld [vmem:[#allocation20_spill] sm:$0xff] }
 0x2c7   : > { %v3671_v50 = vpop.f32.mrf.mxu1  ;;  %v3670_v8 = vadd.f32 %v3669_v36, %v3557_v47  ;;  %v3559_v29 = vadd.f32 %v3558_v10, %v3446_v54  ;;  %4214 = vmatprep.mubr.bf16.mxu1 %v3777_v22  ;;  %v3737_v58 = vmax.f32 %v3668_v43, 0.0  ;;  %v3464_v5 = vadd.f32 %v7773_v34, %v3351_v12  ;;  %v7774_v36 = vld [vmem:[#allocation27_spill] sm:$0xff] }
 0x2c8   : > { %v3562_v20 = vpop.f32.mrf.mxu0  ;;  %4215 = vmatmul.mubr.bf16.gmra.mxu1 %v3776_v0  ;;  %v3466_v47 = vadd.f32 %v7775_v28, %v3353_v62 }
 0x2c9   : > { %v3675_v1 = vpop.f32.mrf.mxu1  ;;  %v3740_v19 = vmax.f32 %v3670_v8, 0.0  ;;  %v3672_v23 = vadd.f32 %v3671_v50, %v3559_v29  ;;  %v3563_v46 = vadd.f32 %v3562_v20, %v7764_v9 }
 0x2ca   : > { %v3564_v39 = vpop.f32.mrf.mxu0 }
 0x2cb   : > { %v3677_v24 = vpop.f32.mrf.mxu1  ;;  %v3780_v18 = vpack.c.bf16 %v3740_v19, %v3736_v55  ;;  %v3741_v49 = vmax.f32 %v3672_v23, 0.0  ;;  %v3565_v35 = vadd.f32 %v3564_v39, %v7766_v11  ;;  %v3676_v6 = vadd.f32 %v3675_v1, %v3563_v46 }
 0x2cc   : > { %v3566_v63 = vpop.f32.mrf.mxu0 }
 0x2cd   : > { %v3679_v42 = vpop.f32.mrf.mxu1  ;;  %v3781_v48 = vpack.c.bf16 %v3741_v49, %v3737_v58  ;;  %v3567_v52 = vadd.f32 %v3566_v63, %v3454_v37  ;;  %v3678_v17 = vadd.f32 %v3677_v24, %v3565_v35  ;;  %v3744_v44 = vmax.f32 %v3676_v6, 0.0 }
 0x2ce   : > { %v3568_v57 = vpop.f32.mrf.mxu0 }
 0x2cf   : > { %v3681_v2 = vpop.f32.mrf.mxu1  ;;  %v3680_v31 = vadd.f32 %v3679_v42, %v3567_v52  ;;  %v3569_v38 = vadd.f32 %v3568_v57, %v3456_v15  ;;  %4222 = vmatprep.mubr.bf16.mxu1 %v3781_v48  ;;  %v3745_v27 = vmax.f32 %v3678_v17, 0.0 }
 0x2d0   : > { %v3572_v3 = vpop.f32.mrf.mxu0  ;;  %4223 = vmatmul.mubr.bf16.gmra.mxu1 %v3780_v18 }
 0x2d1   : > { %v3685_v61 = vpop.f32.mrf.mxu1  ;;  %v3748_v56 = vmax.f32 %v3680_v31, 0.0  ;;  %v3682_v32 = vadd.f32 %v3681_v2, %v3569_v38  ;;  %v3573_v40 = vadd.f32 %v3572_v3, %v7772_v41  ;;  %v7436_v3 = vld [vmem:[#allocation11] ss:$0 sm:$0xff] }
 0x2d2   : > { %v3574_v0 = vpop.f32.mrf.mxu0 }
 0x2d3   : > { %v3687_v21 = vpop.f32.mrf.mxu1  ;;  %v3784_v45 = vpack.c.bf16 %v3748_v56, %v3744_v44  ;;  %v3749_v16 = vmax.f32 %v3682_v32, 0.0  ;;  %v3575_v59 = vadd.f32 %v3574_v0, %v7774_v36  ;;  %v3686_v14 = vadd.f32 %v3685_v61, %v3573_v40 }
 0x2d4   : > { %v3576_v54 = vpop.f32.mrf.mxu0 }
 0x2d5   : > { %v3689_v22 = vpop.f32.mrf.mxu1  ;;  %v3785_v7 = vpack.c.bf16 %v3749_v16, %v3745_v27  ;;  %v3577_v10 = vadd.f32 %v3576_v54, %v3464_v5  ;;  %v3688_v43 = vadd.f32 %v3687_v21, %v3575_v59  ;;  %v3752_v25 = vmax.f32 %v3686_v14, 0.0 }
 0x2d6   : > { %v3578_v50 = vpop.f32.mrf.mxu0 }
 0x2d7   : > { %v3690_v8 = vadd.f32 %v3689_v22, %v3577_v10  ;;  %v3579_v29 = vadd.f32 %v3578_v50, %v3466_v47  ;;  %4230 = vmatprep.mubr.bf16.mxu1 %v3785_v7  ;;  %v3691_v26 = vpop.f32.mrf.mxu1  ;;  %v3753_v1 = vmax.f32 %v3688_v43, 0.0 }
 0x2d8   : > { %4231 = vmatmul.mubr.bf16.gmra.mxu1 %v3784_v45 }
 0x2d9   : > { %v3756_v30 = vmax.f32 %v3690_v8, 0.0  ;;  %v3692_v20 = vadd.f32 %v3691_v26, %v3579_v29 }
 0x2db   : > { %v3788_v55 = vpack.c.bf16 %v3756_v30, %v3752_v25  ;;  %v3757_v19 = vmax.f32 %v3692_v20, 0.0 }
 0x2dd   : > { %v3789_v23 = vpack.c.bf16 %v3757_v19, %v3753_v1 }
 0x2df   : > { %4238 = vmatprep.mubr.bf16.mxu1 %v3789_v23 }
 0x2e0   : > { %4239 = vmatmul.mubr.bf16.gmra.mxu1 %v3788_v55 }
 0x2e6   : > { %v5106_v9 = vpop.f32.mrf.mxu0 }
 0x2e8   : > { %v5107_v46 = vpop.f32.mrf.mxu0 }
 0x2e9   : > { %v5108_v52 = vadd.f32 %v5107_v46, %v5106_v9 }
 0x2ea   : > { %v5109_v51 = vpop.f32.mrf.mxu0 }
 0x2eb   : > { %v4088_v2 = vadd.f32 %v5108_v52, %v7429_v60 }
 0x2ec   : > { %v5110_v37 = vpop.f32.mrf.mxu0 }
 0x2ed   : > { %v5111_v17 = vadd.f32 %v5110_v37, %v5109_v51 }
 0x2ee   : > { %v5112_v39 = vpop.f32.mrf.mxu0 }
 0x2ef   : > { %v4091_v61 = vadd.f32 %v5111_v17, %v7429_v60 }
 0x2f0   : > { %v5113_v24 = vpop.f32.mrf.mxu0 }
 0x2f1   : > { %v5114_v44 = vadd.f32 %v5113_v24, %v5112_v39 }
 0x2f2   : > { %v5115_v58 = vpop.f32.mrf.mxu0 }
 0x2f3   : > { %v4096_v21 = vadd.f32 %v5114_v44, %v7429_v60 }
 0x2f4   : > { %v5116_v18 = vpop.f32.mrf.mxu0 }
 0x2f5   : > { %v5117_v27 = vadd.f32 %v5116_v18, %v5115_v58 }
 0x2f6   : > { %v5118_v49 = vpop.f32.mrf.mxu0 }
 0x2f7   : > { %v4099_v47 = vadd.f32 %v5117_v27, %v7429_v60 }
 0x2f8   : > { %v5119_v11 = vpop.f32.mrf.mxu0 }
 0x2f9   : > { %v5120_v7 = vadd.f32 %v5119_v11, %v5118_v49 }
 0x2fa   : > { %v5121_v35 = vpop.f32.mrf.mxu0 }
 0x2fb   : > { %v4104_v25 = vadd.f32 %v5120_v7, %v7429_v60 }
 0x2fc   : > { %v5122_v63 = vpop.f32.mrf.mxu0 }
 0x2fd   : > { %v5123_v30 = vadd.f32 %v5122_v63, %v5121_v35 }
 0x2fe   : > { %v5124_v42 = vpop.f32.mrf.mxu0 }
 0x2ff   : > { %v4107_v51 = vadd.f32 %v5123_v30, %v7429_v60 }
 0x300   : > { %v5125_v33 = vpop.f32.mrf.mxu0 }
 0x301   : > { %v5126_v37 = vadd.f32 %v5125_v33, %v5124_v42 }
 0x302   : > { %v7423_v15 = vpop.f32.mrf.mxu0 }
 0x303   : > { %v4112_v63 = vadd.f32 %v5126_v37, %v7429_v60 }
 0x304   : > { %v7425_v48 = vpop.f32.mrf.mxu0 }
 0x305   : > { %v5129_v52 = vadd.f32 %v7425_v48, %v7423_v15 }
 0x306   : > { %v7427_v6 = vpop.f32.mrf.mxu0 }
 0x308   : > { %v7431_v13 = vpop.f32.mrf.mxu0 }
 0x30a   : > { %v7434_v38 = vpop.f32.mrf.mxu0 }
 0x30c   : > { %v7439_v41 = vpop.f32.mrf.mxu0 }
 0x30e   : > { %v7443_v36 = vpop.f32.mrf.mxu0 }
 0x310   : > { %v5137_v50 = vpop.f32.mrf.mxu0 }
 0x312   : > { %v5139_v55 = vpop.f32.mrf.mxu0 }
 0x314   : > { %v5140_v58 = vpop.f32.mrf.mxu0 }
 0x368   : > { %v5170_v12 = vpop.f32.mrf.mxu1 }
 0x36a   : > { %v5171_v57 = vpop.f32.mrf.mxu1 }
 0x36b   : > { %v5172_v31 = vadd.f32 %v5171_v57, %v5170_v12 }
 0x36c   : > { %v5173_v53 = vpop.f32.mrf.mxu1 }
 0x36d   : > { %v4185_v4 = vadd.f32 %v5172_v31, %v4088_v2  ;;  %v5142_v2 = vpop.f32.mrf.mxu0 }
 0x36e   : > { %v5174_v62 = vpop.f32.mrf.mxu1 }
 0x36f   : > { %v5175_v56 = vadd.f32 %v5174_v62, %v5173_v53  ;;  %v4247_v32 = vmax.f32 %v4185_v4, 0.0  ;;  %v4115_v53 = vadd.f32 %v5129_v52, %v7429_v60  ;;  %v5132_v4 = vadd.f32 %v7431_v13, %v7427_v6  ;;  %v5143_v44 = vpop.f32.mrf.mxu0 }
 0x370   : > { %v5176_v40 = vpop.f32.mrf.mxu1 }
 0x371   : > { %v4188_v34 = vadd.f32 %v5175_v56, %v4091_v61  ;;  %v4270_v5 = vmul.f32 %v7436_v3, %v4247_v32 }
 0x372   : > { %v5177_v0 = vpop.f32.mrf.mxu1 }
 0x373   : > { %v4248_v45 = vmax.f32 %v4188_v34, 0.0  ;;  %v5178_v16 = vadd.f32 %v5177_v0, %v5176_v40  ;;  %4286 = vadd.xlane.f32.xlu0 %v4270_v5  ;;  %v4120_v40 = vadd.f32 %v5132_v4, %v7429_v60  ;;  %v5135_v34 = vadd.f32 %v7439_v41, %v7434_v38 }
 0x374   : > { %v5179_v59 = vpop.f32.mrf.mxu1 }
 0x375   : > { %v4271_v54 = vmul.f32 %v7436_v3, %v4248_v45  ;;  %v4193_v22 = vadd.f32 %v5178_v16, %v4096_v21  ;;  %v5145_v21 = vpop.f32.mrf.mxu0  ;;  %v4123_v16 = vadd.f32 %v5135_v34, %v7429_v60 }
 0x376   : > { %v5180_v28 = vpop.f32.mrf.mxu1 }
 0x377   : > { %v5181_v14 = vadd.f32 %v5180_v28, %v5179_v59  ;;  %4288 = vadd.xlane.f32.xlu0 %v4271_v54  ;;  %v4249_v10 = vmax.f32 %v4193_v22, 0.0  ;;  %v5138_v59 = vadd.f32 %v5137_v50, %v7443_v36  ;;  %v5146_v28 = vpop.f32.mrf.mxu0 }
 0x378   : > { %v5182_v43 = vpop.f32.mrf.mxu1 }
 0x379   : > { %v4196_v8 = vadd.f32 %v5181_v14, %v4099_v47  ;;  %v4272_v29 = vmul.f32 %v7436_v3, %v4249_v10  ;;  %v4128_v14 = vadd.f32 %v5138_v59, %v7429_v60  ;;  %v5141_v10 = vadd.f32 %v5140_v58, %v5139_v55 }
 0x37a   : > { %v5183_v26 = vpop.f32.mrf.mxu1 }
 0x37b   : > { %v4250_v20 = vmax.f32 %v4196_v8, 0.0  ;;  %v5184_v1 = vadd.f32 %v5183_v26, %v5182_v43  ;;  %4290 = vadd.xlane.f32.xlu1 %v4272_v29  ;;  %v5148_v29 = vpop.f32.mrf.mxu0  ;;  %v4131_v30 = vadd.f32 %v5141_v10, %v7429_v60 }
 0x37c   : > { %v5185_v19 = vpop.f32.mrf.mxu1 }
 0x37d   : > { %v4201_v23 = vadd.f32 %v5184_v1, %v4104_v25  ;;  %v4273_v9 = vmul.f32 %v7436_v3, %v4250_v20  ;;  %v5144_v20 = vadd.f32 %v5143_v44, %v5142_v2 }
 0x37e   : > { %v5186_v46 = vpop.f32.mrf.mxu1 }
 0x37f   : > { %v4251_v39 = vmax.f32 %v4201_v23, 0.0  ;;  %v5187_v24 = vadd.f32 %v5186_v46, %v5185_v19  ;;  %4292 = vadd.xlane.f32.xlu1 %v4273_v9  ;;  %v5149_v23 = vpop.f32.mrf.mxu0  ;;  %v4136_v37 = vadd.f32 %v5144_v20, %v7429_v60 }
 0x380   : > { %v5188_v18 = vpop.f32.mrf.mxu1 }
 0x381   : > { %v4204_v49 = vadd.f32 %v5187_v24, %v4107_v51  ;;  %v4274_v11 = vmul.f32 %v7436_v3, %v4251_v39  ;;  %v5147_v39 = vadd.f32 %v5146_v28, %v5145_v21 }
 0x382   : > { %v5189_v35 = vpop.f32.mrf.mxu1 }
 0x383   : > { %v4252_v12 = vmax.f32 %v4204_v49, 0.0  ;;  %v5190_v57 = vadd.f32 %v5189_v35, %v5188_v18  ;;  %4294 = vadd.xlane.f32.xlu0 %v4274_v11  ;;  %v5151_v18 = vpop.f32.mrf.mxu0  ;;  %v4139_v52 = vadd.f32 %v5147_v39, %v7429_v60 }
 0x384   : > { %v5191_v17 = vpop.f32.mrf.mxu1 }
 0x385   : > { %v4209_v42 = vadd.f32 %v5190_v57, %v4112_v63  ;;  %v4275_v33 = vmul.f32 %v7436_v3, %v4252_v12  ;;  %v5150_v12 = vadd.f32 %v5149_v23, %v5148_v29 }
 0x386   : > { %v5192_v31 = vpop.f32.mrf.mxu1 }
 0x387   : > { %v4253_v62 = vmax.f32 %v4209_v42, 0.0  ;;  %v5193_v61 = vadd.f32 %v5192_v31, %v5191_v17  ;;  %4296 = vadd.xlane.f32.xlu1 %v4275_v33  ;;  %v5152_v17 = vpop.f32.mrf.mxu0  ;;  %v4144_v4 = vadd.f32 %v5150_v12, %v7429_v60 }
 0x388   : > { %v5194_v56 = vpop.f32.mrf.mxu1 }
 0x389   : > { %v4212_v15 = vadd.f32 %v5193_v61, %v4115_v53  ;;  %v4276_v48 = vmul.f32 %v7436_v3, %v4253_v62  ;;  %v5153_v62 = vadd.f32 %v5152_v17, %v5151_v18 }
 0x38a   : > { %v5195_v32 = vpop.f32.mrf.mxu1 }
 0x38b   : > { %v4254_v5 = vmax.f32 %v4212_v15, 0.0  ;;  %v5196_v0 = vadd.f32 %v5195_v32, %v5194_v56  ;;  %4298 = vadd.xlane.f32.xlu0 %v4276_v48 }
 0x38c   : > { %v5197_v27 = vpop.f32.mrf.mxu1 }
 0x38d   : > { %v4217_v6 = vadd.f32 %v5196_v0, %v4120_v40  ;;  %v4277_v13 = vmul.f32 %v7436_v3, %v4254_v5  ;;  %v4147_v40 = vadd.f32 %v5153_v62, %v7429_v60 }
 0x38e   : > { %v5198_v45 = vpop.f32.mrf.mxu1 }
 0x38f   : > { %v4255_v54 = vmax.f32 %v4217_v6, 0.0  ;;  %v5199_v22 = vadd.f32 %v5198_v45, %v5197_v27  ;;  %4300 = vadd.xlane.f32.xlu1 %v4277_v13  ;;  %v5069_v13 = vld [vmem:[#allocation2] ss:$0 sm:$0xff] }
 0x390   : > { %v5200_v47 = vpop.f32.mrf.mxu1 }
 0x391   : > { %v4220_v7 = vadd.f32 %v5199_v22, %v4123_v16  ;;  %v4278_v38 = vmul.f32 %v7436_v3, %v4255_v54 }
 0x392   : > { %v5201_v41 = vpop.f32.mrf.mxu1 }
 0x393   : > { %v4256_v43 = vmax.f32 %v4220_v7, 0.0  ;;  %v5202_v8 = vadd.f32 %v5201_v41, %v5200_v47  ;;  %4302 = vadd.xlane.f32.xlu0 %v4278_v38 }
 0x394   : > { %v5203_v26 = vpop.f32.mrf.mxu1 }
 0x395   : > { %v4225_v25 = vadd.f32 %v5202_v8, %v4128_v14  ;;  %v4279_v36 = vmul.f32 %v7436_v3, %v4256_v43 }
 0x396   : > { %v5204_v50 = vpop.f32.mrf.mxu1 }
 0x397   : > { %v4257_v1 = vmax.f32 %v4225_v25, 0.0  ;;  %v5205_v19 = vadd.f32 %v5204_v50, %v5203_v26  ;;  %4304 = vadd.xlane.f32.xlu1 %v4279_v36 }
 0x398   : > { %v5206_v9 = vpop.f32.mrf.mxu1 }
 0x399   : > { %v4228_v46 = vadd.f32 %v5205_v19, %v4131_v30  ;;  %v4280_v55 = vmul.f32 %v7436_v3, %v4257_v1 }
 0x39a   : > { %v5207_v51 = vpop.f32.mrf.mxu1 }
 0x39b   : > { %v4258_v24 = vmax.f32 %v4228_v46, 0.0  ;;  %v5208_v58 = vadd.f32 %v5207_v51, %v5206_v9  ;;  %4306 = vadd.xlane.f32.xlu0 %v4280_v55 }
 0x39c   : > { %v5209_v49 = vpop.f32.mrf.mxu1 }
 0x39d   : > { %v4233_v11 = vadd.f32 %v5208_v58, %v4136_v37  ;;  %v4281_v35 = vmul.f32 %v7436_v3, %v4258_v24 }
 0x39e   : > { %v5210_v63 = vpop.f32.mrf.mxu1 }
 0x39f   : > { %v4259_v57 = vmax.f32 %v4233_v11, 0.0  ;;  %v5211_v2 = vadd.f32 %v5210_v63, %v5209_v49  ;;  %4308 = vadd.xlane.f32.xlu1 %v4281_v35 }
 0x3a0   : > { %v5212_v42 = vpop.f32.mrf.mxu1 }
 0x3a1   : > { %v4236_v33 = vadd.f32 %v5211_v2, %v4139_v52  ;;  %v4282_v31 = vmul.f32 %v7436_v3, %v4259_v57 }
 0x3a2   : > { %v5213_v53 = vpop.f32.mrf.mxu1 }
 0x3a3   : > { %v4260_v61 = vmax.f32 %v4236_v33, 0.0  ;;  %v5214_v44 = vadd.f32 %v5213_v53, %v5212_v42  ;;  %4310 = vadd.xlane.f32.xlu0 %v4282_v31 }
 0x3a4   : > { %v5215_v56 = vpop.f32.mrf.mxu1 }
 0x3a5   : > { %v4241_v15 = vadd.f32 %v5214_v44, %v4144_v4  ;;  %v4283_v48 = vmul.f32 %v7436_v3, %v4260_v61 }
 0x3a6   : > { %v5216_v32 = vpop.f32.mrf.mxu1 }
 0x3a7   : > { %v4261_v34 = vmax.f32 %v4241_v15, 0.0  ;;  %v5217_v5 = vadd.f32 %v5216_v32, %v5215_v56  ;;  %4312 = vadd.xlane.f32.xlu1 %v4283_v48 }
 0x3a9   : > { %v4244_v0 = vadd.f32 %v5217_v5, %v4147_v40  ;;  %v4284_v21 = vmul.f32 %v7436_v3, %v4261_v34 }
 0x3ab   : > { %v4262_v27 = vmax.f32 %v4244_v0, 0.0  ;;  %4314 = vadd.xlane.f32.xlu0 %v4284_v21 }
 0x3ad   : > { %v4285_v6 = vmul.f32 %v7436_v3, %v4262_v27 }
 0x3af   : > { %4316 = vadd.xlane.f32.xlu1 %v4285_v6 }
 0x3fc   : > { %v4287_v45 = vpop.xlane.xlu0 %4286 }
 0x3fd   : > { %v4325_v16 = vadd.f32 %v5069_v13, %v4287_v45 }
 0x3ff   : > { %4342 = vst.msk [vmem:[%s7481_s14] sm:$0xff] %vm4341_vm0, %v4325_v16 }
 0x400   : > { %v4289_v60 = vpop.xlane.xlu0 %4288 }
 0x401   : > { %v4326_v59 = vadd.f32 %v5069_v13, %v4289_v60 }
 0x403   : > { %4343 = vst.msk [vmem:[%s7481_s14 + $0x8] sm:$0xff] %vm4341_vm0, %v4326_v59 }
 0x404   : > { %v4291_v3 = vpop.xlane.xlu1 %4290 }
 0x405   : > { %v4327_v54 = vadd.f32 %v5069_v13, %v4291_v3 }
 0x407   : > { %4344 = vst.msk [vmem:[%s7481_s14 + $0x10] sm:$0xff] %vm4341_vm0, %v4327_v54 }
 0x408   : > { %v4293_v22 = vpop.xlane.xlu1 %4292 }
 0x409   : > { %v4328_v28 = vadd.f32 %v5069_v13, %v4293_v22 }
 0x40b   : > { %4345 = vst.msk [vmem:[%s7481_s14 + $0x18] sm:$0xff] %vm4341_vm0, %v4328_v28 }
 0x40c   : > { %v4295_v47 = vpop.xlane.xlu0 %4294 }
 0x40d   : > { %v4329_v7 = vadd.f32 %v5069_v13, %v4295_v47 }
 0x40f   : > { %4346 = vst.msk [vmem:[%s7481_s14 + $0x20] sm:$0xff] %vm4341_vm0, %v4329_v7 }
 0x410   : > { %v4297_v38 = vpop.xlane.xlu1 %4296 }
 0x411   : > { %v4330_v41 = vadd.f32 %v5069_v13, %v4297_v38 }
 0x413   : > { %4347 = vst.msk [vmem:[%s7481_s14 + $0x28] sm:$0xff] %vm4341_vm0, %v4330_v41 }
 0x414   : > { %v4299_v14 = vpop.xlane.xlu0 %4298 }
 0x415   : > { %v4331_v10 = vadd.f32 %v5069_v13, %v4299_v14 }
 0x417   : > { %4348 = vst.msk [vmem:[%s7481_s14 + $0x30] sm:$0xff] %vm4341_vm0, %v4331_v10 }
 0x418   : > { %v4301_v43 = vpop.xlane.xlu1 %4300 }
 0x419   : > { %v4332_v8 = vadd.f32 %v5069_v13, %v4301_v43 }
 0x41b   : > { %4349 = vst.msk [vmem:[%s7481_s14 + $0x38] sm:$0xff] %vm4341_vm0, %v4332_v8 }
 0x41c   : > { %v4303_v29 = vpop.xlane.xlu0 %4302 }
 0x41d   : > { %v4333_v26 = vadd.f32 %v5069_v13, %v4303_v29 }
 0x41f   : > { %4350 = vst.msk [vmem:[%s7481_s14 + $0x40] sm:$0xff] %vm4341_vm0, %v4333_v26 }
 0x420   : > { %v4305_v25 = vpop.xlane.xlu1 %4304 }
 0x421   : > { %v4334_v36 = vadd.f32 %v5069_v13, %v4305_v25 }
 0x423   : > { %4351 = vst.msk [vmem:[%s7481_s14 + $0x48] sm:$0xff] %vm4341_vm0, %v4334_v36 }
 0x424   : > { %v4307_v50 = vpop.xlane.xlu0 %4306 }
 0x425   : > { %v4335_v30 = vadd.f32 %v5069_v13, %v4307_v50 }
 0x427   : > { %4352 = vst.msk [vmem:[%s7481_s14 + $0x50] sm:$0xff] %vm4341_vm0, %v4335_v30 }
 0x428   : > { %v4309_v20 = vpop.xlane.xlu1 %4308 }
 0x429   : > { %v4336_v1 = vadd.f32 %v5069_v13, %v4309_v20 }
 0x42b   : > { %4353 = vst.msk [vmem:[%s7481_s14 + $0x58] sm:$0xff] %vm4341_vm0, %v4336_v1 }
 0x42c   : > { %v4311_v19 = vpop.xlane.xlu0 %4310 }
 0x42d   : > { %v4337_v23 = vadd.f32 %v5069_v13, %v4311_v19 }
 0x42f   : > { %4354 = vst.msk [vmem:[%s7481_s14 + $0x60] sm:$0xff] %vm4341_vm0, %v4337_v23 }
 0x430   : > { %v4313_v9 = vpop.xlane.xlu1 %4312 }
 0x431   : > { %v4338_v46 = vadd.f32 %v5069_v13, %v4313_v9 }
 0x433   : > { %4355 = vst.msk [vmem:[%s7481_s14 + $0x68] sm:$0xff] %vm4341_vm0, %v4338_v46 }
 0x434   : > { %v4315_v55 = vpop.xlane.xlu0 %4314 }
 0x435   : > { %v4339_v51 = vadd.f32 %v5069_v13, %v4315_v55 }
 0x437   : > { %4356 = vst.msk [vmem:[%s7481_s14 + $0x70] sm:$0xff] %vm4341_vm0, %v4339_v51  ;;  %4364 = sbr.rel (!%p7776_p12) target bundleno = 1125 (0x465), region = 76 }
 0x438   : > { %v4317_v37 = vpop.xlane.xlu1 %4316 }
 0x439   : > { %v4340_v39 = vadd.f32 %v5069_v13, %v4317_v37 }
 0x43b   : > { %4357 = vst.msk [vmem:[%s7481_s14 + $0x78] sm:$0xff] %vm4341_vm0, %v4340_v39 }
 0x43c   : > { %s7787_s18 = smov (!%p4367_p4, %s4366_s18), 16 }
 0x43d   : > { %s5072_s26 = sshll.u32 %s7787_s18, 7 }
 0x43e   : > { %p5075_p1 = scmp.eq.s32.totalorder %s5072_s26, 0 }
 0x43f   : > { %s7528_s13 = sshrl.u32 (!%p5075_p1), %s7787_s18, 4 }
 0x440   : > { %4375 = sbr.rel (%p5075_p1) target bundleno = 1125 (0x465), region = 80  ;;  %p5076_p2 = scmp.le.s32.totalorder (!%p5075_p1), %s7528_s13, 0 }
 0x445   : > { %4601 = sbr.rel (%p5076_p2) target bundleno = 1108 (0x454), region = 162  ;;  %s7777_s6 = smov (!%p5076_p2), %s7522_s19 }
 0x446   : > { %s7778_s17 = smov (!%p5076_p2), %s7481_s14  ;;  %s7537_s15 = smov (!%p5076_p2), 0  }
 0x447   : > { %s7539_s11 = smov (!%p5076_p2), 0  }
 0x44a LB: >> { %v4468_v24 = vld [vmem:[%s6130_s17] sm:$0xff]  ;;  %v4470_v58 = vld [vmem:[%s6130_s17 + $0x8] sm:$0xff]  ;;  %v4472_v18 = vld [vmem:[%s6130_s17 + $0x10] sm:$0xff]  ;;  %s4500_s16 = sadd.s32 1, %s6134_s15  ;;  %s4462_s11 = sadd.s32 1, %s6138_s11   ;;  %s6138_s11 = sphi %s7539_s11, %s4462_s11   ;;  %s6134_s15 = sphi %s7537_s15, %s7779_s15   ;;  %s6130_s17 = sphi %s7778_s17, %s4505_s17   ;;  %s6126_s6 = sphi %s7777_s6, %s4506_s6  }
 0x44b   : >> { %4469 = vst [vmem:[%s6126_s6] sm:$0xff] %v4468_v24  ;;  %4471 = vst [vmem:[%s6126_s6 + $0x8] sm:$0xff] %v4470_v58  ;;  %v4474_v49 = vld [vmem:[%s6130_s17 + $0x18] sm:$0xff]  ;;  %v4476_v11 = vld [vmem:[%s6130_s17 + $0x20] sm:$0xff]  ;;  %p4501_p0 = scmp.ge.s32.totalorder %s4500_s16, %s7528_s13  ;;  %p4461_p6 = scmp.ge.s32.totalorder %s4462_s11, %s7528_s13 }
 0x44c   : >> { %4473 = vst [vmem:[%s6126_s6 + $0x10] sm:$0xff] %v4472_v18  ;;  %v4478_v35 = vld [vmem:[%s6130_s17 + $0x28] sm:$0xff]  ;;  %4475 = vst [vmem:[%s6126_s6 + $0x18] sm:$0xff] %v4474_v49  ;;  %v4480_v63 = vld [vmem:[%s6130_s17 + $0x30] sm:$0xff] }
 0x44d   : >> { %4477 = vst [vmem:[%s6126_s6 + $0x20] sm:$0xff] %v4476_v11  ;;  %4479 = vst [vmem:[%s6126_s6 + $0x28] sm:$0xff] %v4478_v35  ;;  %v4482_v52 = vld [vmem:[%s6130_s17 + $0x38] sm:$0xff]  ;;  %v4484_v12 = vld [vmem:[%s6130_s17 + $0x40] sm:$0xff]  ;;  %s7789_s16 = smov (%p4501_p0, %s4500_s16), 0 }
 0x44e   : >> { %4481 = vst [vmem:[%s6126_s6 + $0x30] sm:$0xff] %v4480_v63  ;;  %4483 = vst [vmem:[%s6126_s6 + $0x38] sm:$0xff] %v4482_v52  ;;  %v4486_v57 = vld [vmem:[%s6130_s17 + $0x48] sm:$0xff]  ;;  %v4488_v2 = vld [vmem:[%s6130_s17 + $0x50] sm:$0xff]  ;;  %s5077_s21 = sshll.u32 %s7789_s16, 7  ;;  %s7779_s15 = smov %s7789_s16 }
 0x44f   : >> { %4485 = vst [vmem:[%s6126_s6 + $0x40] sm:$0xff] %v4484_v12  ;;  %v4490_v17 = vld [vmem:[%s6130_s17 + $0x58] sm:$0xff]  ;;  %4487 = vst [vmem:[%s6126_s6 + $0x48] sm:$0xff] %v4486_v57  ;;  %v4492_v42 = vld [vmem:[%s6130_s17 + $0x60] sm:$0xff]  ;;  %4464 = sbr.rel (!%p4461_p6) target bundleno = 1098 (0x44a), region = 168 }
 0x450   : >> { %4489 = vst [vmem:[%s6126_s6 + $0x50] sm:$0xff] %v4488_v2  ;;  %4491 = vst [vmem:[%s6126_s6 + $0x58] sm:$0xff] %v4490_v17  ;;  %v4494_v33 = vld [vmem:[%s6130_s17 + $0x68] sm:$0xff]  ;;  %v4496_v31 = vld [vmem:[%s6130_s17 + $0x70] sm:$0xff] }
 0x451   : >> { %4493 = vst [vmem:[%s6126_s6 + $0x60] sm:$0xff] %v4492_v42  ;;  %4495 = vst [vmem:[%s6126_s6 + $0x68] sm:$0xff] %v4494_v33  ;;  %v4498_v53 = vld [vmem:[%s6130_s17 + $0x78] sm:$0xff]  ;;  %s4505_s17 = scalar_lea.vmem %s7481_s14, %s5077_s21 [#allocation13]  }
 0x452   : >> { %4497 = vst [vmem:[%s6126_s6 + $0x70] sm:$0xff] %v4496_v31  ;;  %4499 = vst [vmem:[%s6126_s6 + $0x78] sm:$0xff] %v4498_v53  ;;  %s4506_s6 = scalar_lea.vmem %s7522_s19, %s5077_s21  }
 0x454 PF: > { %s7597_s24 = sand.u32 15, %s7787_s18   ;;  %s5088_s25 = sshll.u32 %s7528_s13, 7 }
 0x455   : > { %s4511_s20 = scalar_lea.vmem %s7481_s14, %s5088_s25 [#allocation13]   ;;  %s4513_s29 = scalar_lea.vmem %s7522_s19, %s5088_s25  }
 0x456   : > { %p5082_p5 = scmp.le.s32.totalorder %s7597_s24, 0 }
 0x457   : > { %s6140_s12 = smov (!%p5082_p5), %s4513_s29   ;;  %s6144_s8 = smov (!%p5082_p5), %s4511_s20  }
 0x458   : > { %4615 = sbr.rel (%p5082_p5) target bundleno = 1125 (0x465), region = 173  ;;  %s6148_s9 = smov (!%p5082_p5), 0  }
 0x459   : > { %s6152_s22 = smov (!%p5082_p5), 0  }
 0x45d LB: >> { %v4523_v4 = vld [vmem:[%s6146_s8] sm:$0xff]  ;;  %s4525_s18 = sadd.s32 1, %s6150_s9  ;;  %s4517_s22 = sadd.s32 1, %s6154_s22   ;;  %s6154_s22 = sphi %s6152_s22, %s4517_s22   ;;  %s6150_s9 = sphi %s6148_s9, %s6149_s9   ;;  %s6146_s8 = sphi %s6144_s8, %s4530_s8   ;;  %s6142_s12 = sphi %s6140_s12, %s4531_s12  }
 0x45e   : >> { %4524 = vst [vmem:[%s6142_s12] sm:$0xff] %v4523_v4  ;;  %p4526_p8 = scmp.ge.s32.totalorder %s4525_s18, %s7597_s24  ;;  %p4516_p13 = scmp.ge.s32.totalorder %s4517_s22, %s7597_s24 }
 0x460   : >> { %s7791_s18 = smov (%p4526_p8, %s4525_s18), 0  ;;  %4519 = sbr.rel (!%p4516_p13) target bundleno = 1117 (0x45d), region = 179 }
 0x461   : >> { %s5083_s14 = sshll.u32 %s7791_s18, 3  ;;  %s6149_s9 = smov %s7791_s18  }
 0x462   : >> { %s4530_s8 = scalar_lea.vmem %s4511_s20, %s5083_s14 [#allocation13]   ;;  %s4531_s12 = scalar_lea.vmem %s4513_s29, %s5083_s14  }
 0x465 PF: > { %p22_p10 = scmp.ge.s32.totalorder %s6233_s30, 4   ;;  %s7780_s26 = smov %s6114_s27 }
 0x466   : > { %s7781_s27 = smov %s6118_s28  ;;  %s7782_s28 = smov %s6243_s10 }
 0x467   : > { %s7783_s29 = smov %s6233_s30  ;;  %24 = sbr.rel (!%p22_p10) target bundleno = 9 (0x9), region = 190 }
 0x46c   :  { %4547 = vsyncpa [#allocation4], 1 }
 0x46d   :  { %4549 = vsyncpa [#allocation4 + $0x1], 1 }
 0x46e   :  { %4550 = vsyncpa [#allocation6], 1 }
 0x46f   :  { %4551 = vsyncpa [#allocation9], 1 }
 0x470   :  { %4552 = vsyncpa [#allocation12], 1 }

</bundles_post_ra>
